<compile_context>
chip_gen: v5e
topology: v5e:2x2
jax: 0.10.0
libtpu: 0.0.40
codegen_flags: <defaults>
</compile_context>

<pallas_src>
import functools

import jax
import jax.numpy as jnp
from jax import lax
from jax.experimental import pallas as pl
from jax.experimental.pallas import tpu as pltpu


def _round_up(a, b):
    return -(-a // b) * b


def _adagnn_v_kernel(x_ref, w1_ref, vecs_ref, w2_ref, b2_ref, o_ref):
    """Fused: (encoder∘conv Linear) -> LayerNorm -> ReLU -> Linear, per node tile."""
    vecs = vecs_ref[...]                       # (3, H): [b_fused; gamma; beta]
    b1 = vecs[0:1, :]
    gamma = vecs[1:2, :]
    beta = vecs[2:3, :]

    # Single fused Linear(in_ch -> hidden): W_fused = W_node @ W_conv.
    h = jnp.dot(x_ref[...], w1_ref[...],
                preferred_element_type=jnp.float32) + b1

    # LayerNorm over channels (biased variance, eps=1e-5); gamma folded into the
    # rsqrt scale; rsqrt lands on the EUP slot.
    mean = jnp.mean(h, axis=-1, keepdims=True)
    centered = h - mean
    var = jnp.mean(centered * centered, axis=-1, keepdims=True)
    h = centered * (gamma * lax.rsqrt(var + 1e-5)) + beta

    # ReLU. (F.dropout(p=0.1) is identity at inference.)
    h = jnp.maximum(h, 0.0)

    # Final lin. Output block is (tile, Cout) with Cout equal to the full last
    # dim of the output array, so the HBM writeback is exactly the useful bytes
    # (no zero-padded slab, no post-kernel slice).
    o_ref[...] = (jnp.dot(h, w2_ref[...], preferred_element_type=jnp.float32)
                  + b2_ref[...]).astype(o_ref.dtype)


@functools.partial(jax.jit, static_argnames=("tile_n",))
def adagnn_v_forward(x, params, tile_n=512):
    """AdaGNN_v forward (edge_attr=None, inference). edge_index unused (see TODO)."""
    N, Cin = x.shape
    H = params["w_node"].shape[1]
    Cout = params["w_out"].shape[1]

    # --- parameter prep (wrapper-side, tiny) --------------------------------
    # Exact algebraic fold of node_encoder followed by the conv Linear.
    w_fused = params["w_node"] @ params["w_conv"]                       # (Cin, H)
    b_fused = params["b_node"] @ params["w_conv"] + params["b_conv"]    # (H,)
    # One operand carrying the three per-channel vectors (fewer DMA descriptors).
    vecs = jnp.stack([b_fused, params["ln_gamma"], params["ln_beta"]])  # (3, H)
    w_out = params["w_out"]                                             # (H, Cout)
    b_out = params["b_out"].reshape(1, Cout)                            # (1, Cout)

    # --- grid / tiling -------------------------------------------------------
    # 512-row tiles are the sweet spot on v5e/v6e and give >= 2 grid steps per
    # v7x TensorCore at N=2048. For very large graphs raise tile_n (per-step
    # VMEM is ~1.2 KiB/row, far below every generation's scoped VMEM limit).
    tile = min(tile_n, _round_up(N, 8))
    # Aim for >= 4 grid steps (>= 2 per v7x TC) when each step still gets a
    # healthy tile; tiny N just runs as a single-step call.
    if N >= 4 * 128:
        tile = min(tile, _round_up(pl.cdiv(N, 4), 8))
    tile = max(8, _round_up(tile, 8))
    grid_n = pl.cdiv(N, tile)
    # No jnp.pad of x: the last block may be partial; out-of-bounds input rows
    # produce garbage in out-of-bounds output rows, which Pallas masks on store.
    # (Rows are independent -- no cross-row reductions -- so this is safe.)

    # Grid-invariant operands: full-shape blocks with constant index_maps, so
    # they are DMA'd once and never re-fetched across grid steps.
    full = lambda a: pl.BlockSpec(a.shape, lambda i: (0, 0))

    flops = 2 * N * (Cin * H + H * Cout) + 10 * N * H
    bytes_accessed = 4 * (N * Cin + N * Cout + Cin * H + 3 * H + H * Cout + Cout)
    cost = pl.CostEstimate(flops=int(flops), transcendentals=int(N),
                           bytes_accessed=int(bytes_accessed))

    return pl.pallas_call(
        _adagnn_v_kernel,
        out_shape=jax.ShapeDtypeStruct((N, Cout), x.dtype),
        grid_spec=pltpu.PrefetchScalarGridSpec(
            num_scalar_prefetch=0,
            grid=(grid_n,),
            in_specs=[
                pl.BlockSpec((tile, Cin), lambda i: (i, 0)),   # x tile
                full(w_fused),   # (Cin, H)
                full(vecs),      # (3, H): b_fused / gamma / beta
                full(w_out),     # (H, Cout)
                full(b_out),     # (1, Cout)
            ],
            out_specs=pl.BlockSpec((tile, Cout), lambda i: (i, 0)),
        ),
        compiler_params=pltpu.CompilerParams(
            dimension_semantics=("parallel",)),
        cost_estimate=cost,
    )(x, w_fused, vecs, w_out, b_out)


def _reference(x, params):
    """Pure-JAX reference of the same forward path (unfused)."""
    h = x @ params["w_node"] + params["b_node"]
    h = h @ params["w_conv"] + params["b_conv"]
    mean = jnp.mean(h, axis=-1, keepdims=True)
    var = jnp.mean((h - mean) ** 2, axis=-1, keepdims=True)
    h = (h - mean) / jnp.sqrt(var + 1e-5)
    h = h * params["ln_gamma"] + params["ln_beta"]
    h = jnp.maximum(h, 0.0)
    return h @ params["w_out"] + params["b_out"]


def init_params(key, in_channels, hidden_channels, out_channels):
    """Deterministic synthetic parameters matching the module's shapes."""
    ks = jax.random.split(key, 6)
    scale = lambda fan_in: 1.0 / jnp.sqrt(float(fan_in))
    return {
        # node_encoder: Linear(in_channels, hidden_channels)
        "w_node": jax.random.normal(ks[0], (in_channels, hidden_channels), jnp.float32) * scale(in_channels),
        "b_node": jax.random.normal(ks[1], (hidden_channels,), jnp.float32) * 0.01,
        # layers[0].conv node-wise linear stand-in: Linear(hidden, hidden)
        "w_conv": jax.random.normal(ks[2], (hidden_channels, hidden_channels), jnp.float32) * scale(hidden_channels),
        "b_conv": jax.random.normal(ks[3], (hidden_channels,), jnp.float32) * 0.01,
        # layers[0].norm: LayerNorm(hidden_channels, elementwise_affine=True)
        "ln_gamma": jnp.ones((hidden_channels,), jnp.float32),
        "ln_beta": jnp.zeros((hidden_channels,), jnp.float32),
        # lin: Linear(hidden_channels, out_channels)
        "w_out": jax.random.normal(ks[4], (hidden_channels, out_channels), jnp.float32) * scale(hidden_channels),
        "b_out": jax.random.normal(ks[5], (out_channels,), jnp.float32) * 0.01,
    }


if __name__ == "__main__":
    key = jax.random.PRNGKey(0)
    k_x, k_p = jax.random.split(key)

    # 2048 nodes, in=16, hidden=32, out=8 -> tile_n=512 gives a 4-step
    # "parallel" grid (>= 2 steps per v7x TensorCore; pipelined loop on v5e/v6e).
    N, in_channels, hidden_channels, out_channels = 2048, 16, 32, 8
    x = jax.random.normal(k_x, (N, in_channels), jnp.float32)
    params = init_params(k_p, in_channels, hidden_channels, out_channels)

    # edge_index / edge_attr are unused on this path (see TODO at top).
    out = adagnn_v_forward(x, params)
    out = jax.block_until_ready(out)

    ref = _reference(x, params)
    assert out.shape == (N, out_channels)
    assert jnp.allclose(out, ref, atol=1e-4, rtol=1e-4)
    print("KERNEL_OK")
</pallas_src>

<mosaic_0001>
module attributes {stable_mosaic.version = 11 : i64} {
  func.func @_adagnn_v_kernel(%arg0: i32, %arg1: memref<512x16xf32, #tpu.memory_space<vmem>>, %arg2: memref<16x32xf32, #tpu.memory_space<vmem>>, %arg3: memref<3x32xf32, #tpu.memory_space<vmem>>, %arg4: memref<32x8xf32, #tpu.memory_space<vmem>>, %arg5: memref<1x8xf32, #tpu.memory_space<vmem>>, %arg6: memref<512x8xf32, #tpu.memory_space<vmem>>) attributes {dimension_semantics = [#tpu.dimension_semantics<parallel>], iteration_bounds = array<i64: 4>, scalar_prefetch = 0 : i64, scratch_operands = 0 : i64, tpu.core_type = #tpu.core_type<tc>, window_params = [{transform_indices = @transform_0, window_bounds = array<i64: 512, 16>}, {pipeline_mode = #tpu.pipeline_mode<synchronous>, transform_indices = @transform_1, window_bounds = array<i64: 16, 32>}, {pipeline_mode = #tpu.pipeline_mode<synchronous>, transform_indices = @transform_2, window_bounds = array<i64: 3, 32>}, {pipeline_mode = #tpu.pipeline_mode<synchronous>, transform_indices = @transform_3, window_bounds = array<i64: 32, 8>}, {pipeline_mode = #tpu.pipeline_mode<synchronous>, transform_indices = @transform_4, window_bounds = array<i64: 1, 8>}, {transform_indices = @transform_5, window_bounds = array<i64: 512, 8>}]} {
    %c0 = arith.constant 0 : index
    %c0_0 = arith.constant 0 : index
    %0 = vector.load %arg3[%c0, %c0_0] : memref<3x32xf32, #tpu.memory_space<vmem>>, vector<3x32xf32>
    %1 = vector.extract_strided_slice %0 {offsets = [0, 0], sizes = [1, 32], strides = [1, 1]} : vector<3x32xf32> to vector<1x32xf32>
    %2 = vector.extract_strided_slice %0 {offsets = [1, 0], sizes = [1, 32], strides = [1, 1]} : vector<3x32xf32> to vector<1x32xf32>
    %3 = vector.extract_strided_slice %0 {offsets = [2, 0], sizes = [1, 32], strides = [1, 1]} : vector<3x32xf32> to vector<1x32xf32>
    %c0_1 = arith.constant 0 : index
    %c0_2 = arith.constant 0 : index
    %4 = vector.load %arg1[%c0_1, %c0_2] : memref<512x16xf32, #tpu.memory_space<vmem>>, vector<512x16xf32>
    %c0_3 = arith.constant 0 : index
    %c0_4 = arith.constant 0 : index
    %5 = vector.load %arg2[%c0_3, %c0_4] : memref<16x32xf32, #tpu.memory_space<vmem>>, vector<16x32xf32>
    %cst = arith.constant dense<0.000000e+00> : vector<512x32xf32>
    %6 = tpu.matmul %4, %5, %cst {dimension_numbers = #tpu.dot_dimension_numbers<[1], [0], [0], [1], [0, 0, 1, 1], [], []>} : vector<512x16xf32>, vector<16x32xf32>, vector<512x32xf32> -> vector<512x32xf32>
    %7 = vector.broadcast %1 : vector<1x32xf32> to vector<512x32xf32>
    %8 = arith.addf %6, %7 : vector<512x32xf32>
    %cst_5 = arith.constant dense<0.000000e+00> : vector<512xf32>
    %9 = vector.multi_reduction <add>, %8, %cst_5 [1] : vector<512x32xf32> to vector<512xf32>
    %10 = vector.shape_cast %9 : vector<512xf32> to vector<512x1xf32>
    %cst_6 = arith.constant 3.200000e+01 : f32
    %11 = vector.broadcast %cst_6 : f32 to vector<512x1xf32>
    %12 = arith.divf %10, %11 : vector<512x1xf32>
    %13 = vector.broadcast %12 : vector<512x1xf32> to vector<512x32xf32>
    %14 = arith.subf %8, %13 : vector<512x32xf32>
    %15 = arith.mulf %14, %14 : vector<512x32xf32>
    %cst_7 = arith.constant dense<0.000000e+00> : vector<512xf32>
    %16 = vector.multi_reduction <add>, %15, %cst_7 [1] : vector<512x32xf32> to vector<512xf32>
    %17 = vector.shape_cast %16 : vector<512xf32> to vector<512x1xf32>
    %cst_8 = arith.constant 3.200000e+01 : f32
    %18 = vector.broadcast %cst_8 : f32 to vector<512x1xf32>
    %19 = arith.divf %17, %18 : vector<512x1xf32>
    %cst_9 = arith.constant 9.99999974E-6 : f32
    %20 = vector.broadcast %cst_9 : f32 to vector<512x1xf32>
    %21 = arith.addf %19, %20 : vector<512x1xf32>
    %22 = math.rsqrt %21 : vector<512x1xf32>
    %23 = vector.broadcast %2 : vector<1x32xf32> to vector<512x32xf32>
    %24 = vector.broadcast %22 : vector<512x1xf32> to vector<512x32xf32>
    %25 = arith.mulf %23, %24 : vector<512x32xf32>
    %26 = arith.mulf %14, %25 : vector<512x32xf32>
    %27 = vector.broadcast %3 : vector<1x32xf32> to vector<512x32xf32>
    %28 = arith.addf %26, %27 : vector<512x32xf32>
    %cst_10 = arith.constant 0.000000e+00 : f32
    %29 = vector.broadcast %cst_10 : f32 to vector<512x32xf32>
    %30 = arith.maximumf %28, %29 : vector<512x32xf32>
    %c0_11 = arith.constant 0 : index
    %c0_12 = arith.constant 0 : index
    %31 = vector.load %arg4[%c0_11, %c0_12] : memref<32x8xf32, #tpu.memory_space<vmem>>, vector<32x8xf32>
    %cst_13 = arith.constant dense<0.000000e+00> : vector<512x8xf32>
    %32 = tpu.matmul %30, %31, %cst_13 {dimension_numbers = #tpu.dot_dimension_numbers<[1], [0], [0], [1], [0, 0, 1, 1], [], []>} : vector<512x32xf32>, vector<32x8xf32>, vector<512x8xf32> -> vector<512x8xf32>
    %c0_14 = arith.constant 0 : index
    %c0_15 = arith.constant 0 : index
    %33 = vector.load %arg5[%c0_14, %c0_15] : memref<1x8xf32, #tpu.memory_space<vmem>>, vector<1x8xf32>
    %34 = vector.broadcast %33 : vector<1x8xf32> to vector<512x8xf32>
    %35 = arith.addf %32, %34 : vector<512x8xf32>
    %c0_16 = arith.constant 0 : index
    %c0_17 = arith.constant 0 : index
    %36 = vector.load %arg6[%c0_16, %c0_17] : memref<512x8xf32, #tpu.memory_space<vmem>>, vector<512x8xf32>
    tpu.vector_store %arg6[%c0_16, %c0_17], %35 {strides = array<i32>} : memref<512x8xf32, #tpu.memory_space<vmem>>, vector<512x8xf32>,
    return
  }
  func.func @transform_0(%arg0: i32) -> (i32, i32) {
    %c0_i32 = arith.constant 0 : i32
    %c0_i32_0 = arith.constant 0 : i32
    return %arg0, %c0_i32 : i32, i32
  }
  func.func @transform_1(%arg0: i32) -> (i32, i32) {
    %c0_i32 = arith.constant 0 : i32
    %c0_i32_0 = arith.constant 0 : i32
    %c0_i32_1 = arith.constant 0 : i32
    return %c0_i32, %c0_i32_0 : i32, i32
  }
  func.func @transform_2(%arg0: i32) -> (i32, i32) {
    %c0_i32 = arith.constant 0 : i32
    %c0_i32_0 = arith.constant 0 : i32
    %c0_i32_1 = arith.constant 0 : i32
    return %c0_i32, %c0_i32_0 : i32, i32
  }
  func.func @transform_3(%arg0: i32) -> (i32, i32) {
    %c0_i32 = arith.constant 0 : i32
    %c0_i32_0 = arith.constant 0 : i32
    %c0_i32_1 = arith.constant 0 : i32
    return %c0_i32, %c0_i32_0 : i32, i32
  }
  func.func @transform_4(%arg0: i32) -> (i32, i32) {
    %c0_i32 = arith.constant 0 : i32
    %c0_i32_0 = arith.constant 0 : i32
    %c0_i32_1 = arith.constant 0 : i32
    return %c0_i32, %c0_i32_0 : i32, i32
  }
  func.func @transform_5(%arg0: i32) -> (i32, i32) {
    %c0_i32 = arith.constant 0 : i32
    %c0_i32_0 = arith.constant 0 : i32
    return %arg0, %c0_i32 : i32, i32
  }
}

</mosaic_0001>

<bundles_post_ra>
// kernel: adagnn_v_forward.1
= control target key start
LH: loop header
LB: loop body
LE: loop exit
PB: predicated region body
PF: predicated region fallthrough
CT: control target
= control target key end

     0   :  { %s3164_s18 = smov 0   ;;  %s5603_s0 = inlined_call_operand.vmem [shape: f32[2048,16], index: 0, kind: input, shape index: {}]   ;;  %s5604_s1 = inlined_call_operand.vmem [shape: f32[16,32], index: 1, kind: input, shape index: {}]   ;;  %s5605_s2 = inlined_call_operand.vmem [shape: f32[3,32], index: 2, kind: input, shape index: {}]   ;;  %s5606_s3 = inlined_call_operand.vmem [shape: f32[32,8], index: 3, kind: input, shape index: {}]   ;;  %s5607_s4 = inlined_call_operand.vmem [shape: f32[1,8], index: 4, kind: input, shape index: {}]   ;;  %s5608_s5 = inlined_call_operand.vmem [shape: f32[2048,8], index: 5, kind: output, shape index: {}]  }
   0x1 LB: > { %s2838_s19 = sadd.s32 4294967295, %s3131_s18   ;;  %p2842_p0 = scmp.ge.s32.totalorder %s3131_s18, 1  ;;  %s3131_s18 = sphi %s3164_s18, %s15_s18  }
   0x2   : > { %p188_p1 = scmp.lt.s32.totalorder %s3131_s18, 5 }
   0x4   : > { %p189_p2 = pnand %p2842_p0, %p188_p1 }
   0x6   : > { %192 = sbr.rel (%p189_p2) target bundleno = 1259 (0x4eb), region = 40 }
   0xb   : > { %v294_v0 = vld [vmem:[%s5604_s1 + $0x8] sm:$0xff]  ;;  %v293_v1 = vld [vmem:[%s5604_s1] sm:$0xff]  ;;  %s2843_s24 = sshll.u32 %s2838_s19, 6  ;;  %vm296_vm0 = vcmask 130048   ;;  %vm698_vm1 = vcmask 261120   ;;  %vm2717_vm15 = vcmask 64512  }
   0xc   : > { %503 = vmatpush.msra.mxu0 %v294_v0  ;;  %2977 = vmatpush.msra.mxu3 %v294_v0  ;;  %p217_p3 = scmp.lt.s32.totalorder %s2843_s24, 255  ;;  %v3242_v28 = vld [vmem:[%s5605_s2] sm:$0x7] }
   0xd   : > { %v3246_v29 = vperm.slane %v3242_v28, 0 }
   0xe   : > { %504 = vmatpush.msra.mxu0 %v293_v1  ;;  %2978 = vmatpush.msra.mxu3 %v293_v1  ;;  %s5755_s24 = smov (!%p217_p3, %s2843_s24), 255 }
   0xf   : > { %s2844_s25 = sshll.u32 %s5755_s24, 3 }
  0x10   : > { %s3186_s28 = scalar_lea.vmem %s5603_s0, %s2844_s25  ;;  %s3797_s19 = scalar_lea.vmem %s5608_s5, %s2844_s25 }
  0x11   : > { %v229_v2 = vld [vmem:[%s3186_s28] sm:$0xff]  ;;  %v262_v3 = vld [vmem:[%s3186_s28 + $0x108] sm:$0xff]  ;;  %v263_v5 = vld [vmem:[%s3186_s28 + $0x110] sm:$0xff] }
  0x12   : > { %2847 = vmatmul.msk.f32.vlgmr.msra.gmra.mxu0 %vm296_vm0, %v229_v2  ;;  %2880 = vmatmul.msk.f32.vlgmr.msra.gmra.mxu3 %vm296_vm0, %v262_v3  ;;  %v230_v4 = vld [vmem:[%s3186_s28 + $0x8] sm:$0xff]  ;;  %v231_v6 = vld [vmem:[%s3186_s28 + $0x10] sm:$0xff]  ;;  %v264_v7 = vld [vmem:[%s3186_s28 + $0x118] sm:$0xff] }
  0x13   : > { %v232_v8 = vld [vmem:[%s3186_s28 + $0x18] sm:$0xff]  ;;  %v265_v9 = vld [vmem:[%s3186_s28 + $0x120] sm:$0xff]  ;;  %v266_v11 = vld [vmem:[%s3186_s28 + $0x128] sm:$0xff] }
  0x14   : > { %v233_v10 = vld [vmem:[%s3186_s28 + $0x20] sm:$0xff]  ;;  %v234_v12 = vld [vmem:[%s3186_s28 + $0x28] sm:$0xff]  ;;  %v267_v13 = vld [vmem:[%s3186_s28 + $0x130] sm:$0xff] }
  0x15   : > { %v235_v14 = vld [vmem:[%s3186_s28 + $0x30] sm:$0xff]  ;;  %v268_v15 = vld [vmem:[%s3186_s28 + $0x138] sm:$0xff]  ;;  %v269_v17 = vld [vmem:[%s3186_s28 + $0x140] sm:$0xff] }
  0x16   : > { %v236_v16 = vld [vmem:[%s3186_s28 + $0x38] sm:$0xff]  ;;  %v237_v18 = vld [vmem:[%s3186_s28 + $0x40] sm:$0xff]  ;;  %v238_v19 = vld [vmem:[%s3186_s28 + $0x48] sm:$0xff] }
  0x17   : > { %v239_v20 = vld [vmem:[%s3186_s28 + $0x50] sm:$0xff]  ;;  %v240_v21 = vld [vmem:[%s3186_s28 + $0x58] sm:$0xff]  ;;  %v241_v22 = vld [vmem:[%s3186_s28 + $0x60] sm:$0xff] }
  0x18   : > { %v242_v23 = vld [vmem:[%s3186_s28 + $0x68] sm:$0xff]  ;;  %v243_v25 = vld [vmem:[%s3186_s28 + $0x70] sm:$0xff]  ;;  %v244_v27 = vld [vmem:[%s3186_s28 + $0x78] sm:$0xff] }
  0x19   : > { %v270_v24 = vld [vmem:[%s3186_s28 + $0x148] sm:$0xff]  ;;  %v271_v26 = vld [vmem:[%s3186_s28 + $0x150] sm:$0xff]  ;;  %v245_v31 = vld [vmem:[%s3186_s28 + $0x80] sm:$0xff] }
  0x1a   : > { %2848 = vmatmul.msk.f32.gmra.mxu0 %vm296_vm0, %v230_v4  ;;  %2881 = vmatmul.msk.f32.gmra.mxu3 %vm296_vm0, %v263_v5  ;;  %v272_v36 = vld [vmem:[%s3186_s28 + $0x158] sm:$0xff]  ;;  %v246_v38 = vld [vmem:[%s3186_s28 + $0x88] sm:$0xff]  ;;  %v273_v43 = vld [vmem:[%s3186_s28 + $0x160] sm:$0xff] }
  0x1b   : > { %v247_v45 = vld [vmem:[%s3186_s28 + $0x90] sm:$0xff]  ;;  %v274_v51 = vld [vmem:[%s3186_s28 + $0x168] sm:$0xff]  ;;  %v248_v53 = vld [vmem:[%s3186_s28 + $0x98] sm:$0xff] }
  0x1c   : > { %v249_v61 = vld [vmem:[%s3186_s28 + $0xa0] sm:$0xff]  ;;  %v250_v4 = vld [vmem:[%s3186_s28 + $0xa8] sm:$0xff] }
  0x22   : > { %2849 = vmatmul.msk.f32.gmra.mxu0 %vm296_vm0, %v231_v6  ;;  %2882 = vmatmul.msk.f32.gmra.mxu3 %vm296_vm0, %v264_v7 }
  0x2a   : > { %2850 = vmatmul.msk.f32.gmra.mxu0 %vm296_vm0, %v232_v8  ;;  %2883 = vmatmul.msk.f32.gmra.mxu3 %vm296_vm0, %v265_v9 }
  0x32   : > { %2851 = vmatmul.msk.f32.gmra.mxu0 %vm296_vm0, %v233_v10  ;;  %2884 = vmatmul.msk.f32.gmra.mxu3 %vm296_vm0, %v266_v11  ;;  %v251_v11 = vld [vmem:[%s3186_s28 + $0xb0] sm:$0xff] }
  0x3a   : > { %2852 = vmatmul.msk.f32.gmra.mxu0 %vm296_vm0, %v234_v12  ;;  %2885 = vmatmul.msk.f32.gmra.mxu3 %vm296_vm0, %v267_v13 }
  0x42   : > { %2853 = vmatmul.msk.f32.gmra.mxu0 %vm296_vm0, %v235_v14  ;;  %2886 = vmatmul.msk.f32.gmra.mxu3 %vm296_vm0, %v268_v15 }
  0x4a   : > { %2854 = vmatmul.msk.f32.gmra.mxu0 %vm296_vm0, %v236_v16  ;;  %2887 = vmatmul.msk.f32.gmra.mxu3 %vm296_vm0, %v269_v17 }
  0x52   : > { %2855 = vmatmul.msk.f32.gmra.mxu0 %vm296_vm0, %v237_v18  ;;  %2888 = vmatmul.msk.f32.gmra.mxu3 %vm296_vm0, %v270_v24  ;;  %v252_v18 = vld [vmem:[%s3186_s28 + $0xb8] sm:$0xff] }
  0x5a   : > { %2856 = vmatmul.msk.f32.gmra.mxu0 %vm296_vm0, %v238_v19  ;;  %2889 = vmatmul.msk.f32.gmra.mxu3 %vm296_vm0, %v271_v26 }
  0x62   : > { %2857 = vmatmul.msk.f32.gmra.mxu0 %vm296_vm0, %v239_v20  ;;  %2890 = vmatmul.msk.f32.gmra.mxu3 %vm296_vm0, %v272_v36  ;;  %v255_v36 = vld [vmem:[%s3186_s28 + $0xd0] sm:$0xff] }
  0x6a   : > { %2858 = vmatmul.msk.f32.gmra.mxu0 %vm296_vm0, %v240_v21  ;;  %2891 = vmatmul.msk.f32.gmra.mxu3 %vm296_vm0, %v273_v43  ;;  %v257_v43 = vld [vmem:[%s3186_s28 + $0xe0] sm:$0xff] }
  0x72   : > { %2859 = vmatmul.msk.f32.gmra.mxu0 %vm296_vm0, %v241_v22  ;;  %2892 = vmatmul.msk.f32.gmra.mxu3 %vm296_vm0, %v274_v51 }
  0x7a   : > { %2860 = vmatmul.msk.f32.gmra.mxu0 %vm296_vm0, %v242_v23 }
  0x82   : > { %2861 = vmatmul.msk.f32.gmra.mxu0 %vm296_vm0, %v243_v25  ;;  %v253_v25 = vld [vmem:[%s3186_s28 + $0xc0] sm:$0xff] }
  0x8a   : > { %2862 = vmatmul.msk.f32.gmra.mxu0 %vm296_vm0, %v244_v27 }
  0x8f   : > { %v506_v30 = vpop.f32.mrf.mxu0 }
  0x90   : > { %v3250_v32 = vadd.f32 %v506_v30, %v3246_v29 }
  0x92   : > { %2863 = vmatmul.msk.f32.gmra.mxu0 %vm296_vm0, %v245_v31  ;;  %v699_v33 = vsel %vm698_vm1, %v3250_v32, 0.0 }
  0x93   : > { %700 = vadd.xlane.f32.xlu0 %v699_v33  ;;  %v254_v33 = vld [vmem:[%s3186_s28 + $0xc8] sm:$0xff] }
  0x95   : > { %v605_v34 = vpop.f32.mrf.mxu3 }
  0x96   : > { %v3256_v35 = vadd.f32 %v605_v34, %v3246_v29 }
  0x97   : > { %v509_v37 = vpop.f32.mrf.mxu0 }
  0x98   : > { %v798_v39 = vsel %vm698_vm1, %v3256_v35, 0.0  ;;  %v3265_v40 = vadd.f32 %v509_v37, %v3246_v29 }
  0x99   : > { %799 = vadd.xlane.f32.xlu1 %v798_v39  ;;  %v3133_v39 = vmov 32.0  }
  0x9a   : > { %2864 = vmatmul.msk.f32.gmra.mxu0 %vm296_vm0, %v246_v38  ;;  %v702_v47 = vsel %vm698_vm1, %v3265_v40, 0.0  ;;  %v256_v38 = vld [vmem:[%s3186_s28 + $0xd8] sm:$0xff]  ;;  %2993 = vrcp.f32 %v3133_v39 }
  0x9d   : > { %v608_v41 = vpop.f32.mrf.mxu3 }
  0x9e   : > { %v3268_v42 = vadd.f32 %v608_v41, %v3246_v29 }
  0x9f   : > { %v512_v44 = vpop.f32.mrf.mxu0 }
  0xa0   : > { %v801_v46 = vsel %vm698_vm1, %v3268_v42, 0.0  ;;  %v3279_v48 = vadd.f32 %v512_v44, %v3246_v29  ;;  %v2994_v44 = vpop.eup %2993 }
  0xa1   : > { %802 = vadd.xlane.f32.xlu2 %v801_v46  ;;  %703 = vadd.xlane.f32.xlu1 %v702_v47  ;;  %v892_v46 = vmul.f32 32.0, %v2994_v44  ;;  %vm896_vm2 = vweird.f32 %v2994_v44 }
  0xa2   : > { %2865 = vmatmul.msk.f32.gmra.mxu0 %vm296_vm0, %v247_v45  ;;  %v705_v55 = vsel %vm698_vm1, %v3279_v48, 0.0  ;;  %v275_v45 = vld [vmem:[%s3186_s28 + $0x170] sm:$0xff] }
  0xa3   : > { %2893 = vmatmul.msk.f32.gmra.mxu3 %vm296_vm0, %v275_v45  ;;  %v893_v51 = vsub.f32 1.0, %v892_v46 }
  0xa5   : > { %v611_v49 = vpop.f32.mrf.mxu3 }
  0xa6   : > { %v3282_v50 = vadd.f32 %v611_v49, %v3246_v29  ;;  %v258_v49 = vld [vmem:[%s3186_s28 + $0xe8] sm:$0xff] }
  0xa7   : > { %v515_v52 = vpop.f32.mrf.mxu0 }
  0xa8   : > { %v3288_v54 = vadd.f32 %v515_v52, %v3246_v29  ;;  %v804_v56 = vsel %vm698_vm1, %v3282_v50, 0.0  ;;  %v276_v52 = vld [vmem:[%s3186_s28 + $0x178] sm:$0xff] }
  0xa9   : > { %706 = vadd.xlane.f32.xlu2 %v705_v55  ;;  %805 = vadd.xlane.f32.xlu0 %v804_v56  ;;  %v259_v56 = vld [vmem:[%s3186_s28 + $0xf0] sm:$0xff] }
  0xaa   : > { %2866 = vmatmul.msk.f32.gmra.mxu0 %vm296_vm0, %v248_v53  ;;  %v708_v57 = vsel %vm698_vm1, %v3288_v54, 0.0  ;;  %v894_v53 = vmul.f32 %v2994_v44, %v893_v51 }
  0xab   : > { %709 = vadd.xlane.f32.xlu1 %v708_v57  ;;  %2894 = vmatmul.msk.f32.gmra.mxu3 %vm296_vm0, %v276_v52 }
  0xac   : > { %v895_v57 = vadd.f32 %v2994_v44, %v894_v53 }
  0xad   : > { %v614_v58 = vpop.f32.mrf.mxu3 }
  0xae   : > { %v3298_v59 = vadd.f32 %v614_v58, %v3246_v29  ;;  %v3385_v58 = vsel %vm896_vm2, %v2994_v44, %v895_v57 }
  0xaf   : > { %v518_v60 = vpop.f32.mrf.mxu0 }
  0xb0   : > { %v3302_v62 = vadd.f32 %v518_v60, %v3246_v29  ;;  %v807_v63 = vsel %vm698_vm1, %v3298_v59, 0.0 }
  0xb1   : > { %808 = vadd.xlane.f32.xlu2 %v807_v63 }
  0xb2   : > { %2867 = vmatmul.msk.f32.gmra.mxu0 %vm296_vm0, %v249_v61  ;;  %v711_v0 = vsel %vm698_vm1, %v3302_v62, 0.0 }
  0xb3   : > { %712 = vadd.xlane.f32.xlu0 %v711_v0  ;;  %v260_v0 = vld [vmem:[%s3186_s28 + $0xf8] sm:$0xff] }
  0xb5   : > { %v617_v1 = vpop.f32.mrf.mxu3 }
  0xb6   : > { %v3310_v2 = vadd.f32 %v617_v1, %v3246_v29 }
  0xb7   : > { %v521_v3 = vpop.f32.mrf.mxu0 }
  0xb8   : > { %v3314_v5 = vadd.f32 %v521_v3, %v3246_v29  ;;  %v810_v6 = vsel %vm698_vm1, %v3310_v2, 0.0  ;;  %v277_v3 = vld [vmem:[%s3186_s28 + $0x180] sm:$0xff] }
  0xb9   : > { %811 = vadd.xlane.f32.xlu1 %v810_v6  ;;  %2895 = vmatmul.msk.f32.gmra.mxu3 %vm296_vm0, %v277_v3 }
  0xba   : > { %2868 = vmatmul.msk.f32.gmra.mxu0 %vm296_vm0, %v250_v4  ;;  %v714_v7 = vsel %vm698_vm1, %v3314_v5, 0.0 }
  0xbb   : > { %715 = vadd.xlane.f32.xlu2 %v714_v7 }
  0xbd   : > { %v620_v8 = vpop.f32.mrf.mxu3 }
  0xbe   : > { %v3322_v9 = vadd.f32 %v620_v8, %v3246_v29 }
  0xbf   : > { %v524_v10 = vpop.f32.mrf.mxu0 }
  0xc0   : > { %v3326_v12 = vadd.f32 %v524_v10, %v3246_v29  ;;  %v813_v13 = vsel %vm698_vm1, %v3322_v9, 0.0 }
  0xc1   : > { %814 = vadd.xlane.f32.xlu1 %v813_v13 }
  0xc2   : > { %2869 = vmatmul.msk.f32.gmra.mxu0 %vm296_vm0, %v251_v11  ;;  %v717_v14 = vsel %vm698_vm1, %v3326_v12, 0.0 }
  0xc3   : > { %718 = vadd.xlane.f32.xlu0 %v717_v14  ;;  %v278_v14 = vld [vmem:[%s3186_s28 + $0x188] sm:$0xff] }
  0xc4   : > { %2896 = vmatmul.msk.f32.gmra.mxu3 %vm296_vm0, %v278_v14 }
  0xc5   : > { %v623_v15 = vpop.f32.mrf.mxu3 }
  0xc6   : > { %v3334_v16 = vadd.f32 %v623_v15, %v3246_v29 }
  0xc7   : > { %v527_v17 = vpop.f32.mrf.mxu0 }
  0xc8   : > { %v3338_v19 = vadd.f32 %v527_v17, %v3246_v29  ;;  %v816_v20 = vsel %vm698_vm1, %v3334_v16, 0.0 }
  0xc9   : > { %817 = vadd.xlane.f32.xlu2 %v816_v20 }
  0xca   : > { %2870 = vmatmul.msk.f32.gmra.mxu0 %vm296_vm0, %v252_v18  ;;  %v720_v21 = vsel %vm698_vm1, %v3338_v19, 0.0 }
  0xcb   : > { %721 = vadd.xlane.f32.xlu1 %v720_v21 }
  0xcd   : > { %v626_v22 = vpop.f32.mrf.mxu3 }
  0xce   : > { %v3346_v23 = vadd.f32 %v626_v22, %v3246_v29 }
  0xcf   : > { %v530_v24 = vpop.f32.mrf.mxu0 }
  0xd0   : > { %v3350_v26 = vadd.f32 %v530_v24, %v3246_v29  ;;  %v819_v27 = vsel %vm698_vm1, %v3346_v23, 0.0 }
  0xd1   : > { %820 = vadd.xlane.f32.xlu0 %v819_v27 }
  0xd2   : > { %2871 = vmatmul.msk.f32.gmra.mxu0 %vm296_vm0, %v253_v25  ;;  %v723_v30 = vsel %vm698_vm1, %v3350_v26, 0.0 }
  0xd3   : > { %724 = vadd.xlane.f32.xlu2 %v723_v30 }
  0xd5   : > { %v629_v30 = vpop.f32.mrf.mxu3 }
  0xd6   : > { %v3449_v57 = vadd.f32 %v629_v30, %v3246_v29 }
  0xd7   : > { %v3357_v31 = vpop.f32.mrf.mxu0 }
  0xda   : > { %2872 = vmatmul.msk.f32.gmra.mxu0 %vm296_vm0, %v254_v33  ;;  %v279_v33 = vld [vmem:[%s3186_s28 + $0x190] sm:$0xff] }
  0xdb   : > { %2897 = vmatmul.msk.f32.gmra.mxu3 %vm296_vm0, %v279_v33 }
  0xdd   : > { %v632_v53 = vpop.f32.mrf.mxu3 }
  0xdf   : > { %v3361_v34 = vpop.f32.mrf.mxu0 }
  0xe2   : > { %2873 = vmatmul.msk.f32.gmra.mxu0 %vm296_vm0, %v255_v36 }
  0xe7   : > { %v3365_v37 = vpop.f32.mrf.mxu0 }
  0xe8   : > { %v3490_v33 = vadd.f32 %v3365_v37, %v3246_v29 }
  0xea   : > { %2874 = vmatmul.msk.f32.gmra.mxu0 %vm296_vm0, %v256_v38 }
  0xef   : > { %v3369_v41 = vpop.f32.mrf.mxu0 }
  0xf2   : > { %2875 = vmatmul.msk.f32.gmra.mxu0 %vm296_vm0, %v257_v43 }
  0xf7   : > { %v3375_v47 = vpop.f32.mrf.mxu0 }
  0xfa   : > { %2876 = vmatmul.msk.f32.gmra.mxu0 %vm296_vm0, %v258_v49 }
  0xff   : > { %v3381_v55 = vpop.f32.mrf.mxu0 }
 0x102   : > { %2877 = vmatmul.msk.f32.gmra.mxu0 %vm296_vm0, %v259_v56 }
 0x106   : > { %v701_v60 = vpop.xlane.xlu0 %700 }
 0x107   : > { %v898_v61 = vmul.f32 %v3385_v58, %v701_v60  ;;  %v3388_v63 = vpop.f32.mrf.mxu0 }
 0x109   : > { %v3392_v1 = vsub.f32 %v3250_v32, %v898_v61  ;;  %v261_v32 = vld [vmem:[%s3186_s28 + $0x100] sm:$0xff] }
 0x10a   : > { %2878 = vmatmul.msk.f32.gmra.mxu0 %vm296_vm0, %v260_v0  ;;  %v3456_v0 = vadd.f32 %v632_v53, %v3246_v29 }
 0x10b   : > { %v1026_v4 = vmul.f32 %v3392_v1, %v3392_v1 }
 0x10c   : > { %v800_v6 = vpop.xlane.xlu1 %799 }
 0x10d   : > { %v931_v7 = vmul.f32 %v3385_v58, %v800_v6  ;;  %v1090_v8 = vsel %vm698_vm1, %v1026_v4, 0.0  ;;  %v822_v4 = vsel %vm698_vm1, %v3449_v57, 0.0  ;;  %v825_v6 = vsel %vm698_vm1, %v3456_v0, 0.0 }
 0x10e   : > { %1091 = vadd.xlane.f32.xlu2 %v1090_v8 }
 0x10f   : > { %v3402_v10 = vsub.f32 %v3256_v35, %v931_v7  ;;  %v3404_v11 = vpop.f32.mrf.mxu0 }
 0x111   : > { %v1059_v13 = vmul.f32 %v3402_v10, %v3402_v10 }
 0x112   : > { %2879 = vmatmul.msk.f32.gmra.mxu0 %vm296_vm0, %v261_v32 }
 0x113   : > { %v1189_v15 = vsel %vm698_vm1, %v1059_v13, 0.0 }
 0x114   : > { %v803_v17 = vpop.xlane.xlu2 %802  ;;  %1190 = vadd.xlane.f32.xlu1 %v1189_v15  ;;  %v704_v18 = vpop.xlane.xlu1 %703 }
 0x115   : > { %v932_v35 = vmul.f32 %v3385_v58, %v803_v17  ;;  %v899_v20 = vmul.f32 %v3385_v58, %v704_v18  ;;  %v3475_v15 = vpop.f32.mrf.mxu3 }
 0x117   : > { %v3416_v21 = vsub.f32 %v3268_v42, %v932_v35  ;;  %v3419_v22 = vsub.f32 %v3265_v40, %v899_v20  ;;  %v3421_v24 = vpop.f32.mrf.mxu0 }
 0x119   : > { %v1027_v25 = vmul.f32 %v3419_v22, %v3419_v22  ;;  %v1060_v27 = vmul.f32 %v3416_v21, %v3416_v21 }
 0x11b   : > { %v1093_v36 = vsel %vm698_vm1, %v1027_v25, 0.0  ;;  %v1192_v42 = vsel %vm698_vm1, %v1060_v27, 0.0  ;;  %v3483_v27 = vadd.f32 %v3361_v34, %v3246_v29 }
 0x11c   : > { %v707_v38 = vpop.xlane.xlu2 %706  ;;  %1094 = vadd.xlane.f32.xlu0 %v1093_v36  ;;  %1193 = vadd.xlane.f32.xlu2 %v1192_v42  ;;  %v3446_v56 = vpop.xlane.xlu0 %805 }
 0x11d   : > { %v900_v40 = vmul.f32 %v3385_v58, %v707_v38  ;;  %v638_v42 = vpop.f32.mrf.mxu3 }
 0x11e   : > { %v710_v39 = vpop.xlane.xlu1 %709 }
 0x11f   : > { %v3433_v43 = vsub.f32 %v3279_v48, %v900_v40  ;;  %v901_v44 = vmul.f32 %v3385_v58, %v710_v39  ;;  %v3436_v45 = vpop.f32.mrf.mxu0  ;;  %v729_v40 = vsel %vm698_vm1, %v3483_v27, 0.0  ;;  %v732_v39 = vsel %vm698_vm1, %v3490_v33, 0.0 }
 0x121   : > { %v3439_v46 = vsub.f32 %v3288_v54, %v901_v44  ;;  %v1028_v49 = vmul.f32 %v3433_v43, %v3433_v43 }
 0x123   : > { %v1096_v51 = vsel %vm698_vm1, %v1028_v49, 0.0  ;;  %v1029_v52 = vmul.f32 %v3439_v46, %v3439_v46 }
 0x124   : > { %1097 = vadd.xlane.f32.xlu1 %v1096_v51  ;;  %v809_v48 = vpop.xlane.xlu2 %808 }
 0x125   : > { %v934_v60 = vmul.f32 %v3385_v58, %v809_v48  ;;  %v1099_v54 = vsel %vm698_vm1, %v1029_v52, 0.0  ;;  %v641_v51 = vpop.f32.mrf.mxu3  ;;  %v3512_v48 = vadd.f32 %v638_v42, %v3246_v29 }
 0x126   : > { %1100 = vadd.xlane.f32.xlu2 %v1099_v54  ;;  %v3468_v13 = vpop.xlane.xlu0 %712 }
 0x127   : > { %v3453_v61 = vpop.f32.mrf.mxu0  ;;  %v3459_v3 = vsub.f32 %v3298_v59, %v934_v60 }
 0x129   : > { %5633 = vst [vmem:[#allocation2_spill] sm:$0xff] %v3459_v3  ;;  %v1062_v32 = vmul.f32 %v3459_v3, %v3459_v3 }
 0x12b   : > { %v1198_v17 = vsel %vm698_vm1, %v1062_v32, 0.0 }
 0x12c   : > { %823 = vadd.xlane.f32.xlu1 %v822_v4  ;;  %v812_v7 = vpop.xlane.xlu1 %811  ;;  %v3518_v4 = vadd.f32 %v641_v51, %v3246_v29 }
 0x12d   : > { %v935_v8 = vmul.f32 %v3385_v58, %v812_v7 }
 0x12e   : > { %826 = vadd.xlane.f32.xlu2 %v825_v6  ;;  %v716_v20 = vpop.xlane.xlu2 %715  ;;  %v834_v32 = vsel %vm698_vm1, %v3518_v4, 0.0 }
 0x12f   : > { %v3471_v14 = vsub.f32 %v3310_v2, %v935_v8  ;;  %v3473_v59 = vpop.f32.mrf.mxu0  ;;  %v903_v2 = vmul.f32 %v3385_v58, %v716_v20  ;;  %v831_v8 = vsel %vm698_vm1, %v3512_v48, 0.0 }
 0x131   : > { %5634 = vst [vmem:[#allocation3_spill] sm:$0xff] %v3471_v14  ;;  %v1063_v18 = vmul.f32 %v3471_v14, %v3471_v14  ;;  %v3494_v38 = vsub.f32 %v3314_v5, %v903_v2 }
 0x133   : > { %v1201_v35 = vsel %vm698_vm1, %v1063_v18, 0.0  ;;  %v1031_v37 = vmul.f32 %v3494_v38, %v3494_v38 }
 0x134   : > { %1199 = vadd.xlane.f32.xlu1 %v1198_v17 }
 0x135   : > { %v1105_v49 = vsel %vm698_vm1, %v1031_v37, 0.0 }
 0x136   : > { %1202 = vadd.xlane.f32.xlu2 %v1201_v35  ;;  %v719_v25 = vpop.xlane.xlu0 %718 }
 0x137   : > { %v3486_v30 = vpop.f32.mrf.mxu0  ;;  %v904_v36 = vmul.f32 %v3385_v58, %v719_v25 }
 0x139   : > { %v3499_v34 = vsub.f32 %v3326_v12, %v904_v36 }
 0x13b   : > { %v1032_v5 = vmul.f32 %v3499_v34, %v3499_v34 }
 0x13c   : > { %730 = vadd.xlane.f32.xlu1 %v729_v40  ;;  %v818_v52 = vpop.xlane.xlu2 %817  ;;  %v3548_v40 = vadd.f32 %v3381_v55, %v3246_v29 }
 0x13d   : > { %v937_v12 = vmul.f32 %v3385_v58, %v818_v52  ;;  %v1108_v60 = vsel %vm698_vm1, %v1032_v5, 0.0  ;;  %v3566_v52 = vpop.f32.mrf.mxu3 }
 0x13e   : > { %733 = vadd.xlane.f32.xlu2 %v732_v39 }
 0x13f   : > { %v3503_v44 = vpop.f32.mrf.mxu0  ;;  %v3522_v7 = vsub.f32 %v3334_v16, %v937_v12  ;;  %v2311_v12 = vld [vmem:[%s5606_s3 + $0x18] sm:$0xff] }
 0x140   : > { %2520 = vmatpush.msra.mxu1 %v2311_v12  ;;  %2979 = vmatpush.msra.mxu2 %v2311_v12 }
 0x141   : > { %5636 = vst [vmem:[#allocation5_spill] sm:$0xff] %v3522_v7  ;;  %v1065_v18 = vmul.f32 %v3522_v7, %v3522_v7 }
 0x143   : > { %v1207_v20 = vsel %vm698_vm1, %v1065_v18, 0.0 }
 0x144   : > { %1106 = vadd.xlane.f32.xlu1 %v1105_v49  ;;  %v821_v53 = vpop.xlane.xlu0 %820 }
 0x145   : > { %v938_v6 = vmul.f32 %v3385_v58, %v821_v53  ;;  %v647_v18 = vpop.f32.mrf.mxu3 }
 0x146   : > { %1109 = vadd.xlane.f32.xlu2 %v1108_v60  ;;  %v725_v2 = vpop.xlane.xlu2 %724  ;;  %v2310_v60 = vld [vmem:[%s5606_s3 + $0x10] sm:$0xff] }
 0x147   : > { %v3515_v54 = vpop.f32.mrf.mxu0  ;;  %v3529_v17 = vsub.f32 %v3346_v23, %v938_v6  ;;  %v3541_v23 = vadd.f32 %v3375_v47, %v3246_v29  ;;  %v906_v36 = vmul.f32 %v3385_v58, %v725_v2  ;;  %v741_v47 = vsel %vm698_vm1, %v3548_v40, 0.0  ;;  %2521 = vmatpush.msra.mxu1 %v2310_v60  ;;  %v280_v6 = vld [vmem:[%s3186_s28 + $0x198] sm:$0xff]  ;;  %2980 = vmatpush.msra.mxu2 %v2310_v60 }
 0x148   : > { %5635 = vst [vmem:[#allocation4_spill] sm:$0xff] %v3515_v54  ;;  %2898 = vmatmul.msk.f32.gmra.mxu3 %vm296_vm0, %v280_v6  ;;  %v282_v6 = vld [vmem:[%s3186_s28 + $0x1a8] sm:$0xff] }
 0x149   : > { %5637 = vst [vmem:[#allocation6_spill] sm:$0xff] %v3529_v17  ;;  %v1066_v16 = vmul.f32 %v3529_v17, %v3529_v17  ;;  %v3551_v39 = vsub.f32 %v3350_v26, %v906_v36  ;;  %v738_v37 = vsel %vm698_vm1, %v3541_v23, 0.0 }
 0x14b   : > { %v1210_v25 = vsel %vm698_vm1, %v1066_v16, 0.0  ;;  %5639 = vst [vmem:[#allocation8_spill] sm:$0xff] %v3551_v39  ;;  %v1034_v49 = vmul.f32 %v3551_v39, %v3551_v39 }
 0x14c   : > { %832 = vadd.xlane.f32.xlu1 %v831_v8  ;;  %v3577_v8 = vpop.xlane.xlu1 %814 }
 0x14d   : > { %v1114_v55 = vsel %vm698_vm1, %v1034_v49, 0.0  ;;  %v281_v49 = vld [vmem:[%s3186_s28 + $0x1a0] sm:$0xff] }
 0x14e   : > { %835 = vadd.xlane.f32.xlu2 %v834_v32  ;;  %v2309_v32 = vld [vmem:[%s5606_s3 + $0x8] sm:$0xff] }
 0x14f   : > { %v3533_v35 = vpop.f32.mrf.mxu0  ;;  %2522 = vmatpush.msra.mxu1 %v2309_v32  ;;  %2981 = vmatpush.msra.mxu2 %v2309_v32 }
 0x150   : > { %2899 = vmatmul.msk.f32.gmra.mxu3 %vm296_vm0, %v281_v49 }
 0x154   : > { %1208 = vadd.xlane.f32.xlu1 %v1207_v20  ;;  %v3586_v20 = vadd.f32 %v647_v18, %v3246_v29  ;;  %v933_v18 = vmul.f32 %v3385_v58, %v3446_v56 }
 0x156   : > { %1211 = vadd.xlane.f32.xlu2 %v1210_v25  ;;  %v2308_v25 = vld [vmem:[%s5606_s3] sm:$0xff]  ;;  %v840_v36 = vsel %vm698_vm1, %v3586_v20, 0.0 }
 0x157   : > { %v3544_v42 = vpop.f32.mrf.mxu0  ;;  %2523 = vmatpush.msra.mxu1 %v2308_v25  ;;  %2982 = vmatpush.msra.mxu2 %v2308_v25 }
 0x158   : > { %5638 = vst [vmem:[#allocation7_spill] sm:$0xff] %v3544_v42  ;;  %2900 = vmatmul.msk.f32.gmra.mxu3 %vm296_vm0, %v282_v6  ;;  %v3613_v42 = vsub.f32 %v3282_v50, %v933_v18 }
 0x15c   : > { %739 = vadd.xlane.f32.xlu1 %v738_v37 }
 0x15e   : > { %742 = vadd.xlane.f32.xlu2 %v741_v47 }
 0x15f   : > { %v3557_v5 = vpop.f32.mrf.mxu0 }
 0x160   : > { %5640 = vst [vmem:[#allocation9_spill] sm:$0xff] %v3557_v5 }
 0x164   : > { %1115 = vadd.xlane.f32.xlu1 %v1114_v55  ;;  %v3596_v55 = vpop.xlane.xlu1 %721 }
 0x167   : > { %v3562_v51 = vpop.f32.mrf.mxu0 }
 0x16c   : > { %841 = vadd.xlane.f32.xlu1 %v840_v36 }
 0x16f   : > { %v3564_v26 = vpop.f32.mrf.mxu0 }
 0x170   : > { %5641 = vst [vmem:[#allocation10_spill] sm:$0xff] %v3564_v26 }
 0x177   : > { %v3568_v53 = vpop.f32.mrf.mxu0 }
 0x178   : > { %5642 = vst [vmem:[#allocation11_spill] sm:$0xff] %v3568_v53  ;;  %v3618_v53 = vperm.slane %v3242_v28, 1 }
 0x17f   : > { %v3583_v16 = vpop.f32.mrf.mxu0 }
 0x180   : > { %5643 = vst [vmem:[#allocation12_spill] sm:$0xff] %v3583_v16 }
 0x181   : > { %v1092_v2 = vpop.xlane.xlu2 %1091 }
 0x182   : > { %v1282_v37 = vmul.f32 %v1092_v2, %v3385_v58 }
 0x184   : > { %v1346_v47 = vadd.f32 1e-05, %v1282_v37 }
 0x186   : > { %2995 = vrsqrt.f32 %v1346_v47  ;;  %vm1416_vm4 = vweird.f32 %v1346_v47 }
 0x187   : > { %v3598_v12 = vpop.f32.mrf.mxu0  ;;  %v3604_v2 = vpop.xlane.xlu1 %1190 }
 0x188   : > { %5644 = vst [vmem:[#allocation13_spill] sm:$0xff] %v3598_v12 }
 0x18c   : > { %v2996_v60 = vpop.eup %2995 }
 0x18d   : > { %v1411_v32 = vmul.f32 %v2996_v60, %v1346_v47  ;;  %vm1417_vm3 = vweird.f32 %v2996_v60 }
 0x18e   : > { %vm1418_vm5 = vmor %vm1416_vm4, %vm1417_vm3 }
 0x18f   : > { %v1412_v25 = vmul.f32 %v2996_v60, %v1411_v32  ;;  %v602_v36 = vpop.f32.mrf.mxu0  ;;  %v1095_v49 = vpop.xlane.xlu0 %1094 }
 0x190   : > { %v3607_v37 = vadd.f32 %v602_v36, %v3246_v29  ;;  %v3609_v26 = vpop.xlane.xlu2 %1193  ;;  %v1283_v12 = vmul.f32 %v1095_v49, %v3385_v58 }
 0x191   : > { %v1413_v16 = vmul.f32 0.5, %v1412_v25  ;;  %v1061_v25 = vmul.f32 %v3613_v42, %v3613_v42 }
 0x192   : > { %v795_v6 = vsel %vm698_vm1, %v3607_v37, 0.0  ;;  %v1347_v32 = vadd.f32 1e-05, %v1283_v12  ;;  %v3625_v12 = vperm.slane %v3242_v28, 2  ;;  %v902_v28 = vmul.f32 %v3385_v58, %v3468_v13  ;;  %v3644_v13 = vpop.f32.mrf.mxu3 }
 0x193   : > { %v1414_v56 = vsub.f32 1.5, %v1413_v16  ;;  %796 = vadd.xlane.f32.xlu0 %v795_v6  ;;  %v1195_v47 = vsel %vm698_vm1, %v1061_v25, 0.0 }
 0x194   : > { %2997 = vrsqrt.f32 %v1347_v32  ;;  %vm1426_vm7 = vweird.f32 %v1347_v32 }
 0x195   : > { %v1415_v36 = vmul.f32 %v2996_v60, %v1414_v56 }
 0x197   : > { %v1419_v49 = vsel %vm1418_vm5, %v2996_v60, %v1415_v36  ;;  %v1098_v50 = vpop.xlane.xlu1 %1097  ;;  %v3632_v60 = vadd.f32 %v3357_v31, %v3246_v29  ;;  %v3641_v31 = vsub.f32 %v3302_v62, %v902_v28 }
 0x198   : > { %v1284_v18 = vmul.f32 %v1098_v50, %v3385_v58  ;;  %v2051_v5 = vmul.f32 %v3618_v53, %v1419_v49 }
 0x199   : > { %v1101_v16 = vpop.xlane.xlu2 %1100  ;;  %v1030_v28 = vmul.f32 %v3641_v31, %v3641_v31 }
 0x19a   : > { %v1348_v6 = vadd.f32 1e-05, %v1284_v18  ;;  %v1285_v17 = vmul.f32 %v1101_v16, %v3385_v58  ;;  %v2115_v56 = vmul.f32 %v2051_v5, %v3392_v1  ;;  %v2998_v7 = vpop.eup %2997  ;;  %v726_v5 = vsel %vm698_vm1, %v3632_v60, 0.0 }
 0x19b   : > { %1196 = vadd.xlane.f32.xlu0 %v1195_v47  ;;  %v1421_v54 = vmul.f32 %v2998_v7, %v1347_v32  ;;  %vm1427_vm6 = vweird.f32 %v2998_v7 }
 0x19c   : > { %2999 = vrsqrt.f32 %v1348_v6  ;;  %v1349_v36 = vadd.f32 1e-05, %v1285_v17  ;;  %v2180_v49 = vadd.f32 %v3625_v12, %v2115_v56  ;;  %vm1428_vm8 = vmor %vm1426_vm7, %vm1427_vm6  ;;  %vm1436_vm10 = vweird.f32 %v1348_v6 }
 0x19d   : > { %v1422_v50 = vmul.f32 %v2998_v7, %v1421_v54 }
 0x19e   : > { %3001 = vrsqrt.f32 %v1349_v36  ;;  %v2244_v18 = vmax.f32 %v2180_v49, 0.0  ;;  %vm1446_vm13 = vweird.f32 %v1349_v36 }
 0x19f   : > { %v1423_v25 = vmul.f32 0.5, %v1422_v50 }
 0x1a0   : > { %2911 = vmatmul.msk.f32.vlgmr.msra.gmra.mxu1 %vm698_vm1, %v2244_v18 }
 0x1a1   : > { %v827_v1 = vpop.xlane.xlu2 %826  ;;  %v1424_v17 = vsub.f32 1.5, %v1423_v25 }
 0x1a2   : > { %v3000_v16 = vpop.eup %2999  ;;  %v940_v47 = vmul.f32 %v3385_v58, %v827_v1 }
 0x1a3   : > { %v1431_v56 = vmul.f32 %v3000_v16, %v1348_v6  ;;  %727 = vadd.xlane.f32.xlu0 %v726_v5  ;;  %v1425_v54 = vmul.f32 %v2998_v7, %v1424_v17  ;;  %vm1437_vm9 = vweird.f32 %v3000_v16  ;;  %v936_v6 = vmul.f32 %v3385_v58, %v3577_v8 }
 0x1a4   : > { %v3647_v49 = vsub.f32 %v3456_v0, %v940_v47  ;;  %v3002_v50 = vpop.eup %3001  ;;  %vm1438_vm11 = vmor %vm1436_vm10, %vm1437_vm9 }
 0x1a5   : > { %v1432_v18 = vmul.f32 %v3000_v16, %v1431_v56  ;;  %v1429_v14 = vsel %vm1428_vm8, %v2998_v7, %v1425_v54  ;;  %v1441_v3 = vmul.f32 %v3002_v50, %v1349_v36  ;;  %v1102_v56 = vsel %vm698_vm1, %v1030_v28, 0.0 }
 0x1a6   : > { %5645 = vst [vmem:[#allocation14_spill] sm:$0xff] %v3647_v49  ;;  %v1068_v62 = vmul.f32 %v3647_v49, %v3647_v49  ;;  %v2052_v1 = vmul.f32 %v3618_v53, %v1429_v14  ;;  %v3666_v14 = vadd.f32 %v3475_v15, %v3246_v29  ;;  %vm1447_vm12 = vweird.f32 %v3002_v50 }
 0x1a7   : > { %v1433_v25 = vmul.f32 0.5, %v1432_v18  ;;  %v1442_v5 = vmul.f32 %v3002_v50, %v1441_v3  ;;  %v3662_v3 = vadd.f32 %v3404_v11, %v3246_v29  ;;  %vm1448_vm14 = vmor %vm1446_vm13, %vm1447_vm12  ;;  %v3681_v36 = vsub.f32 %v3322_v9, %v936_v6 }
 0x1a8   : > { %v1216_v32 = vsel %vm698_vm1, %v1068_v62, 0.0  ;;  %v2116_v7 = vmul.f32 %v2052_v1, %v3419_v22  ;;  %v3668_v1 = vpop.f32.mrf.mxu3 }
 0x1a9   : > { %v1434_v17 = vsub.f32 1.5, %v1433_v25  ;;  %1217 = vadd.xlane.f32.xlu1 %v1216_v32  ;;  %v3655_v0 = vpop.xlane.xlu2 %1202  ;;  %v1443_v47 = vmul.f32 0.5, %v1442_v5  ;;  %v747_v15 = vsel %vm698_vm1, %v3662_v3, 0.0  ;;  %5646 = vst [vmem:[#allocation15_spill] sm:$0xff] %v3681_v36 }
 0x1aa   : > { %v2181_v18 = vadd.f32 %v3625_v12, %v2116_v7 }
 0x1ab   : > { %v1435_v54 = vmul.f32 %v3000_v16, %v1434_v17  ;;  %1103 = vadd.xlane.f32.xlu0 %v1102_v56  ;;  %v1444_v62 = vsub.f32 1.5, %v1443_v47 }
 0x1ac   : > { %v2245_v25 = vmax.f32 %v2181_v18, 0.0  ;;  %v1064_v18 = vmul.f32 %v3681_v36, %v3681_v36 }
 0x1ad   : > { %v1439_v22 = vsel %vm1438_vm11, %v3000_v16, %v1435_v54  ;;  %v1445_v28 = vmul.f32 %v3002_v50, %v1444_v62  ;;  %v828_v16 = vsel %vm698_vm1, %v3666_v14, 0.0 }
 0x1ae   : > { %v2053_v5 = vmul.f32 %v3618_v53, %v1439_v22  ;;  %2912 = vmatmul.msk.f32.gmra.mxu1 %vm698_vm1, %v2245_v25 }
 0x1af   : > { %v1449_v11 = vsel %vm1448_vm14, %v3002_v50, %v1445_v28 }
 0x1b0   : > { %v2117_v32 = vmul.f32 %v2053_v5, %v3433_v43  ;;  %v2054_v8 = vmul.f32 %v3618_v53, %v1449_v11  ;;  %v656_v9 = vpop.f32.mrf.mxu3 }
 0x1b1   : > { %748 = vadd.xlane.f32.xlu1 %v747_v15  ;;  %v734_v17 = vpop.xlane.xlu2 %733 }
 0x1b2   : > { %v909_v7 = vmul.f32 %v3385_v58, %v734_v17  ;;  %v2182_v47 = vadd.f32 %v3625_v12, %v2117_v32  ;;  %v2118_v54 = vmul.f32 %v2054_v8, %v3439_v46  ;;  %v3698_v46 = vadd.f32 %v656_v9, %v3246_v29  ;;  %v824_v9 = vpop.xlane.xlu1 %823 }
 0x1b3   : > { %829 = vadd.xlane.f32.xlu0 %v828_v16  ;;  %v3714_v8 = vadd.f32 %v3453_v61, %v3246_v29 }
 0x1b4   : > { %v3686_v50 = vsub.f32 %v3490_v33, %v909_v7  ;;  %v2246_v56 = vmax.f32 %v2182_v47, 0.0  ;;  %v2183_v25 = vadd.f32 %v3625_v12, %v2118_v54  ;;  %v1204_v33 = vsel %vm698_vm1, %v1064_v18, 0.0  ;;  %v283_v7 = vld [vmem:[%s3186_s28 + $0x1b0] sm:$0xff]  ;;  %v284_v54 = vld [vmem:[%s3186_s28 + $0x1b8] sm:$0xff] }
 0x1b5   : > { %v849_v28 = vsel %vm698_vm1, %v3698_v46, 0.0  ;;  %2901 = vmatmul.msk.f32.gmra.mxu3 %vm296_vm0, %v283_v7 }
 0x1b6   : > { %5647 = vst [vmem:[#allocation16_spill] sm:$0xff] %v3686_v50  ;;  %v1037_v43 = vmul.f32 %v3686_v50, %v3686_v50  ;;  %2913 = vmatmul.msk.f32.gmra.mxu1 %vm698_vm1, %v2246_v56  ;;  %v2247_v6 = vmax.f32 %v2183_v25, 0.0  ;;  %v286_v25 = vld [vmem:[%s3186_s28 + $0x1c8] sm:$0xff] }
 0x1b8   : > { %v1123_v62 = vsel %vm698_vm1, %v1037_v43, 0.0 }
 0x1b9   : > { %1124 = vadd.xlane.f32.xlu1 %v1123_v62  ;;  %v1110_v22 = vpop.xlane.xlu2 %1109  ;;  %v285_v62 = vld [vmem:[%s3186_s28 + $0x1c0] sm:$0xff] }
 0x1bb   : > { %1205 = vadd.xlane.f32.xlu0 %v1204_v33  ;;  %v3732_v33 = vpop.xlane.xlu1 %1199 }
 0x1bd   : > { %2902 = vmatmul.msk.f32.gmra.mxu3 %vm296_vm0, %v284_v54 }
 0x1be   : > { %2914 = vmatmul.msk.f32.gmra.mxu1 %vm698_vm1, %v2247_v6  ;;  %v287_v6 = vld [vmem:[%s3186_s28 + $0x1d0] sm:$0xff] }
 0x1c1   : > { %850 = vadd.xlane.f32.xlu1 %v849_v28  ;;  %v836_v5 = vpop.xlane.xlu2 %835 }
 0x1c2   : > { %v943_v11 = vmul.f32 %v3385_v58, %v836_v5 }
 0x1c3   : > { %v3739_v28 = vpop.xlane.xlu1 %730 }
 0x1c4   : > { %v3705_v15 = vsub.f32 %v3518_v4, %v943_v11  ;;  %v756_v4 = vsel %vm698_vm1, %v3714_v8, 0.0 }
 0x1c5   : > { %2903 = vmatmul.msk.f32.gmra.mxu3 %vm296_vm0, %v285_v62 }
 0x1c6   : > { %5648 = vst [vmem:[#allocation17_spill] sm:$0xff] %v3705_v15  ;;  %v1071_v16 = vmul.f32 %v3705_v15, %v3705_v15 }
 0x1c8   : > { %v1225_v32 = vsel %vm698_vm1, %v1071_v16, 0.0 }
 0x1c9   : > { %1226 = vadd.xlane.f32.xlu1 %v1225_v32  ;;  %v3710_v17 = vpop.xlane.xlu2 %1211 }
 0x1cd   : > { %2904 = vmatmul.msk.f32.gmra.mxu3 %vm296_vm0, %v286_v25 }
 0x1d1   : > { %757 = vadd.xlane.f32.xlu1 %v756_v4  ;;  %v743_v47 = vpop.xlane.xlu2 %742  ;;  %v1107_v4 = vpop.xlane.xlu1 %1106 }
 0x1d2   : > { %v912_v56 = vmul.f32 %v3385_v58, %v743_v47  ;;  %v1287_v54 = vmul.f32 %v1107_v4, %v3385_v58 }
 0x1d4   : > { %v3723_v43 = vsub.f32 %v3548_v40, %v912_v56  ;;  %v3736_v40 = vpop.f32.mrf.mxu3  ;;  %v3762_v25 = vadd.f32 1e-05, %v1287_v54 }
 0x1d5   : > { %2905 = vmatmul.msk.f32.gmra.mxu3 %vm296_vm0, %v287_v6 }
 0x1d6   : > { %5649 = vst [vmem:[#allocation18_spill] sm:$0xff] %v3723_v43  ;;  %v1040_v61 = vmul.f32 %v3723_v43, %v3723_v43  ;;  %3003 = vrsqrt.f32 %v3762_v25  ;;  %vm1466_vm4 = vweird.f32 %v3762_v25 }
 0x1d8   : > { %v1132_v18 = vsel %vm698_vm1, %v1040_v61, 0.0 }
 0x1d9   : > { %1133 = vadd.xlane.f32.xlu1 %v1132_v18  ;;  %v3755_v18 = vadd.f32 %v3369_v41, %v3246_v29  ;;  %v3828_v49 = vpop.xlane.xlu1 %832 }
 0x1db   : > { %v735_v41 = vsel %vm698_vm1, %v3755_v18, 0.0 }
 0x1dc   : > { %v3742_v16 = vpop.f32.mrf.mxu3 }
 0x1e4   : > { %v665_v61 = vpop.f32.mrf.mxu3 }
 0x1e5   : > { %v3760_v62 = vadd.f32 %v665_v61, %v3246_v29 }
 0x1e7   : > { %v858_v6 = vsel %vm698_vm1, %v3760_v62, 0.0 }
 0x1e8   : > { %859 = vadd.xlane.f32.xlu1 %v858_v6  ;;  %v3801_v6 = vadd.f32 %v3566_v52, %v3246_v29  ;;  %v939_v52 = vmul.f32 %v3385_v58, %v824_v9 }
 0x206   : > { %v797_v5 = vpop.xlane.xlu0 %796 }
 0x207   : > { %v930_v11 = vmul.f32 %v3385_v58, %v797_v5 }
 0x209   : > { %v3745_v32 = vsub.f32 %v3607_v37, %v930_v11  ;;  %v905_v37 = vmul.f32 %v3385_v58, %v3596_v55  ;;  %v1288_v55 = vmul.f32 %v1110_v22, %v3385_v58 }
 0x20b   : > { %v1058_v7 = vmul.f32 %v3745_v32, %v3745_v32  ;;  %v3767_v5 = vsub.f32 %v3338_v19, %v905_v37  ;;  %v3779_v54 = vadd.f32 1e-05, %v1288_v55  ;;  %v3784_v19 = vld [vmem:[%s5607_s4] ss:$0 sm:$0xff]  ;;  %v3788_v37 = vpop.eup %3003  ;;  %v3805_v55 = vadd.f32 %v3644_v13, %v3246_v29 }
 0x20c   : > { %vm1467_vm2 = vweird.f32 %v3788_v37 }
 0x20d   : > { %v1186_v47 = vsel %vm698_vm1, %v1058_v7, 0.0  ;;  %3005 = vrsqrt.f32 %v3779_v54  ;;  %v843_v13 = vsel %vm698_vm1, %v3805_v55, 0.0  ;;  %vm3856_vm5 = vmor %vm1466_vm4, %vm1467_vm2  ;;  %vm1476_vm9 = vweird.f32 %v3779_v54 }
 0x20e   : > { %1187 = vadd.xlane.f32.xlu0 %v1186_v47  ;;  %v3750_v56 = vpop.xlane.xlu0 %1196  ;;  %v1033_v47 = vmul.f32 %v3767_v5, %v3767_v5 }
 0x210   : > { %v1111_v22 = vsel %vm698_vm1, %v1033_v47, 0.0 }
 0x216   : > { %736 = vadd.xlane.f32.xlu0 %v735_v41  ;;  %v728_v11 = vpop.xlane.xlu0 %727 }
 0x217   : > { %v907_v7 = vmul.f32 %v3385_v58, %v728_v11 }
 0x219   : > { %v3775_v4 = vsub.f32 %v3632_v60, %v907_v7 }
 0x21b   : > { %5650 = vst [vmem:[#allocation19_spill] sm:$0xff] %v3775_v4  ;;  %v1035_v61 = vmul.f32 %v3775_v4, %v3775_v4 }
 0x21d   : > { %v1117_v60 = vsel %vm698_vm1, %v1035_v61, 0.0  ;;  %v2525_v41 = vpop.f32.mrf.mxu1  ;;  %v1461_v61 = vmul.f32 %v3788_v37, %v3762_v25 }
 0x21e   : > { %1112 = vadd.xlane.f32.xlu0 %v1111_v22  ;;  %1118 = vadd.xlane.f32.xlu2 %v1117_v60  ;;  %v1104_v11 = vpop.xlane.xlu0 %1103  ;;  %v2526_v7 = vadd.f32 %v3784_v19, %v2525_v41  ;;  %v837_v60 = vsel %vm698_vm1, %v3801_v6, 0.0  ;;  %v3820_v41 = vpop.eup %3005 }
 0x21f   : > { %v1286_v47 = vmul.f32 %v1104_v11, %v3385_v58  ;;  %v1462_v43 = vmul.f32 %v3788_v37, %v1461_v61  ;;  %v3823_v11 = vsub.f32 %v3449_v57, %v939_v52  ;;  %v1471_v15 = vmul.f32 %v3820_v41, %v3779_v54 }
 0x220   : > { %2718 = vst.msk [vmem:[%s3797_s19] sm:$0xff] %vm2717_vm15, %v2526_v7  ;;  %vm1477_vm8 = vweird.f32 %v3820_v41 }
 0x221   : > { %v1350_v22 = vadd.f32 1e-05, %v1286_v47  ;;  %5651 = vst [vmem:[#allocation20_spill] sm:$0xff] %v3823_v11  ;;  %v1463_v47 = vmul.f32 0.5, %v1462_v43  ;;  %v1067_v57 = vmul.f32 %v3823_v11, %v3823_v11  ;;  %v1472_v43 = vmul.f32 %v3820_v41, %v1471_v15  ;;  %vm1478_vm10 = vmor %vm1476_vm9, %vm1477_vm8 }
 0x222   : > { %v3843_v11 = vadd.f32 %v3388_v63, %v3246_v29 }
 0x223   : > { %3007 = vrsqrt.f32 %v1350_v22  ;;  %v1213_v39 = vsel %vm698_vm1, %v1067_v57, 0.0  ;;  %v3851_v57 = vadd.f32 %v3421_v24, %v3246_v29  ;;  %vm1456_vm6 = vweird.f32 %v1350_v22 }
 0x226   : > { %838 = vadd.xlane.f32.xlu0 %v837_v60  ;;  %844 = vadd.xlane.f32.xlu2 %v843_v13  ;;  %v830_v9 = vpop.xlane.xlu0 %829  ;;  %v1464_v60 = vsub.f32 1.5, %v1463_v47  ;;  %v1473_v47 = vmul.f32 0.5, %v1472_v43 }
 0x227   : > { %v941_v7 = vmul.f32 %v3385_v58, %v830_v9 }
 0x228   : > { %v1465_v15 = vmul.f32 %v3788_v37, %v1464_v60  ;;  %v1474_v60 = vsub.f32 1.5, %v1473_v47 }
 0x229   : > { %v3008_v50 = vpop.eup %3007  ;;  %v3831_v36 = vsub.f32 %v3666_v14, %v941_v7 }
 0x22a   : > { %v1451_v61 = vmul.f32 %v3008_v50, %v1350_v22  ;;  %vm1457_vm3 = vweird.f32 %v3008_v50  ;;  %v1469_v24 = vsel %vm3856_vm5, %v3788_v37, %v1465_v15 }
 0x22b   : > { %v1069_v52 = vmul.f32 %v3831_v36, %v3831_v36  ;;  %v2528_v9 = vpop.f32.mrf.mxu1  ;;  %vm1458_vm7 = vmor %vm1456_vm6, %vm1457_vm3  ;;  %v2056_v37 = vmul.f32 %v3618_v53, %v1469_v24 }
 0x22c   : > { %v1452_v13 = vmul.f32 %v3008_v50, %v1451_v61  ;;  %v2529_v4 = vadd.f32 %v3784_v19, %v2528_v9 }
 0x22d   : > { %v1219_v14 = vsel %vm698_vm1, %v1069_v52, 0.0 }
 0x22e   : > { %v1453_v7 = vmul.f32 0.5, %v1452_v13  ;;  %1214 = vadd.xlane.f32.xlu0 %v1213_v39  ;;  %1220 = vadd.xlane.f32.xlu2 %v1219_v14  ;;  %2719 = vst.msk [vmem:[%s3797_s19 + $0x8] sm:$0xff] %vm2717_vm15, %v2529_v4  ;;  %v908_v39 = vmul.f32 %v3385_v58, %v3739_v28  ;;  %v3860_v4 = vpop.xlane.xlu1 %1208  ;;  %v744_v28 = vsel %vm698_vm1, %v3843_v11, 0.0  ;;  %v750_v14 = vsel %vm698_vm1, %v3851_v57, 0.0 }
 0x230   : > { %v1454_v61 = vsub.f32 1.5, %v1453_v7  ;;  %v3868_v25 = vsub.f32 %v3483_v27, %v908_v39  ;;  %v1475_v7 = vmul.f32 %v3820_v41, %v1474_v60  ;;  %v3891_v60 = vadd.f32 %v3668_v1, %v3246_v29 }
 0x232   : > { %v1455_v52 = vmul.f32 %v3008_v50, %v1454_v61  ;;  %v1036_v15 = vmul.f32 %v3868_v25, %v3868_v25  ;;  %v2120_v61 = vmul.f32 %v2056_v37, %v3494_v38  ;;  %v289_v37 = vld [vmem:[%s3186_s28 + $0x1e0] sm:$0xff] }
 0x233   : > { %v2531_v13 = vpop.f32.mrf.mxu1 }
 0x234   : > { %v1459_v43 = vsel %vm1458_vm7, %v3008_v50, %v1455_v52  ;;  %v2532_v9 = vadd.f32 %v3784_v19, %v2531_v13  ;;  %v1120_v24 = vsel %vm698_vm1, %v1036_v15, 0.0  ;;  %v2185_v38 = vadd.f32 %v3625_v12, %v2120_v61 }
 0x235   : > { %v2055_v22 = vmul.f32 %v3618_v53, %v1459_v43  ;;  %v846_v13 = vsel %vm698_vm1, %v3891_v60, 0.0 }
 0x236   : > { %745 = vadd.xlane.f32.xlu0 %v744_v28  ;;  %751 = vadd.xlane.f32.xlu2 %v750_v14  ;;  %2720 = vst.msk [vmem:[%s3797_s19 + $0x10] sm:$0xff] %vm2717_vm15, %v2532_v9  ;;  %v740_v39 = vpop.xlane.xlu1 %739  ;;  %v2249_v43 = vmax.f32 %v2185_v38, 0.0  ;;  %v288_v14 = vld [vmem:[%s3186_s28 + $0x1d8] sm:$0xff]  ;;  %v1315_v38 = vmul.f32 %v3604_v2, %v3385_v58  ;;  %v1316_v2 = vmul.f32 %v3609_v26, %v3385_v58 }
 0x237   : > { %v2119_v50 = vmul.f32 %v2055_v22, %v3641_v31  ;;  %v1479_v31 = vsel %vm1478_vm10, %v3820_v41, %v1475_v7  ;;  %v942_v41 = vmul.f32 %v3385_v58, %v3828_v49  ;;  %2906 = vmatmul.msk.f32.gmra.mxu3 %vm296_vm0, %v288_v14  ;;  %v3919_v7 = vadd.f32 %v3436_v45, %v3246_v29 }
 0x238   : > { %v2057_v54 = vmul.f32 %v3618_v53, %v1479_v31  ;;  %v3934_v45 = vadd.f32 %v3742_v16, %v3246_v29 }
 0x239   : > { %v2184_v27 = vadd.f32 %v3625_v12, %v2119_v50  ;;  %v3903_v9 = vsub.f32 %v3512_v48, %v942_v41  ;;  %v1379_v41 = vadd.f32 1e-05, %v1315_v38 }
 0x23a   : > { %v2121_v28 = vmul.f32 %v2057_v54, %v3499_v34 }
 0x23b   : > { %v2248_v47 = vmax.f32 %v2184_v27, 0.0  ;;  %v2534_v63 = vpop.f32.mrf.mxu1  ;;  %v1070_v49 = vmul.f32 %v3903_v9, %v3903_v9  ;;  %v911_v27 = vmul.f32 %v3385_v58, %v740_v39  ;;  %3009 = vrsqrt.f32 %v1379_v41 }
 0x23c   : > { %v2535_v52 = vadd.f32 %v3784_v19, %v2534_v63  ;;  %v2186_v22 = vadd.f32 %v3625_v12, %v2121_v28  ;;  %vm1746_vm11 = vweird.f32 %v1379_v41 }
 0x23d   : > { %2915 = vmatmul.msk.f32.gmra.mxu1 %vm698_vm1, %v2248_v47  ;;  %v1222_v34 = vsel %vm698_vm1, %v1070_v49, 0.0  ;;  %v3923_v15 = vsub.f32 %v3541_v23, %v911_v27  ;;  %v753_v47 = vsel %vm698_vm1, %v3919_v7, 0.0  ;;  %v292_v49 = vld [vmem:[%s3186_s28 + $0x1f8] sm:$0xff] }
 0x23e   : > { %1121 = vadd.xlane.f32.xlu0 %v1120_v24  ;;  %2721 = vst.msk [vmem:[%s3797_s19 + $0x18] sm:$0xff] %vm2717_vm15, %v2535_v52  ;;  %v3906_v1 = vpop.xlane.xlu1 %1115  ;;  %v2250_v50 = vmax.f32 %v2186_v22, 0.0  ;;  %v290_v52 = vld [vmem:[%s3186_s28 + $0x1e8] sm:$0xff]  ;;  %v855_v24 = vsel %vm698_vm1, %v3934_v45, 0.0  ;;  %v3960_v22 = vpop.f32.mrf.mxu3 }
 0x23f   : > { %2907 = vmatmul.msk.f32.gmra.mxu3 %vm296_vm0, %v289_v37  ;;  %5654 = vst [vmem:[#allocation21_spill] sm:$0xff] %v3923_v15  ;;  %v1039_v31 = vmul.f32 %v3923_v15, %v3923_v15 }
 0x241   : > { %v1129_v63 = vsel %vm698_vm1, %v1039_v31, 0.0 }
 0x245   : > { %2916 = vmatmul.msk.f32.gmra.mxu1 %vm698_vm1, %v2249_v43  ;;  %v291_v43 = vld [vmem:[%s3186_s28 + $0x1f0] sm:$0xff] }
 0x246   : > { %847 = vadd.xlane.f32.xlu0 %v846_v13  ;;  %v842_v48 = vpop.xlane.xlu1 %841 }
 0x247   : > { %v945_v23 = vmul.f32 %v3385_v58, %v842_v48  ;;  %2908 = vmatmul.msk.f32.gmra.mxu3 %vm296_vm0, %v290_v52 }
 0x249   : > { %v3944_v54 = vsub.f32 %v3586_v20, %v945_v23  ;;  %v3957_v20 = vadd.f32 %v3486_v30, %v3246_v29  ;;  %v3972_v30 = vpop.xlane.xlu0 %1205 }
 0x24b   : > { %5655 = vst [vmem:[#allocation22_spill] sm:$0xff] %v3944_v54  ;;  %v1073_v16 = vmul.f32 %v3944_v54, %v3944_v54  ;;  %v762_v26 = vsel %vm698_vm1, %v3957_v20, 0.0 }
 0x24d   : > { %2917 = vmatmul.msk.f32.gmra.mxu1 %vm698_vm1, %v2250_v50  ;;  %v1231_v28 = vsel %vm698_vm1, %v1073_v16, 0.0  ;;  %v3010_v50 = vpop.eup %3009  ;;  %v1317_v16 = vmul.f32 %v3750_v56, %v3385_v58 }
 0x24e   : > { %1223 = vadd.xlane.f32.xlu0 %v1222_v34  ;;  %v3927_v61 = vpop.xlane.xlu1 %1217  ;;  %v3963_v34 = vadd.f32 1e-05, %v1316_v2  ;;  %v1741_v37 = vmul.f32 %v3010_v50, %v1379_v41 }
 0x24f   : > { %2909 = vmatmul.msk.f32.gmra.mxu3 %vm296_vm0, %v291_v43  ;;  %v3999_v56 = vadd.f32 1e-05, %v1317_v16 }
 0x250   : > { %3011 = vrsqrt.f32 %v3963_v34  ;;  %v1742_v31 = vmul.f32 %v3010_v50, %v1741_v37  ;;  %vm1756_vm13 = vweird.f32 %v3963_v34 }
 0x251   : > { %vm1766_vm8 = vweird.f32 %v3999_v56 }
 0x256   : > { %754 = vadd.xlane.f32.xlu0 %v753_v47  ;;  %v749_v39 = vpop.xlane.xlu1 %748  ;;  %v3976_v23 = vpop.eup %3011 }
 0x257   : > { %v914_v14 = vmul.f32 %v3385_v58, %v749_v39  ;;  %2910 = vmatmul.msk.f32.gmra.mxu3 %vm296_vm0, %v292_v49  ;;  %v1743_v39 = vmul.f32 0.5, %v1742_v31  ;;  %vm1747_vm0 = vweird.f32 %v3010_v50  ;;  %vm1757_vm14 = vweird.f32 %v3976_v23 }
 0x258   : > { %vm4011_vm12 = vmor %vm1746_vm11, %vm1747_vm0 }
 0x259   : > { %v3967_v48 = vsub.f32 %v3662_v3, %v914_v14  ;;  %v1744_v2 = vsub.f32 1.5, %v1743_v39  ;;  %v1290_v14 = vmul.f32 %v3906_v1, %v3385_v58  ;;  %vm4053_vm2 = vmor %vm1756_vm13, %vm1757_vm14 }
 0x25b   : > { %5656 = vst [vmem:[#allocation23_spill] sm:$0xff] %v3967_v48  ;;  %v1042_v47 = vmul.f32 %v3967_v48, %v3967_v48  ;;  %v4004_v1 = vadd.f32 1e-05, %v1290_v14 }
 0x25d   : > { %v1138_v3 = vsel %vm698_vm1, %v1042_v47, 0.0  ;;  %vm1496_vm0 = vweird.f32 %v4004_v1 }
 0x25e   : > { %1130 = vadd.xlane.f32.xlu0 %v1129_v63  ;;  %v3950_v13 = vpop.xlane.xlu1 %1124  ;;  %v671_v63 = vpop.f32.mrf.mxu3 }
 0x25f   : > { %v3980_v52 = vadd.f32 %v671_v63, %v3246_v29  ;;  %v1745_v63 = vmul.f32 %v3010_v50, %v1744_v2 }
 0x261   : > { %5657 = vst [vmem:[#allocation24_spill] sm:$0xff] %v3980_v52  ;;  %v864_v37 = vsel %vm698_vm1, %v3980_v52, 0.0 }
 0x266   : > { %856 = vadd.xlane.f32.xlu0 %v855_v24  ;;  %v851_v27 = vpop.xlane.xlu1 %850  ;;  %v1751_v24 = vmul.f32 %v3976_v23, %v3963_v34  ;;  %v4009_v39 = vpop.f32.mrf.mxu3 }
 0x267   : > { %v948_v43 = vmul.f32 %v3385_v58, %v851_v27 }
 0x268   : > { %v1752_v47 = vmul.f32 %v3976_v23, %v1751_v24 }
 0x269   : > { %v4002_v27 = vsub.f32 %v3698_v46, %v948_v43  ;;  %v1319_v46 = vmul.f32 %v3655_v0, %v3385_v58 }
 0x26b   : > { %5658 = vst [vmem:[#allocation25_spill] sm:$0xff] %v4002_v27  ;;  %v1076_v43 = vmul.f32 %v4002_v27, %v4002_v27 }
 0x26e   : > { %1232 = vadd.xlane.f32.xlu0 %v1231_v28  ;;  %v3984_v38 = vpop.xlane.xlu1 %1226  ;;  %v4068_v15 = vpop.f32.mrf.mxu3 }
 0x276   : > { %763 = vadd.xlane.f32.xlu0 %v762_v26  ;;  %v1318_v26 = vmul.f32 %v3732_v33, %v3385_v58  ;;  %v758_v41 = vpop.xlane.xlu1 %757 }
 0x278   : > { %v4007_v33 = vadd.f32 1e-05, %v1318_v26  ;;  %v4028_v26 = vadd.f32 1e-05, %v1319_v46  ;;  %v4043_v46 = vadd.f32 %v3473_v59, %v3246_v29 }
 0x27a   : > { %5662 = vst [vmem:[#allocation27_spill] sm:$0xff] %v4043_v46  ;;  %vm1776_vm10 = vweird.f32 %v4007_v33 }
 0x27e   : > { %1139 = vadd.xlane.f32.xlu0 %v1138_v3  ;;  %v1753_v3 = vmul.f32 0.5, %v1752_v47  ;;  %v1240_v47 = vsel %vm698_vm1, %v1076_v43, 0.0 }
 0x281   : > { %v1188_v28 = vpop.xlane.xlu0 %1187 }
 0x282   : > { %v1314_v49 = vmul.f32 %v1188_v28, %v3385_v58  ;;  %v1749_v28 = vsel %vm4011_vm12, %v3010_v50, %v1745_v63  ;;  %vm1786_vm12 = vweird.f32 %v4028_v26 }
 0x283   : > { %v2084_v50 = vmul.f32 %v3618_v53, %v1749_v28 }
 0x284   : > { %v3997_v31 = vadd.f32 1e-05, %v1314_v49  ;;  %v1754_v49 = vsub.f32 1.5, %v1753_v3 }
 0x286   : > { %3013 = vrsqrt.f32 %v3997_v31  ;;  %865 = vadd.xlane.f32.xlu0 %v864_v37  ;;  %v1755_v34 = vmul.f32 %v3976_v23, %v1754_v49  ;;  %vm1736_vm4 = vweird.f32 %v3997_v31 }
 0x287   : > { %3015 = vrsqrt.f32 %v3999_v56 }
 0x288   : > { %3017 = vrsqrt.f32 %v4004_v1 }
 0x289   : > { %v737_v16 = vpop.xlane.xlu0 %736  ;;  %3019 = vrsqrt.f32 %v4007_v33 }
 0x28a   : > { %v910_v2 = vmul.f32 %v3385_v58, %v737_v16  ;;  %v4047_v16 = vadd.f32 %v3533_v35, %v3246_v29  ;;  %3021 = vrsqrt.f32 %v4028_v26  ;;  %v2148_v35 = vmul.f32 %v2084_v50, %v3402_v10 }
 0x28c   : > { %v3014_v14 = vpop.eup %3013  ;;  %v4026_v0 = vsub.f32 %v3755_v18, %v910_v2  ;;  %5663 = vst [vmem:[#allocation28_spill] sm:$0xff] %v4047_v16 }
 0x28d   : > { %v1731_v37 = vmul.f32 %v3014_v14, %v3997_v31  ;;  %v4037_v3 = vpop.eup %3015  ;;  %vm1737_vm3 = vweird.f32 %v3014_v14 }
 0x28e   : > { %5661 = vst [vmem:[#allocation26_spill] sm:$0xff] %v4026_v0  ;;  %1241 = vadd.xlane.f32.xlu0 %v1240_v47  ;;  %v1038_v63 = vmul.f32 %v4026_v0, %v4026_v0  ;;  %v4039_v24 = vpop.eup %3017  ;;  %v1761_v49 = vmul.f32 %v4037_v3, %v3999_v56  ;;  %vm1738_vm5 = vmor %vm1736_vm4, %vm1737_vm3  ;;  %vm1767_vm7 = vweird.f32 %v4037_v3 }
 0x28f   : > { %v1732_v18 = vmul.f32 %v3014_v14, %v1731_v37  ;;  %v4051_v28 = vpop.eup %3019  ;;  %v917_v37 = vmul.f32 %v3385_v58, %v758_v41  ;;  %v4072_v41 = vadd.f32 %v3503_v44, %v3246_v29  ;;  %v1491_v10 = vmul.f32 %v4039_v24, %v4004_v1  ;;  %vm4191_vm11 = vmor %vm1766_vm8, %vm1767_vm7 }
 0x290   : > { %v1126_v43 = vsel %vm698_vm1, %v1038_v63, 0.0  ;;  %v4064_v63 = vadd.f32 %v3736_v40, %v3246_v29  ;;  %v1759_v40 = vsel %vm4053_vm2, %v3976_v23, %v1755_v34  ;;  %v1762_v23 = vmul.f32 %v4037_v3, %v1761_v49 }
 0x291   : > { %v1733_v59 = vmul.f32 0.5, %v1732_v18  ;;  %v1119_v47 = vpop.xlane.xlu2 %1118  ;;  %1127 = vadd.xlane.f32.xlu2 %v1126_v43  ;;  %v1113_v27 = vpop.xlane.xlu0 %1112  ;;  %5667 = vst [vmem:[#allocation30_spill] sm:$0xff] %v4072_v41  ;;  %v1771_v18 = vmul.f32 %v4051_v28, %v4007_v33  ;;  %v4088_v44 = vsub.f32 %v3714_v8, %v917_v37  ;;  %v1492_v34 = vmul.f32 %v4039_v24, %v1491_v10 }
 0x292   : > { %5666 = vst [vmem:[#allocation29_spill] sm:$0xff] %v4064_v63  ;;  %v1291_v48 = vmul.f32 %v1119_v47, %v3385_v58  ;;  %v1289_v54 = vmul.f32 %v1113_v27, %v3385_v58  ;;  %v4081_v43 = vpop.xlane.xlu1 %1133  ;;  %v4100_v8 = vpop.eup %3021  ;;  %v2085_v2 = vmul.f32 %v3618_v53, %v1759_v40  ;;  %v1320_v10 = vmul.f32 %v3972_v30, %v3385_v58 }
 0x293   : > { %v1734_v50 = vsub.f32 1.5, %v1733_v59  ;;  %5668 = vst [vmem:[#allocation31_spill] sm:$0xff] %v4088_v44  ;;  %v771_v59 = vsel %vm698_vm1, %v4047_v16, 0.0  ;;  %v1772_v37 = vmul.f32 %v4051_v28, %v1771_v18  ;;  %v1045_v40 = vmul.f32 %v4088_v44, %v4088_v44 }
 0x294   : > { %v4083_v27 = vadd.f32 1e-05, %v1291_v48  ;;  %v4085_v47 = vadd.f32 1e-05, %v1289_v54  ;;  %v852_v48 = vsel %vm698_vm1, %v4064_v63, 0.0  ;;  %v4098_v54 = vadd.f32 %v3625_v12, %v2148_v35 }
 0x295   : > { %v1735_v0 = vmul.f32 %v3014_v14, %v1734_v50  ;;  %v4109_v50 = vsel %vm698_vm1, %v4043_v46, 0.0  ;;  %v4113_v35 = vadd.f32 %v3562_v51, %v3246_v29  ;;  %v4121_v18 = vsel %vm698_vm1, %v4072_v41, 0.0 }
 0x296   : > { %3023 = vrsqrt.f32 %v4083_v27  ;;  %772 = vadd.xlane.f32.xlu0 %v771_v59  ;;  %v1763_v59 = vmul.f32 0.5, %v1762_v23  ;;  %v1781_v30 = vmul.f32 %v4100_v8, %v4028_v26  ;;  %v1493_v63 = vmul.f32 0.5, %v1492_v34 }
 0x297   : > { %v1739_v31 = vsel %vm1738_vm5, %v3014_v14, %v1735_v0  ;;  %3025 = vrsqrt.f32 %v4085_v47  ;;  %v2149_v16 = vmul.f32 %v2085_v2, %v3416_v21  ;;  %v4132_v52 = vmul.f32 0.5, %v1772_v37 }
 0x298   : > { %v2083_v49 = vmul.f32 %v3618_v53, %v1739_v31  ;;  %v1321_v34 = vmul.f32 %v3860_v4, %v3385_v58  ;;  %v4145_v21 = vadd.f32 1e-05, %v1320_v10  ;;  %v1764_v37 = vsub.f32 1.5, %v1763_v59 }
 0x299   : > { %v845_v14 = vpop.xlane.xlu2 %844  ;;  %853 = vadd.xlane.f32.xlu2 %v852_v48  ;;  %v839_v0 = vpop.xlane.xlu0 %838  ;;  %vm1497_vm6 = vweird.f32 %v4039_v24  ;;  %vm1486_vm14 = vweird.f32 %v4085_v47  ;;  %vm1777_vm2 = vweird.f32 %v4051_v28  ;;  %vm1506_vm7 = vweird.f32 %v4083_v27 }
 0x29a   : > { %v946_v31 = vmul.f32 %v3385_v58, %v845_v14  ;;  %v944_v46 = vmul.f32 %v3385_v58, %v839_v0  ;;  %v2147_v51 = vmul.f32 %v2083_v49, %v3745_v32  ;;  %v680_v49 = vpop.f32.mrf.mxu3  ;;  %v860_v0 = vpop.xlane.xlu1 %859  ;;  %3027 = vrsqrt.f32 %v4145_v21  ;;  %vm4199_vm13 = vmor %vm1496_vm0, %vm1497_vm6 }
 0x29b   : > { %v4157_v10 = vadd.f32 %v680_v49, %v3246_v29  ;;  %v951_v48 = vmul.f32 %v3385_v58, %v860_v0  ;;  %vm4234_vm4 = vmor %vm1776_vm10, %vm1777_vm2  ;;  %vm1787_vm6 = vweird.f32 %v4100_v8  ;;  %v4304_v26 = vadd.f32 %v4009_v39, %v3246_v29 }
 0x29c   : > { %v4130_v44 = vpop.eup %3023  ;;  %v4135_v23 = vsub.f32 %v3805_v55, %v946_v31  ;;  %v4138_v14 = vsub.f32 %v3801_v6, %v944_v46  ;;  %v2212_v32 = vadd.f32 %v3625_v12, %v2147_v51  ;;  %v1147_v55 = vsel %vm698_vm1, %v1045_v40, 0.0 }
 0x29d   : > { %v4141_v41 = vpop.eup %3025  ;;  %v1501_v2 = vmul.f32 %v4130_v44, %v4083_v27  ;;  %v1494_v51 = vsub.f32 1.5, %v1493_v63  ;;  %v1293_v40 = vmul.f32 %v3950_v13, %v3385_v58  ;;  %v1782_v63 = vmul.f32 %v4100_v8, %v1781_v30 }
 0x29e   : > { %5669 = vst [vmem:[#allocation32_spill] sm:$0xff] %v4135_v23  ;;  %v1481_v6 = vmul.f32 %v4141_v41, %v4085_v47  ;;  %1148 = vadd.xlane.f32.xlu0 %v1147_v55  ;;  %v2276_v46 = vmax.f32 %v2212_v32, 0.0  ;;  %v1074_v31 = vmul.f32 %v4135_v23, %v4135_v23  ;;  %v1072_v4 = vmul.f32 %v4138_v14, %v4138_v14 }
 0x29f   : > { %v1502_v59 = vmul.f32 %v4130_v44, %v1501_v2  ;;  %v4167_v23 = vadd.f32 1e-05, %v1321_v34  ;;  %v1765_v2 = vmul.f32 %v4037_v3, %v1764_v37  ;;  %v1495_v30 = vmul.f32 %v4039_v24, %v1494_v51 }
 0x2a0   : > { %v1482_v55 = vmul.f32 %v4141_v41, %v1481_v6  ;;  %2943 = vmatmul.msk.f32.vlgmr.msra.gmra.mxu2 %vm698_vm1, %v2276_v46  ;;  %v1234_v32 = vsel %vm698_vm1, %v1074_v31, 0.0  ;;  %v1228_v0 = vsel %vm698_vm1, %v1072_v4, 0.0  ;;  %v4181_v34 = vsub.f32 %v3760_v62, %v951_v48 }
 0x2a1   : > { %1235 = vadd.xlane.f32.xlu1 %v1234_v32  ;;  %v4170_v49 = vpop.xlane.xlu2 %1220  ;;  %v4173_v13 = vpop.xlane.xlu0 %1214  ;;  %1229 = vadd.xlane.f32.xlu2 %v1228_v0  ;;  %v873_v46 = vsel %vm698_vm1, %v4157_v10, 0.0  ;;  %v4185_v31 = vadd.f32 1e-05, %v1293_v40  ;;  %v1503_v4 = vmul.f32 0.5, %v1502_v59  ;;  %vm1487_vm9 = vweird.f32 %v4141_v41 }
 0x2a2   : > { %v1483_v6 = vmul.f32 0.5, %v1482_v55  ;;  %v1774_v37 = vsub.f32 1.5, %v4132_v52  ;;  %v2214_v62 = vadd.f32 %v3625_v12, %v2149_v16  ;;  %v1783_v48 = vmul.f32 0.5, %v1782_v63  ;;  %v4208_v40 = vpop.eup %3027  ;;  %vm1488_vm3 = vmor %vm1486_vm14, %vm1487_vm9 }
 0x2a3   : > { %v1769_v52 = vsel %vm4191_vm11, %v4037_v3, %v1765_v2  ;;  %3029 = vrsqrt.f32 %v4167_v23  ;;  %v1322_v16 = vmul.f32 %v3710_v17, %v3385_v58  ;;  %v1079_v3 = vmul.f32 %v4181_v34, %v4181_v34  ;;  %vm4292_vm9 = vmor %vm1786_vm12, %vm1787_vm6 }
 0x2a4   : > { %v1484_v32 = vsub.f32 1.5, %v1483_v6  ;;  %v1499_v47 = vsel %vm4199_vm13, %v4039_v24, %v1495_v30  ;;  %3031 = vrsqrt.f32 %v4185_v31  ;;  %v1504_v59 = vsub.f32 1.5, %v1503_v4 }
 0x2a5   : > { %v5674_v63 = vmax.f32 %v4098_v54, 0.0  ;;  %v1775_v17 = vmul.f32 %v4051_v28, %v1774_v37  ;;  %v2086_v24 = vmul.f32 %v3618_v53, %v1769_v52  ;;  %v1784_v54 = vsub.f32 1.5, %v1783_v48 }
 0x2a6   : > { %v1485_v1 = vmul.f32 %v4141_v41, %v1484_v32  ;;  %874 = vadd.xlane.f32.xlu0 %v873_v46  ;;  %v2278_v46 = vmax.f32 %v2214_v62, 0.0  ;;  %v1791_v30 = vmul.f32 %v4208_v40, %v4145_v21  ;;  %v4243_v32 = vadd.f32 1e-05, %v1322_v16 }
 0x2a7   : > { %v1249_v37 = vsel %vm698_vm1, %v1079_v3, 0.0  ;;  %v2059_v56 = vmul.f32 %v3618_v53, %v1499_v47  ;;  %v1505_v62 = vmul.f32 %v4130_v44, %v1504_v59  ;;  %vm1507_vm5 = vweird.f32 %v4130_v44  ;;  %v5679_v59 = vld [vmem:[#allocation8_spill] sm:$0xff] }
 0x2a8   : > { %v1489_v55 = vsel %vm1488_vm3, %v4141_v41, %v1485_v1  ;;  %2944 = vmatmul.msk.f32.gmra.mxu2 %vm698_vm1, %v5674_v63  ;;  %v1779_v52 = vsel %vm4234_vm4, %v4051_v28, %v1775_v17  ;;  %v2150_v1 = vmul.f32 %v2086_v24, %v3613_v42  ;;  %v1785_v28 = vmul.f32 %v4100_v8, %v1784_v54  ;;  %vm4276_vm8 = vmor %vm1506_vm7, %vm1507_vm5  ;;  %v5683_v42 = vld [vmem:[#allocation19_spill] sm:$0xff] }
 0x2a9   : > { %766 = vadd.xlane.f32.xlu1 %v4121_v18  ;;  %v752_v0 = vpop.xlane.xlu2 %751  ;;  %v746_v2 = vpop.xlane.xlu0 %745  ;;  %v2058_v6 = vmul.f32 %v3618_v53, %v1489_v55  ;;  %760 = vadd.xlane.f32.xlu2 %v4109_v50  ;;  %3033 = vrsqrt.f32 %v4243_v32  ;;  %v2123_v27 = vmul.f32 %v2059_v56, %v5679_v59  ;;  %v1509_v55 = vsel %vm4276_vm8, %v4130_v44, %v1505_v62 }
 0x2aa   : > { %v915_v18 = vmul.f32 %v3385_v58, %v752_v0  ;;  %v913_v4 = vmul.f32 %v3385_v58, %v746_v2  ;;  %v4256_v50 = vpop.eup %3029  ;;  %v2087_v0 = vmul.f32 %v3618_v53, %v1779_v52  ;;  %v2215_v24 = vadd.f32 %v3625_v12, %v2150_v1 }
 0x2ab   : > { %v2122_v33 = vmul.f32 %v2058_v6, %v3767_v5  ;;  %v4264_v16 = vpop.eup %3031  ;;  %v1801_v6 = vmul.f32 %v4256_v50, %v4167_v23  ;;  %v1323_v54 = vmul.f32 %v4173_v13, %v3385_v58  ;;  %v780_v13 = vsel %vm698_vm1, %v4113_v35, 0.0 }
 0x2ac   : > { %v4251_v48 = vsub.f32 %v3851_v57, %v915_v18  ;;  %v4254_v51 = vsub.f32 %v3843_v11, %v913_v4  ;;  %v1792_v57 = vmul.f32 %v4208_v40, %v1791_v30  ;;  %v1521_v44 = vmul.f32 %v4264_v16, %v4185_v31 }
 0x2ad   : > { %v2187_v5 = vadd.f32 %v3625_v12, %v2122_v33  ;;  %v4311_v18 = vadd.f32 %v3960_v22, %v3246_v29  ;;  %v2188_v4 = vadd.f32 %v3625_v12, %v2123_v27  ;;  %v1789_v33 = vsel %vm4292_vm9, %v4100_v8, %v1785_v28 }
 0x2ae   : > { %1250 = vadd.xlane.f32.xlu0 %v1249_v37  ;;  %v1043_v11 = vmul.f32 %v4251_v48, %v4251_v48  ;;  %v1041_v3 = vmul.f32 %v4254_v51, %v4254_v51  ;;  %v1793_v41 = vmul.f32 0.5, %v1792_v57  ;;  %v2060_v37 = vmul.f32 %v3618_v53, %v1509_v55 }
 0x2af   : > { %v2251_v47 = vmax.f32 %v2187_v5, 0.0  ;;  %v4322_v56 = vpop.eup %3033  ;;  %v1802_v62 = vmul.f32 %v4256_v50, %v1801_v6  ;;  %v1522_v22 = vmul.f32 %v4264_v16, %v1521_v44  ;;  %v2279_v52 = vmax.f32 %v2215_v24, 0.0  ;;  %v5682_v5 = vld [vmem:[#allocation2_spill] sm:$0xff] }
 0x2b0   : > { %2945 = vmatmul.msk.f32.gmra.mxu2 %vm698_vm1, %v2278_v46  ;;  %v1141_v63 = vsel %vm698_vm1, %v1043_v11, 0.0  ;;  %v1135_v17 = vsel %vm698_vm1, %v1041_v3, 0.0  ;;  %v2151_v1 = vmul.f32 %v2087_v0, %v5682_v5  ;;  %v1794_v57 = vsub.f32 1.5, %v1793_v41 }
 0x2b1   : > { %2918 = vmatmul.msk.f32.gmra.mxu1 %vm698_vm1, %v2251_v47  ;;  %1142 = vadd.xlane.f32.xlu1 %v1141_v63  ;;  %v1122_v46 = vpop.xlane.xlu0 %1121  ;;  %v4327_v11 = vadd.f32 1e-05, %v1323_v54  ;;  %v867_v8 = vsel %vm698_vm1, %v4304_v26, 0.0  ;;  %v2252_v3 = vmax.f32 %v2188_v4, 0.0  ;;  %v861_v28 = vsel %vm698_vm1, %v4311_v18, 0.0 }
 0x2b2   : > { %1136 = vadd.xlane.f32.xlu2 %v1135_v17  ;;  %v1292_v30 = vmul.f32 %v1122_v46, %v3385_v58  ;;  %v2124_v47 = vmul.f32 %v2060_v37, %v5683_v42  ;;  %v1811_v59 = vmul.f32 %v4322_v56, %v4243_v32  ;;  %v1324_v27 = vmul.f32 %v3927_v61, %v3385_v58 }
 0x2b3   : > { %v1803_v55 = vmul.f32 0.5, %v1802_v62  ;;  %vm1797_vm10 = vweird.f32 %v4208_v40  ;;  %v2216_v17 = vadd.f32 %v3625_v12, %v2151_v1  ;;  %v2088_v0 = vmul.f32 %v3618_v53, %v1789_v33  ;;  %v5686_v62 = vld [vmem:[#allocation3_spill] sm:$0xff] }
 0x2b4   : > { %v4318_v39 = vadd.f32 1e-05, %v1292_v30  ;;  %v1523_v2 = vmul.f32 0.5, %v1522_v22  ;;  %v1795_v6 = vmul.f32 %v4208_v40, %v1794_v57  ;;  %v2189_v24 = vadd.f32 %v3625_v12, %v2124_v47 }
 0x2b5   : > { %v1812_v54 = vmul.f32 %v4322_v56, %v1811_v59  ;;  %v4350_v30 = vadd.f32 1e-05, %v1324_v27  ;;  %vm1796_vm0 = vweird.f32 %v4145_v21  ;;  %v2152_v22 = vmul.f32 %v2088_v0, %v5686_v62  ;;  %v5695_v0 = vld [vmem:[#allocation16_spill] sm:$0xff] }
 0x2b6   : > { %3035 = vrsqrt.f32 %v4318_v39  ;;  %781 = vadd.xlane.f32.xlu0 %v780_v13  ;;  %vm4358_vm11 = vmor %vm1796_vm0, %vm1797_vm10  ;;  %v2280_v13 = vmax.f32 %v2216_v17, 0.0  ;;  %v1524_v5 = vsub.f32 1.5, %v1523_v2  ;;  %vm1806_vm12 = vweird.f32 %v4167_v23 }
 0x2b7   : > { %3037 = vrsqrt.f32 %v4327_v11  ;;  %v2253_v57 = vmax.f32 %v2189_v24, 0.0  ;;  %vm1807_vm13 = vweird.f32 %v4256_v50  ;;  %v2217_v47 = vadd.f32 %v3625_v12, %v2152_v22 }
 0x2b8   : > { %2946 = vmatmul.msk.f32.gmra.mxu2 %vm698_vm1, %v2279_v52  ;;  %v1804_v52 = vsub.f32 1.5, %v1803_v55  ;;  %3039 = vrsqrt.f32 %v4350_v30  ;;  %v1525_v55 = vmul.f32 %v4264_v16, %v1524_v5  ;;  %vm1527_vm14 = vweird.f32 %v4264_v16  ;;  %vm4390_vm2 = vmor %vm1806_vm12, %vm1807_vm13 }
 0x2b9   : > { %2919 = vmatmul.msk.f32.gmra.mxu1 %vm698_vm1, %v2252_v3  ;;  %868 = vadd.xlane.f32.xlu1 %v867_v8  ;;  %v848_v63 = vpop.xlane.xlu0 %847  ;;  %v1813_v3 = vmul.f32 0.5, %v1812_v54  ;;  %vm1526_vm4 = vweird.f32 %v4185_v31  ;;  %vm1516_vm6 = vweird.f32 %v4318_v39  ;;  %v5692_v54 = vld [vmem:[#allocation15_spill] sm:$0xff]  ;;  %v2281_v22 = vmax.f32 %v2217_v47, 0.0 }
 0x2ba   : > { %862 = vadd.xlane.f32.xlu2 %v861_v28  ;;  %v947_v61 = vmul.f32 %v3385_v58, %v848_v63  ;;  %v2537_v44 = vpop.f32.mrf.mxu1  ;;  %v1805_v27 = vmul.f32 %v4256_v50, %v1804_v52  ;;  %v1325_v63 = vmul.f32 %v4170_v49, %v3385_v58  ;;  %vm4402_vm5 = vmor %vm1526_vm4, %vm1527_vm14  ;;  %vm1816_vm8 = vweird.f32 %v4243_v32 }
 0x2bb   : > { %v2538_v46 = vadd.f32 %v3784_v19, %v2537_v44  ;;  %v5689_v44 = vld [vmem:[#allocation4_spill] sm:$0xff]  ;;  %v1529_v31 = vsel %vm4402_vm5, %v4264_v16, %v1525_v55  ;;  %vm1817_vm9 = vweird.f32 %v4322_v56  ;;  %vm1836_vm13 = vweird.f32 %v4350_v30 }
 0x2bc   : > { %v3036_v41 = vpop.eup %3035  ;;  %v4354_v4 = vsub.f32 %v3891_v60, %v947_v61  ;;  %v1799_v60 = vsel %vm4358_vm11, %v4208_v40, %v1795_v6  ;;  %v4399_v49 = vadd.f32 %v5689_v44, %v3246_v29  ;;  %v4418_v62 = vadd.f32 1e-05, %v1325_v63  ;;  %vm4433_vm10 = vmor %vm1816_vm8, %vm1817_vm9 }
 0x2bd   : > { %v1511_v33 = vmul.f32 %v3036_v41, %v4318_v39  ;;  %2722 = vst.msk [vmem:[%s3797_s19 + $0x20] sm:$0xff] %vm2717_vm15, %v2538_v46  ;;  %v4372_v8 = vpop.eup %3037  ;;  %v2089_v59 = vmul.f32 %v3618_v53, %v1799_v60  ;;  %vm1517_vm3 = vweird.f32 %v3036_v41  ;;  %v1814_v46 = vsub.f32 1.5, %v1813_v3 }
 0x2be   : > { %v1075_v21 = vmul.f32 %v4354_v4, %v4354_v4  ;;  %v1821_v2 = vmul.f32 %v4372_v8, %v4327_v11  ;;  %vm1518_vm7 = vmor %vm1516_vm6, %vm1517_vm3  ;;  %3041 = vrsqrt.f32 %v4418_v62  ;;  %vm1827_vm0 = vweird.f32 %v4372_v8 }
 0x2bf   : > { %v1512_v1 = vmul.f32 %v3036_v41, %v1511_v33  ;;  %v2153_v37 = vmul.f32 %v2089_v59, %v5692_v54  ;;  %v4410_v33 = vpop.eup %3039  ;;  %v1815_v5 = vmul.f32 %v4322_v56, %v1814_v46  ;;  %vm1826_vm11 = vweird.f32 %v4327_v11 }
 0x2c0   : > { %2947 = vmatmul.msk.f32.gmra.mxu2 %vm698_vm1, %v2280_v13  ;;  %v1237_v28 = vsel %vm698_vm1, %v1075_v21, 0.0  ;;  %v1809_v13 = vsel %vm4390_vm2, %v4256_v50, %v1805_v27  ;;  %v1822_v39 = vmul.f32 %v4372_v8, %v1821_v2  ;;  %v768_v50 = vsel %vm698_vm1, %v4399_v49, 0.0  ;;  %vm4482_vm12 = vmor %vm1826_vm11, %vm1827_vm0 }
 0x2c1   : > { %v1513_v42 = vmul.f32 0.5, %v1512_v1  ;;  %2920 = vmatmul.msk.f32.gmra.mxu1 %vm698_vm1, %v2253_v57  ;;  %v1224_v40 = vpop.xlane.xlu0 %1223  ;;  %v1831_v60 = vmul.f32 %v4410_v33, %v4350_v30  ;;  %v2218_v32 = vadd.f32 %v3625_v12, %v2153_v37  ;;  %v2062_v1 = vmul.f32 %v3618_v53, %v1529_v31 }
 0x2c2   : > { %1238 = vadd.xlane.f32.xlu2 %v1237_v28  ;;  %v2540_v17 = vpop.f32.mrf.mxu1  ;;  %v1326_v3 = vmul.f32 %v1224_v40, %v3385_v58  ;;  %v1823_v59 = vmul.f32 0.5, %v1822_v39  ;;  %v1327_v31 = vmul.f32 %v3984_v38, %v3385_v58  ;;  %v4473_v39 = vadd.f32 %v4068_v15, %v3246_v29 }
 0x2c3   : > { %v1514_v6 = vsub.f32 1.5, %v1513_v42  ;;  %v2541_v61 = vadd.f32 %v3784_v19, %v2540_v17  ;;  %v1819_v17 = vsel %vm4433_vm10, %v4322_v56, %v1815_v5  ;;  %v1832_v40 = vmul.f32 %v4410_v33, %v1831_v60 }
 0x2c4   : > { %v2126_v2 = vmul.f32 %v2062_v1, %v5695_v0  ;;  %v2282_v44 = vmax.f32 %v2218_v32, 0.0  ;;  %v1824_v46 = vsub.f32 1.5, %v1823_v59  ;;  %v4458_v23 = vpop.eup %3041  ;;  %v2091_v37 = vmul.f32 %v3618_v53, %v1819_v17 }
 0x2c5   : > { %v1515_v24 = vmul.f32 %v3036_v41, %v1514_v6  ;;  %2723 = vst.msk [vmem:[%s3797_s19 + $0x28] sm:$0xff] %vm2717_vm15, %v2541_v61  ;;  %v5696_v6 = vld [vmem:[#allocation5_spill] sm:$0xff]  ;;  %v4454_v61 = vadd.f32 1e-05, %v1326_v3  ;;  %v870_v11 = vsel %vm698_vm1, %v4473_v39, 0.0  ;;  %vm1837_vm14 = vweird.f32 %v4410_v33 }
 0x2c6   : > { %v1825_v5 = vmul.f32 %v4372_v8, %v1824_v46  ;;  %vm1838_vm2 = vmor %vm1836_vm13, %vm1837_vm14  ;;  %vm1847_vm3 = vweird.f32 %v4458_v23  ;;  %vm1846_vm4 = vweird.f32 %v4418_v62 }
 0x2c7   : > { %v1519_v52 = vsel %vm1518_vm7, %v3036_v41, %v1515_v24  ;;  %v2090_v41 = vmul.f32 %v3618_v53, %v1809_v13  ;;  %v1833_v13 = vmul.f32 0.5, %v1832_v40  ;;  %3043 = vrsqrt.f32 %v4454_v61  ;;  %v5700_v40 = vld [vmem:[#allocation20_spill] sm:$0xff]  ;;  %vm1848_vm5 = vmor %vm1846_vm4, %vm1847_vm3 }
 0x2c8   : > { %2948 = vmatmul.msk.f32.gmra.mxu2 %vm698_vm1, %v2281_v22  ;;  %v2061_v16 = vmul.f32 %v3618_v53, %v1519_v52  ;;  %v2191_v22 = vadd.f32 %v3625_v12, %v2126_v2  ;;  %v1841_v52 = vmul.f32 %v4458_v23, %v4418_v62  ;;  %vm1856_vm7 = vweird.f32 %v4454_v61 }
 0x2c9   : > { %v755_v21 = vpop.xlane.xlu0 %754  ;;  %v1834_v32 = vsub.f32 1.5, %v1833_v13 }
 0x2ca   : > { %769 = vadd.xlane.f32.xlu2 %v768_v50  ;;  %v916_v28 = vmul.f32 %v3385_v58, %v755_v21  ;;  %v2543_v42 = vpop.f32.mrf.mxu1  ;;  %v2125_v47 = vmul.f32 %v2061_v16, %v3868_v25  ;;  %v2154_v25 = vmul.f32 %v2090_v41, %v5696_v6  ;;  %v4480_v50 = vadd.f32 1e-05, %v1327_v31  ;;  %v5699_v21 = vld [vmem:[#allocation6_spill] sm:$0xff] }
 0x2cb   : > { %v2544_v27 = vadd.f32 %v3784_v19, %v2543_v42  ;;  %v2255_v16 = vmax.f32 %v2191_v22, 0.0  ;;  %v2155_v15 = vmul.f32 %v2091_v37, %v5699_v21  ;;  %v1842_v1 = vmul.f32 %v4458_v23, %v1841_v52  ;;  %v5701_v37 = vld [vmem:[#allocation9_spill] sm:$0xff]  ;;  %v4531_v22 = vpop.f32.mrf.mxu3  ;;  %v5702_v52 = vld [vmem:[#allocation14_spill] sm:$0xff] }
 0x2cc   : > { %v4443_v55 = vsub.f32 %v3919_v7, %v916_v28  ;;  %v2190_v63 = vadd.f32 %v3625_v12, %v2125_v47  ;;  %v2219_v54 = vadd.f32 %v3625_v12, %v2154_v25  ;;  %v1829_v41 = vsel %vm4482_vm12, %v4372_v8, %v1825_v5 }
 0x2cd   : > { %2724 = vst.msk [vmem:[%s3797_s19 + $0x30] sm:$0xff] %vm2717_vm15, %v2544_v27  ;;  %v4493_v57 = vpop.eup %3043  ;;  %3045 = vrsqrt.f32 %v4480_v50  ;;  %v2220_v8 = vadd.f32 %v3625_v12, %v2155_v15  ;;  %v2092_v42 = vmul.f32 %v3618_v53, %v1829_v41  ;;  %v1835_v47 = vmul.f32 %v4410_v33, %v1834_v32 }
 0x2ce   : > { %v2254_v19 = vmax.f32 %v2190_v63, 0.0  ;;  %v1044_v7 = vmul.f32 %v4443_v55, %v4443_v55  ;;  %v2283_v60 = vmax.f32 %v2219_v54, 0.0  ;;  %v1843_v59 = vmul.f32 0.5, %v1842_v1 }
 0x2cf   : > { %v1851_v27 = vmul.f32 %v4493_v57, %v4454_v61  ;;  %v2284_v63 = vmax.f32 %v2220_v8, 0.0  ;;  %v2156_v0 = vmul.f32 %v2092_v42, %v5700_v40  ;;  %v1839_v2 = vsel %vm1838_vm2, %v4410_v33, %v1835_v47 }
 0x2d0   : > { %2921 = vmatmul.msk.f32.gmra.mxu1 %vm698_vm1, %v2254_v19  ;;  %2949 = vmatmul.msk.f32.gmra.mxu2 %vm698_vm1, %v2282_v44  ;;  %v1144_v56 = vsel %vm698_vm1, %v1044_v7, 0.0  ;;  %v1844_v6 = vsub.f32 1.5, %v1843_v59  ;;  %v2093_v46 = vmul.f32 %v3618_v53, %v1839_v2  ;;  %v4528_v13 = vadd.f32 %v5701_v37, %v3246_v29  ;;  %v5704_v37 = vld [vmem:[#allocation17_spill] sm:$0xff] }
 0x2d1   : > { %v4463_v24 = vpop.xlane.xlu0 %1130  ;;  %v1852_v25 = vmul.f32 %v4493_v57, %v1851_v27  ;;  %vm1857_vm6 = vweird.f32 %v4493_v57  ;;  %vm1866_vm9 = vweird.f32 %v4480_v50 }
 0x2d2   : > { %1145 = vadd.xlane.f32.xlu2 %v1144_v56  ;;  %v1845_v33 = vmul.f32 %v4458_v23, %v1844_v6  ;;  %v2157_v5 = vmul.f32 %v2093_v46, %v5702_v52  ;;  %v777_v21 = vsel %vm698_vm1, %v4528_v13, 0.0  ;;  %vm1858_vm8 = vmor %vm1856_vm7, %vm1857_vm6 }
 0x2d3   : > { %v4514_v19 = vpop.eup %3045  ;;  %v1853_v54 = vmul.f32 0.5, %v1852_v25  ;;  %v686_v27 = vpop.f32.mrf.mxu3 }
 0x2d4   : > { %v1861_v56 = vmul.f32 %v4514_v19, %v4480_v50  ;;  %v2222_v32 = vadd.f32 %v3625_v12, %v2157_v5  ;;  %vm1867_vm10 = vweird.f32 %v4514_v19  ;;  %v1296_v50 = vmul.f32 %v4081_v43, %v3385_v58 }
 0x2d5   : > { %vm1868_vm0 = vmor %vm1866_vm9, %vm1867_vm10 }
 0x2d6   : > { %v1862_v38 = vmul.f32 %v4514_v19, %v1861_v56 }
 0x2d8   : > { %2922 = vmatmul.msk.f32.gmra.mxu1 %vm698_vm1, %v2255_v16  ;;  %2950 = vmatmul.msk.f32.gmra.mxu2 %vm698_vm1, %v2283_v60  ;;  %v1849_v16 = vsel %vm1848_vm5, %v4458_v23, %v1845_v33  ;;  %v1854_v60 = vsub.f32 1.5, %v1853_v54  ;;  %v1863_v41 = vmul.f32 0.5, %v1862_v38 }
 0x2d9   : > { %v857_v3 = vpop.xlane.xlu0 %856  ;;  %v2094_v1 = vmul.f32 %v3618_v53, %v1849_v16 }
 0x2da   : > { %871 = vadd.xlane.f32.xlu2 %v870_v11  ;;  %v950_v28 = vmul.f32 %v3385_v58, %v857_v3  ;;  %v1855_v11 = vmul.f32 %v4493_v57, %v1854_v60  ;;  %v2286_v3 = vmax.f32 %v2222_v32, 0.0  ;;  %v1864_v42 = vsub.f32 1.5, %v1863_v41 }
 0x2db   : > { %v2158_v8 = vmul.f32 %v2094_v1, %v3831_v36  ;;  %v4584_v56 = vpop.f32.mrf.mxu3 }
 0x2dc   : > { %v4507_v30 = vsub.f32 %v3934_v45, %v950_v28  ;;  %v2221_v45 = vadd.f32 %v3625_v12, %v2156_v0  ;;  %v1859_v47 = vsel %vm1858_vm8, %v4493_v57, %v1855_v11  ;;  %v1865_v36 = vmul.f32 %v4514_v19, %v1864_v42 }
 0x2dd   : > { %v2223_v61 = vadd.f32 %v3625_v12, %v2158_v8  ;;  %v4562_v57 = vadd.f32 %v686_v27, %v3246_v29 }
 0x2de   : > { %v1078_v17 = vmul.f32 %v4507_v30, %v4507_v30  ;;  %v2285_v31 = vmax.f32 %v2221_v45, 0.0  ;;  %v1869_v2 = vsel %vm1868_vm0, %v4514_v19, %v1865_v36  ;;  %v4575_v45 = vadd.f32 1e-05, %v1296_v50 }
 0x2df   : > { %v2287_v40 = vmax.f32 %v2223_v61, 0.0  ;;  %v879_v6 = vsel %vm698_vm1, %v4562_v57, 0.0  ;;  %v2096_v46 = vmul.f32 %v3618_v53, %v1869_v2 }
 0x2e0   : > { %2951 = vmatmul.msk.f32.gmra.mxu2 %vm698_vm1, %v2284_v63  ;;  %v1246_v44 = vsel %vm698_vm1, %v1078_v17, 0.0  ;;  %v2095_v63 = vmul.f32 %v3618_v53, %v1859_v47  ;;  %v1295_v17 = vmul.f32 %v4463_v24, %v3385_v58  ;;  %vm1556_vm4 = vweird.f32 %v4575_v45 }
 0x2e1   : > { %v4518_v7 = vpop.xlane.xlu0 %1232 }
 0x2e2   : > { %1247 = vadd.xlane.f32.xlu2 %v1246_v44  ;;  %v2159_v0 = vmul.f32 %v2095_v63, %v3903_v9  ;;  %v4572_v25 = vadd.f32 1e-05, %v1295_v17  ;;  %v5703_v9 = vld [vmem:[#allocation24_spill] sm:$0xff]  ;;  %v1329_v1 = vmul.f32 %v4518_v7, %v3385_v58 }
 0x2e3   : > { %v5706_v63 = vld [vmem:[#allocation28_spill] sm:$0xff] }
 0x2e4   : > { %v2224_v43 = vadd.f32 %v3625_v12, %v2159_v0  ;;  %3047 = vrsqrt.f32 %v4572_v25  ;;  %v4614_v47 = vadd.f32 1e-05, %v1329_v1  ;;  %vm1546_vm14 = vweird.f32 %v4572_v25 }
 0x2e5   : > { %3049 = vrsqrt.f32 %v4575_v45 }
 0x2e6   : > { %v2288_v33 = vmax.f32 %v2224_v43, 0.0  ;;  %vm1886_vm9 = vweird.f32 %v4614_v47 }
 0x2e8   : > { %2952 = vmatmul.msk.f32.gmra.mxu2 %vm698_vm1, %v2285_v31  ;;  %v2160_v31 = vmul.f32 %v2096_v46, %v5704_v37 }
 0x2e9   : > { %v764_v15 = vpop.xlane.xlu0 %763 }
 0x2ea   : > { %778 = vadd.xlane.f32.xlu2 %v777_v21  ;;  %v919_v62 = vmul.f32 %v3385_v58, %v764_v15  ;;  %v4594_v38 = vpop.eup %3047  ;;  %v2225_v16 = vadd.f32 %v3625_v12, %v2160_v31  ;;  %v5705_v15 = vld [vmem:[#allocation11_spill] sm:$0xff] }
 0x2eb   : > { %v4597_v60 = vpop.eup %3049  ;;  %v1541_v32 = vmul.f32 %v4594_v38, %v4572_v25  ;;  %vm1547_vm12 = vweird.f32 %v4594_v38 }
 0x2ec   : > { %v4545_v23 = vsub.f32 %v3957_v20, %v919_v62  ;;  %v4601_v62 = vadd.f32 %v5705_v15, %v3246_v29  ;;  %v2289_v11 = vmax.f32 %v2225_v16, 0.0  ;;  %vm1557_vm11 = vweird.f32 %v4597_v60  ;;  %vm4660_vm2 = vmor %vm1546_vm14, %vm1547_vm12 }
 0x2ed   : > { %v1542_v42 = vmul.f32 %v4594_v38, %v1541_v32  ;;  %v5708_v32 = vld [vmem:[#allocation7_spill] sm:$0xff]  ;;  %vm4678_vm6 = vmor %vm1556_vm4, %vm1557_vm11 }
 0x2ee   : > { %v1047_v28 = vmul.f32 %v4545_v23, %v4545_v23  ;;  %v4643_v1 = vadd.f32 %v5708_v32, %v3246_v29 }
 0x2ef   : > { %v1543_v50 = vmul.f32 0.5, %v1542_v42 }
 0x2f0   : > { %2953 = vmatmul.msk.f32.gmra.mxu2 %vm698_vm1, %v2286_v3  ;;  %v1153_v59 = vsel %vm698_vm1, %v1047_v28, 0.0  ;;  %v4608_v3 = vpop.f32.mrf.mxu3  ;;  %v1551_v28 = vmul.f32 %v4597_v60, %v4575_v45 }
 0x2f1   : > { %v4556_v20 = vpop.xlane.xlu0 %1139 }
 0x2f2   : > { %1154 = vadd.xlane.f32.xlu2 %v1153_v59  ;;  %v786_v59 = vsel %vm698_vm1, %v4601_v62, 0.0  ;;  %v1552_v61 = vmul.f32 %v4597_v60, %v1551_v28 }
 0x2f8   : > { %2954 = vmatmul.msk.f32.gmra.mxu2 %vm698_vm1, %v2287_v40 }
 0x2f9   : > { %v866_v44 = vpop.xlane.xlu0 %865 }
 0x2fa   : > { %880 = vadd.xlane.f32.xlu2 %v879_v6  ;;  %v953_v24 = vmul.f32 %v3385_v58, %v866_v44  ;;  %v1553_v6 = vmul.f32 0.5, %v1552_v61  ;;  %v5707_v44 = vld [vmem:[#allocation29_spill] sm:$0xff] }
 0x2fc   : > { %v4582_v19 = vsub.f32 %v5703_v9, %v953_v24  ;;  %v695_v9 = vpop.f32.mrf.mxu3  ;;  %v1554_v16 = vsub.f32 1.5, %v1553_v6 }
 0x2fd   : > { %v4639_v15 = vadd.f32 %v695_v9, %v3246_v29 }
 0x2fe   : > { %v1081_v54 = vmul.f32 %v4582_v19, %v4582_v19 }
 0x300   : > { %2955 = vmatmul.msk.f32.gmra.mxu2 %vm698_vm1, %v2288_v33  ;;  %v1255_v52 = vsel %vm698_vm1, %v1081_v54, 0.0  ;;  %v1544_v33 = vsub.f32 1.5, %v1543_v50  ;;  %v888_v50 = vsel %vm698_vm1, %v4639_v15, 0.0 }
 0x301   : > { %v4592_v5 = vpop.xlane.xlu0 %1241 }
 0x302   : > { %1256 = vadd.xlane.f32.xlu2 %v1255_v52  ;;  %v1545_v42 = vmul.f32 %v4594_v38, %v1544_v33 }
 0x304   : > { %v1128_v21 = vpop.xlane.xlu2 %1127  ;;  %v1549_v25 = vsel %vm4660_vm2, %v4594_v38, %v1545_v42  ;;  %v774_v38 = vsel %vm698_vm1, %v4643_v1, 0.0 }
 0x305   : > { %v1294_v41 = vmul.f32 %v1128_v21, %v3385_v58 }
 0x307   : > { %v1358_v8 = vadd.f32 1e-05, %v1294_v41  ;;  %v1298_v41 = vmul.f32 %v4556_v20, %v3385_v58  ;;  %v1555_v20 = vmul.f32 %v4597_v60, %v1554_v16  ;;  %v2064_v16 = vmul.f32 %v3618_v53, %v1549_v25  ;;  %v5716_v25 = vld [vmem:[#allocation21_spill] sm:$0xff] }
 0x308   : > { %2956 = vmatmul.msk.f32.gmra.mxu2 %vm698_vm1, %v2289_v11 }
 0x309   : > { %3051 = vrsqrt.f32 %v1358_v8  ;;  %v773_v7 = vpop.xlane.xlu0 %772  ;;  %vm1536_vm3 = vweird.f32 %v1358_v8 }
 0x30a   : > { %787 = vadd.xlane.f32.xlu2 %v786_v59  ;;  %v922_v27 = vmul.f32 %v3385_v58, %v773_v7  ;;  %3053 = vrsqrt.f32 %v4614_v47 }
 0x30c   : > { %v4621_v36 = vsub.f32 %v5706_v63, %v922_v27  ;;  %v854_v17 = vpop.xlane.xlu2 %853 }
 0x30d   : > { %v949_v40 = vmul.f32 %v3385_v58, %v854_v17 }
 0x30e   : > { %v1050_v0 = vmul.f32 %v4621_v36, %v4621_v36 }
 0x30f   : > { %v3052_v2 = vpop.eup %3051  ;;  %v4628_v24 = vsub.f32 %v5707_v44, %v949_v40 }
 0x310   : > { %v1531_v43 = vmul.f32 %v3052_v2, %v1358_v8  ;;  %v1162_v46 = vsel %vm698_vm1, %v1050_v0, 0.0  ;;  %v4635_v52 = vpop.eup %3053  ;;  %vm1537_vm13 = vweird.f32 %v3052_v2  ;;  %v4664_v0 = vadd.f32 1e-05, %v1298_v41  ;;  %v5713_v41 = vld [vmem:[#allocation26_spill] sm:$0xff] }
 0x311   : > { %v4631_v54 = vpop.xlane.xlu0 %1148  ;;  %v1077_v37 = vmul.f32 %v4628_v24, %v4628_v24  ;;  %v1881_v27 = vmul.f32 %v4635_v52, %v4614_v47  ;;  %vm1538_vm5 = vmor %vm1536_vm3, %vm1537_vm13  ;;  %vm1887_vm7 = vweird.f32 %v4635_v52 }
 0x312   : > { %v1532_v31 = vmul.f32 %v3052_v2, %v1531_v43  ;;  %1163 = vadd.xlane.f32.xlu2 %v1162_v46  ;;  %vm4763_vm10 = vmor %vm1886_vm9, %vm1887_vm7  ;;  %vm1576_vm4 = vweird.f32 %v4664_v0 }
 0x313   : > { %v1243_v21 = vsel %vm698_vm1, %v1077_v37, 0.0  ;;  %v1882_v46 = vmul.f32 %v4635_v52, %v1881_v27 }
 0x314   : > { %v1533_v11 = vmul.f32 0.5, %v1532_v31  ;;  %v1236_v28 = vpop.xlane.xlu1 %1235  ;;  %1244 = vadd.xlane.f32.xlu1 %v1243_v21  ;;  %v1230_v7 = vpop.xlane.xlu2 %1229 }
 0x315   : > { %v1330_v59 = vmul.f32 %v1236_v28, %v3385_v58  ;;  %v1328_v63 = vmul.f32 %v1230_v7, %v3385_v58  ;;  %v1883_v28 = vmul.f32 0.5, %v1882_v46  ;;  %v5714_v7 = vld [vmem:[#allocation30_spill] sm:$0xff] }
 0x316   : > { %v1534_v61 = vsub.f32 1.5, %v1533_v11 }
 0x317   : > { %v4656_v17 = vadd.f32 1e-05, %v1330_v59  ;;  %v4666_v44 = vadd.f32 1e-05, %v1328_v63 }
 0x318   : > { %v1535_v6 = vmul.f32 %v3052_v2, %v1534_v61 }
 0x319   : > { %3055 = vrsqrt.f32 %v4656_v17  ;;  %v875_v43 = vpop.xlane.xlu0 %874  ;;  %vm1876_vm0 = vweird.f32 %v4666_v44  ;;  %vm1896_vm13 = vweird.f32 %v4656_v17 }
 0x31a   : > { %v1539_v9 = vsel %vm1538_vm5, %v3052_v2, %v1535_v6  ;;  %3057 = vrsqrt.f32 %v4666_v44  ;;  %889 = vadd.xlane.f32.xlu2 %v888_v50  ;;  %v956_v8 = vmul.f32 %v3385_v58, %v875_v43  ;;  %v1559_v2 = vsel %vm4678_vm6, %v4597_v60, %v1555_v20  ;;  %v5715_v50 = vld [vmem:[#allocation27_spill] sm:$0xff] }
 0x31b   : > { %v2063_v33 = vmul.f32 %v3618_v53, %v1539_v9  ;;  %3059 = vrsqrt.f32 %v4664_v0  ;;  %v2065_v61 = vmul.f32 %v3618_v53, %v1559_v2  ;;  %v2128_v43 = vmul.f32 %v2064_v16, %v5716_v25 }
 0x31c   : > { %v4690_v37 = vsub.f32 %v4157_v10, %v956_v8  ;;  %v767_v31 = vpop.xlane.xlu1 %766  ;;  %775 = vadd.xlane.f32.xlu1 %v774_v38  ;;  %v761_v32 = vpop.xlane.xlu2 %760  ;;  %v1884_v38 = vsub.f32 1.5, %v1883_v28  ;;  %v1332_v16 = vmul.f32 %v4592_v5, %v3385_v58 }
 0x31d   : > { %v920_v21 = vmul.f32 %v3385_v58, %v767_v31  ;;  %v2127_v11 = vmul.f32 %v2063_v33, %v5713_v41  ;;  %v918_v42 = vmul.f32 %v3385_v58, %v761_v32  ;;  %v4726_v31 = vadd.f32 %v4531_v22, %v3246_v29  ;;  %v5717_v41 = vld [vmem:[#allocation18_spill] sm:$0xff] }
 0x31e   : > { %v1084_v60 = vmul.f32 %v4690_v37, %v4690_v37  ;;  %v1885_v25 = vmul.f32 %v4635_v52, %v1884_v38 }
 0x31f   : > { %v4698_v59 = vpop.eup %3055  ;;  %v4701_v10 = vsub.f32 %v5714_v7, %v920_v21  ;;  %v2192_v27 = vadd.f32 %v3625_v12, %v2127_v11  ;;  %v4710_v40 = vsub.f32 %v5715_v50, %v918_v42  ;;  %v2129_v11 = vmul.f32 %v2065_v61, %v5717_v41  ;;  %v4737_v42 = vld [vmem:[%s5607_s4] ss:$0 sm:$0xff] }
 0x320   : > { %v4705_v63 = vpop.eup %3057  ;;  %v1891_v20 = vmul.f32 %v4698_v59, %v4656_v17  ;;  %v1264_v6 = vsel %vm698_vm1, %v1084_v60, 0.0  ;;  %v2193_v7 = vadd.f32 %v3625_v12, %v2128_v43  ;;  %v1889_v47 = vsel %vm4763_vm10, %v4635_v52, %v1885_v25 }
 0x321   : > { %v1871_v46 = vmul.f32 %v4705_v63, %v4666_v44  ;;  %v4716_v9 = vpop.xlane.xlu0 %1250  ;;  %v2256_v8 = vmax.f32 %v2192_v27, 0.0  ;;  %v4718_v45 = vpop.eup %3059  ;;  %v1048_v33 = vmul.f32 %v4701_v10, %v4701_v10  ;;  %v1046_v2 = vmul.f32 %v4710_v40, %v4710_v40 }
 0x322   : > { %1265 = vadd.xlane.f32.xlu2 %v1264_v6  ;;  %v1892_v28 = vmul.f32 %v4698_v59, %v1891_v20  ;;  %v1571_v27 = vmul.f32 %v4718_v45, %v4664_v0  ;;  %vm1877_vm8 = vweird.f32 %v4705_v63  ;;  %v2194_v52 = vadd.f32 %v3625_v12, %v2129_v11 }
 0x323   : > { %v1872_v21 = vmul.f32 %v4705_v63, %v1871_v46  ;;  %2923 = vmatmul.msk.f32.gmra.mxu1 %vm698_vm1, %v2256_v8  ;;  %v2621_v32 = vpop.f32.mrf.mxu2  ;;  %v1156_v60 = vsel %vm698_vm1, %v1048_v33, 0.0  ;;  %v1150_v20 = vsel %vm698_vm1, %v1046_v2, 0.0  ;;  %v4750_v46 = vadd.f32 %v4584_v56, %v3246_v29  ;;  %vm1878_vm11 = vmor %vm1876_vm0, %vm1877_vm8 }
 0x324   : > { %v2622_v22 = vadd.f32 %v4737_v42, %v2621_v32  ;;  %v1143_v5 = vpop.xlane.xlu1 %1142  ;;  %1157 = vadd.xlane.f32.xlu0 %v1156_v60  ;;  %1151 = vadd.xlane.f32.xlu1 %v1150_v20  ;;  %v4755_v8 = vadd.f32 1e-05, %v1332_v16  ;;  %v1893_v38 = vmul.f32 0.5, %v1892_v28  ;;  %v2257_v32 = vmax.f32 %v2193_v7, 0.0 }
 0x325   : > { %v1873_v50 = vmul.f32 0.5, %v1872_v21  ;;  %v1299_v61 = vmul.f32 %v1143_v5, %v3385_v58  ;;  %v1137_v6 = vpop.xlane.xlu2 %1136  ;;  %v1572_v41 = vmul.f32 %v4718_v45, %v1571_v27  ;;  %v882_v60 = vsel %vm698_vm1, %v4750_v46, 0.0 }
 0x326   : > { %2750 = vst.msk [vmem:[%s3797_s19 + $0x100] sm:$0xff] %vm2717_vm15, %v2622_v22  ;;  %v1297_v43 = vmul.f32 %v1137_v6, %v3385_v58  ;;  %v876_v7 = vsel %vm698_vm1, %v4726_v31, 0.0  ;;  %v1894_v27 = vsub.f32 1.5, %v1893_v38  ;;  %vm1897_vm12 = vweird.f32 %v4698_v59 }
 0x327   : > { %v1874_v33 = vsub.f32 1.5, %v1873_v50  ;;  %v4758_v2 = vadd.f32 1e-05, %v1299_v61  ;;  %v1573_v25 = vmul.f32 0.5, %v1572_v41  ;;  %vm4829_vm14 = vmor %vm1896_vm13, %vm1897_vm12  ;;  %vm1577_vm2 = vweird.f32 %v4718_v45 }
 0x328   : > { %v4761_v21 = vadd.f32 1e-05, %v1297_v43  ;;  %vm4866_vm5 = vmor %vm1576_vm4, %vm1577_vm2  ;;  %vm1916_vm12 = vweird.f32 %v4755_v8 }
 0x329   : > { %v1875_v16 = vmul.f32 %v4705_v63, %v1874_v33  ;;  %3061 = vrsqrt.f32 %v4758_v2  ;;  %v782_v22 = vpop.xlane.xlu0 %781  ;;  %v2098_v33 = vmul.f32 %v3618_v53, %v1889_v47  ;;  %vm1586_vm9 = vweird.f32 %v4758_v2 }
 0x32a   : > { %3063 = vrsqrt.f32 %v4761_v21  ;;  %v925_v28 = vmul.f32 %v3385_v58, %v782_v22  ;;  %v2258_v22 = vmax.f32 %v2194_v52, 0.0  ;;  %vm1566_vm6 = vweird.f32 %v4761_v21 }
 0x32b   : > { %3065 = vrsqrt.f32 %v4755_v8  ;;  %v1879_v44 = vsel %vm1878_vm11, %v4705_v63, %v1875_v16  ;;  %2924 = vmatmul.msk.f32.gmra.mxu1 %vm698_vm1, %v2257_v32  ;;  %v2624_v5 = vpop.f32.mrf.mxu2 }
 0x32c   : > { %v4785_v50 = vsub.f32 %v4113_v35, %v925_v28  ;;  %v2625_v61 = vadd.f32 %v4737_v42, %v2624_v5  ;;  %v869_v20 = vpop.xlane.xlu1 %868  ;;  %v2097_v6 = vmul.f32 %v3618_v53, %v1879_v44  ;;  %883 = vadd.xlane.f32.xlu0 %v882_v60  ;;  %877 = vadd.xlane.f32.xlu1 %v876_v7  ;;  %v1574_v7 = vsub.f32 1.5, %v1573_v25 }
 0x32d   : > { %v954_v63 = vmul.f32 %v3385_v58, %v869_v20  ;;  %v863_v43 = vpop.xlane.xlu2 %862  ;;  %v1895_v28 = vmul.f32 %v4698_v59, %v1894_v27  ;;  %v5720_v27 = vld [vmem:[#allocation22_spill] sm:$0xff] }
 0x32e   : > { %2751 = vst.msk [vmem:[%s3797_s19 + $0x108] sm:$0xff] %vm2717_vm15, %v2625_v61  ;;  %v952_v11 = vmul.f32 %v3385_v58, %v863_v43  ;;  %v2546_v38 = vpop.f32.mrf.mxu1  ;;  %v1053_v35 = vmul.f32 %v4785_v50, %v4785_v50  ;;  %v2161_v32 = vmul.f32 %v2097_v6, %v4138_v14  ;;  %v2162_v61 = vmul.f32 %v2098_v33, %v5720_v27 }
 0x32f   : > { %v4797_v56 = vpop.eup %3061  ;;  %v4801_v41 = vsub.f32 %v4304_v26, %v954_v63  ;;  %v2547_v16 = vadd.f32 %v4737_v42, %v2546_v38  ;;  %v1899_v33 = vsel %vm4829_vm14, %v4698_v59, %v1895_v28  ;;  %v1575_v59 = vmul.f32 %v4718_v45, %v1574_v7 }
 0x330   : > { %v4804_v47 = vpop.eup %3063  ;;  %v1581_v60 = vmul.f32 %v4797_v56, %v4758_v2  ;;  %v4810_v44 = vsub.f32 %v4311_v18, %v952_v11  ;;  %v1171_v14 = vsel %vm698_vm1, %v1053_v35, 0.0  ;;  %v2226_v52 = vadd.f32 %v3625_v12, %v2161_v32 }
 0x331   : > { %v4813_v5 = vpop.eup %3065  ;;  %v1561_v26 = vmul.f32 %v4804_v47, %v4761_v21  ;;  %2725 = vst.msk [vmem:[%s3797_s19 + $0x38] sm:$0xff] %vm2717_vm15, %v2547_v16  ;;  %1172 = vadd.xlane.f32.xlu2 %v1171_v14  ;;  %v1082_v20 = vmul.f32 %v4801_v41, %v4801_v41  ;;  %v1301_v16 = vmul.f32 %v4631_v54, %v3385_v58  ;;  %vm1567_vm3 = vweird.f32 %v4804_v47 }
 0x332   : > { %v1582_v18 = vmul.f32 %v4797_v56, %v1581_v60  ;;  %v1080_v6 = vmul.f32 %v4810_v44, %v4810_v44  ;;  %v2290_v17 = vmax.f32 %v2226_v52, 0.0  ;;  %v1911_v32 = vmul.f32 %v4813_v5, %v4755_v8  ;;  %vm1568_vm7 = vmor %vm1566_vm6, %vm1567_vm3 }
 0x333   : > { %v1562_v63 = vmul.f32 %v4804_v47, %v1561_v26  ;;  %2925 = vmatmul.msk.f32.gmra.mxu1 %vm698_vm1, %v2258_v22  ;;  %v2627_v43 = vpop.f32.mrf.mxu2  ;;  %v1258_v38 = vsel %vm698_vm1, %v1082_v20, 0.0  ;;  %v2227_v14 = vadd.f32 %v3625_v12, %v2162_v61  ;;  %v2099_v20 = vmul.f32 %v3618_v53, %v1899_v33  ;;  %v5723_v61 = vld [vmem:[#allocation10_spill] sm:$0xff] }
 0x334   : > { %v2628_v11 = vadd.f32 %v4737_v42, %v2627_v43  ;;  %v1252_v35 = vsel %vm698_vm1, %v1080_v6, 0.0  ;;  %2957 = vmatmul.msk.f32.gmra.mxu2 %vm698_vm1, %v2290_v17  ;;  %1259 = vadd.xlane.f32.xlu0 %v1258_v38  ;;  %v1583_v28 = vmul.f32 0.5, %v1582_v18  ;;  %v4857_v7 = vadd.f32 %v5723_v61, %v3246_v29  ;;  %v5724_v18 = vld [vmem:[#allocation12_spill] sm:$0xff] }
 0x335   : > { %v1563_v22 = vmul.f32 0.5, %v1562_v63  ;;  %v1239_v60 = vpop.xlane.xlu2 %1238  ;;  %1253 = vadd.xlane.f32.xlu1 %v1252_v35  ;;  %v4861_v6 = vadd.f32 %v5724_v18, %v3246_v29  ;;  %v1912_v43 = vmul.f32 %v4813_v5, %v1911_v32  ;;  %v4871_v17 = vadd.f32 1e-05, %v1301_v16  ;;  %v5727_v16 = vld [vmem:[#allocation32_spill] sm:$0xff] }
 0x336   : > { %2752 = vst.msk [vmem:[%s3797_s19 + $0x110] sm:$0xff] %vm2717_vm15, %v2628_v11  ;;  %v1331_v26 = vmul.f32 %v1239_v60, %v3385_v58  ;;  %v2549_v52 = vpop.f32.mrf.mxu1  ;;  %v1579_v0 = vsel %vm4866_vm5, %v4718_v45, %v1575_v59  ;;  %v1584_v11 = vsub.f32 1.5, %v1583_v28  ;;  %v2291_v32 = vmax.f32 %v2227_v14, 0.0 }
 0x337   : > { %v1564_v54 = vsub.f32 1.5, %v1563_v22  ;;  %v2550_v27 = vadd.f32 %v4737_v42, %v2549_v52  ;;  %v2163_v22 = vmul.f32 %v2099_v20, %v5727_v16  ;;  %v789_v60 = vsel %vm698_vm1, %v4861_v6, 0.0 }
 0x338   : > { %v4864_v25 = vadd.f32 1e-05, %v1331_v26  ;;  %v1913_v59 = vmul.f32 0.5, %v1912_v43  ;;  %v2067_v14 = vmul.f32 %v3618_v53, %v1579_v0  ;;  %v1585_v26 = vmul.f32 %v4797_v56, %v1584_v11 }
 0x339   : > { %v1565_v33 = vmul.f32 %v4804_v47, %v1564_v54  ;;  %2726 = vst.msk [vmem:[%s3797_s19 + $0x40] sm:$0xff] %vm2717_vm15, %v2550_v27  ;;  %vm1587_vm8 = vweird.f32 %v4797_v56  ;;  %v2228_v61 = vadd.f32 %v3625_v12, %v2163_v22  ;;  %vm1917_vm0 = vweird.f32 %v4813_v5 }
 0x33a   : > { %3067 = vrsqrt.f32 %v4864_v25  ;;  %vm4907_vm10 = vmor %vm1586_vm9, %vm1587_vm8  ;;  %vm1906_vm14 = vweird.f32 %v4864_v25  ;;  %vm1606_vm5 = vweird.f32 %v4871_v17 }
 0x33b   : > { %v1569_v38 = vsel %vm1568_vm7, %v4804_v47, %v1565_v33  ;;  %v2630_v35 = vpop.f32.mrf.mxu2  ;;  %3069 = vrsqrt.f32 %v4871_v17  ;;  %v783_v47 = vsel %vm698_vm1, %v4857_v7, 0.0  ;;  %v1589_v2 = vsel %vm4907_vm10, %v4797_v56, %v1585_v26  ;;  %vm4940_vm13 = vmor %vm1916_vm12, %vm1917_vm0 }
 0x33c   : > { %v2631_v21 = vadd.f32 %v4737_v42, %v2630_v35  ;;  %v2066_v45 = vmul.f32 %v3618_v53, %v1569_v38  ;;  %2958 = vmatmul.msk.f32.gmra.mxu2 %vm698_vm1, %v2291_v32  ;;  %790 = vadd.xlane.f32.xlu0 %v789_v60  ;;  %v1914_v38 = vsub.f32 1.5, %v1913_v59 }
 0x33d   : > { %v770_v28 = vpop.xlane.xlu2 %769  ;;  %784 = vadd.xlane.f32.xlu1 %v783_v47  ;;  %v2068_v47 = vmul.f32 %v3618_v53, %v1589_v2 }
 0x33e   : > { %2753 = vst.msk [vmem:[%s3797_s19 + $0x118] sm:$0xff] %vm2717_vm15, %v2631_v21  ;;  %v921_v52 = vmul.f32 %v3385_v58, %v770_v28  ;;  %v2552_v54 = vpop.f32.mrf.mxu1  ;;  %v2130_v27 = vmul.f32 %v2066_v45, %v4254_v51  ;;  %v5730_v51 = vld [vmem:[#allocation23_spill] sm:$0xff]  ;;  %v2292_v21 = vmax.f32 %v2228_v61, 0.0  ;;  %v1915_v28 = vmul.f32 %v4813_v5, %v1914_v38 }
 0x33f   : > { %v2553_v20 = vadd.f32 %v4737_v42, %v2552_v54  ;;  %v2131_v11 = vmul.f32 %v2067_v14, %v5730_v51  ;;  %v2132_v33 = vmul.f32 %v2068_v47, %v4251_v48 }
 0x340   : > { %v3068_v18 = vpop.eup %3067  ;;  %v4904_v63 = vsub.f32 %v4399_v49, %v921_v52  ;;  %v2195_v43 = vadd.f32 %v3625_v12, %v2130_v27  ;;  %v4935_v52 = vadd.f32 %v4608_v3, %v3246_v29  ;;  %v1919_v3 = vsel %vm4940_vm13, %v4813_v5, %v1915_v28 }
 0x341   : > { %v1901_v0 = vmul.f32 %v3068_v18, %v4864_v25  ;;  %2727 = vst.msk [vmem:[%s3797_s19 + $0x48] sm:$0xff] %vm2717_vm15, %v2553_v20  ;;  %v4920_v32 = vpop.eup %3069  ;;  %v2196_v26 = vadd.f32 %v3625_v12, %v2131_v11  ;;  %vm1907_vm11 = vweird.f32 %v3068_v18  ;;  %v2197_v5 = vadd.f32 %v3625_v12, %v2132_v33 }
 0x342   : > { %v2259_v49 = vmax.f32 %v2195_v43, 0.0  ;;  %v1049_v35 = vmul.f32 %v4904_v63, %v4904_v63  ;;  %v1601_v54 = vmul.f32 %v4920_v32, %v4871_v17  ;;  %vm1908_vm2 = vmor %vm1906_vm14, %vm1907_vm11  ;;  %v885_v38 = vsel %vm698_vm1, %v4935_v52, 0.0 }
 0x343   : > { %v1902_v16 = vmul.f32 %v3068_v18, %v1901_v0  ;;  %v2633_v22 = vpop.f32.mrf.mxu2  ;;  %v2260_v0 = vmax.f32 %v2196_v26, 0.0  ;;  %v2261_v47 = vmax.f32 %v2197_v5, 0.0  ;;  %v5733_v26 = vld [vmem:[#allocation25_spill] sm:$0xff]  ;;  %vm1607_vm3 = vweird.f32 %v4920_v32 }
 0x344   : > { %2926 = vmatmul.msk.f32.gmra.mxu1 %vm698_vm1, %v2259_v49  ;;  %v2634_v60 = vadd.f32 %v4737_v42, %v2633_v22  ;;  %v1159_v45 = vsel %vm698_vm1, %v1049_v35, 0.0  ;;  %2959 = vmatmul.msk.f32.gmra.mxu2 %vm698_vm1, %v2292_v21  ;;  %v1602_v8 = vmul.f32 %v4920_v32, %v1601_v54  ;;  %v2101_v35 = vmul.f32 %v3618_v53, %v1919_v3  ;;  %vm1608_vm6 = vmor %vm1606_vm5, %vm1607_vm3 }
 0x345   : > { %v1903_v59 = vmul.f32 0.5, %v1902_v16  ;;  %v1146_v56 = vpop.xlane.xlu2 %1145  ;;  %1160 = vadd.xlane.f32.xlu1 %v1159_v45 }
 0x346   : > { %2754 = vst.msk [vmem:[%s3797_s19 + $0x120] sm:$0xff] %vm2717_vm15, %v2634_v60  ;;  %v1300_v14 = vmul.f32 %v1146_v56, %v3385_v58  ;;  %v1603_v21 = vmul.f32 0.5, %v1602_v8  ;;  %v2165_v54 = vmul.f32 %v2101_v35, %v5733_v26 }
 0x347   : > { %v1904_v27 = vsub.f32 1.5, %v1903_v59 }
 0x348   : > { %v1364_v20 = vadd.f32 1e-05, %v1300_v14  ;;  %v2230_v8 = vadd.f32 %v3625_v12, %v2165_v54 }
 0x349   : > { %v1905_v43 = vmul.f32 %v3068_v18, %v1904_v27  ;;  %v1604_v27 = vsub.f32 1.5, %v1603_v21 }
 0x34a   : > { %3071 = vrsqrt.f32 %v1364_v20  ;;  %vm1596_vm7 = vweird.f32 %v1364_v20 }
 0x34b   : > { %v1909_v51 = vsel %vm1908_vm2, %v3068_v18, %v1905_v43  ;;  %v2636_v11 = vpop.f32.mrf.mxu2 }
 0x34c   : > { %2927 = vmatmul.msk.f32.gmra.mxu1 %vm698_vm1, %v2260_v0  ;;  %v2637_v48 = vadd.f32 %v4737_v42, %v2636_v11  ;;  %v2100_v25 = vmul.f32 %v3618_v53, %v1909_v51  ;;  %v1605_v51 = vmul.f32 %v4920_v32, %v1604_v27 }
 0x34d   : > { %v872_v2 = vpop.xlane.xlu2 %871  ;;  %v2555_v49 = vpop.f32.mrf.mxu1  ;;  %886 = vadd.xlane.f32.xlu1 %v885_v38  ;;  %v5734_v38 = vld [vmem:[#allocation13_spill] sm:$0xff] }
 0x34e   : > { %2755 = vst.msk [vmem:[%s3797_s19 + $0x128] sm:$0xff] %vm2717_vm15, %v2637_v48  ;;  %v955_v18 = vmul.f32 %v3385_v58, %v872_v2  ;;  %v2556_v16 = vadd.f32 %v4737_v42, %v2555_v49  ;;  %v2164_v22 = vmul.f32 %v2100_v25, %v4354_v4  ;;  %v4986_v48 = vadd.f32 %v5734_v38, %v3246_v29 }
 0x34f   : > { %v2294_v2 = vmax.f32 %v2230_v8, 0.0  ;;  %v1609_v49 = vsel %vm1608_vm6, %v4920_v32, %v1605_v51 }
 0x350   : > { %v3072_v60 = vpop.eup %3071  ;;  %v4963_v45 = vsub.f32 %v4473_v39, %v955_v18  ;;  %2728 = vst.msk [vmem:[%s3797_s19 + $0x50] sm:$0xff] %vm2717_vm15, %v2556_v16  ;;  %v2229_v59 = vadd.f32 %v3625_v12, %v2164_v22  ;;  %v792_v29 = vsel %vm698_vm1, %v4986_v48, 0.0  ;;  %v2070_v32 = vmul.f32 %v3618_v53, %v1609_v49 }
 0x351   : > { %v1591_v56 = vmul.f32 %v3072_v60, %v1364_v20  ;;  %vm1597_vm4 = vweird.f32 %v3072_v60 }
 0x352   : > { %v2293_v28 = vmax.f32 %v2229_v59, 0.0  ;;  %v1083_v14 = vmul.f32 %v4963_v45, %v4963_v45  ;;  %vm1598_vm8 = vmor %vm1596_vm7, %vm1597_vm4 }
 0x353   : > { %v1592_v4 = vmul.f32 %v3072_v60, %v1591_v56  ;;  %v2639_v61 = vpop.f32.mrf.mxu2 }
 0x354   : > { %2928 = vmatmul.msk.f32.gmra.mxu1 %vm698_vm1, %v2261_v47  ;;  %v2640_v39 = vadd.f32 %v4737_v42, %v2639_v61  ;;  %2960 = vmatmul.msk.f32.gmra.mxu2 %vm698_vm1, %v2293_v28  ;;  %v1261_v43 = vsel %vm698_vm1, %v1083_v14, 0.0 }
 0x355   : > { %v1593_v33 = vmul.f32 0.5, %v1592_v4  ;;  %v2558_v3 = vpop.f32.mrf.mxu1  ;;  %1262 = vadd.xlane.f32.xlu1 %v1261_v43  ;;  %v1248_v22 = vpop.xlane.xlu2 %1247 }
 0x356   : > { %2756 = vst.msk [vmem:[%s3797_s19 + $0x130] sm:$0xff] %vm2717_vm15, %v2640_v39  ;;  %v2559_v0 = vadd.f32 %v4737_v42, %v2558_v3  ;;  %v1334_v39 = vmul.f32 %v1248_v22, %v3385_v58 }
 0x357   : > { %v1594_v11 = vsub.f32 1.5, %v1593_v33 }
 0x358   : > { %2729 = vst.msk [vmem:[%s3797_s19 + $0x58] sm:$0xff] %vm2717_vm15, %v2559_v0  ;;  %v1398_v43 = vadd.f32 1e-05, %v1334_v39  ;;  %v1335_v0 = vmul.f32 %v4716_v9, %v3385_v58 }
 0x359   : > { %v1595_v25 = vmul.f32 %v3072_v60, %v1594_v11 }
 0x35a   : > { %3073 = vrsqrt.f32 %v1398_v43  ;;  %v5018_v51 = vadd.f32 1e-05, %v1335_v0  ;;  %vm1936_vm0 = vweird.f32 %v1398_v43 }
 0x35b   : > { %v1599_v5 = vsel %vm1598_vm8, %v3072_v60, %v1595_v25  ;;  %v2642_v35 = vpop.f32.mrf.mxu2  ;;  %v5735_v60 = vld [vmem:[#allocation31_spill] sm:$0xff] }
 0x35c   : > { %v2643_v18 = vadd.f32 %v4737_v42, %v2642_v35  ;;  %2961 = vmatmul.msk.f32.gmra.mxu2 %vm698_vm1, %v2294_v2  ;;  %v2069_v17 = vmul.f32 %v3618_v53, %v1599_v5  ;;  %v2134_v59 = vmul.f32 %v2070_v32, %v5735_v60  ;;  %3075 = vrsqrt.f32 %v5018_v51 }
 0x35d   : > { %793 = vadd.xlane.f32.xlu1 %v792_v29  ;;  %v779_v14 = vpop.xlane.xlu2 %778  ;;  %vm1946_vm14 = vweird.f32 %v5018_v51 }
 0x35e   : > { %2757 = vst.msk [vmem:[%s3797_s19 + $0x138] sm:$0xff] %vm2717_vm15, %v2643_v18  ;;  %v2133_v20 = vmul.f32 %v2069_v17, %v4443_v55  ;;  %v2199_v28 = vadd.f32 %v3625_v12, %v2134_v59 }
 0x360   : > { %v2198_v16 = vadd.f32 %v3625_v12, %v2133_v20  ;;  %v2263_v55 = vmax.f32 %v2199_v28, 0.0  ;;  %v5021_v25 = vpop.eup %3073 }
 0x361   : > { %v1931_v9 = vmul.f32 %v5021_v25, %v1398_v43  ;;  %vm1937_vm9 = vweird.f32 %v5021_v25 }
 0x362   : > { %v2262_v21 = vmax.f32 %v2198_v16, 0.0  ;;  %v5031_v20 = vpop.eup %3075  ;;  %vm5064_vm11 = vmor %vm1936_vm0, %vm1937_vm9 }
 0x363   : > { %v2645_v56 = vpop.f32.mrf.mxu2  ;;  %v1932_v32 = vmul.f32 %v5021_v25, %v1931_v9  ;;  %v1941_v22 = vmul.f32 %v5031_v20, %v5018_v51  ;;  %vm1947_vm2 = vweird.f32 %v5031_v20 }
 0x364   : > { %2929 = vmatmul.msk.f32.gmra.mxu1 %vm698_vm1, %v2262_v21  ;;  %v2646_v47 = vadd.f32 %v4737_v42, %v2645_v56  ;;  %vm5095_vm3 = vmor %vm1946_vm14, %vm1947_vm2 }
 0x365   : > { %v1155_v61 = vpop.xlane.xlu2 %1154  ;;  %v1933_v60 = vmul.f32 0.5, %v1932_v32 }
 0x366   : > { %2758 = vst.msk [vmem:[%s3797_s19 + $0x140] sm:$0xff] %vm2717_vm15, %v2646_v47  ;;  %v1303_v2 = vmul.f32 %v1155_v61, %v3385_v58  ;;  %v924_v47 = vmul.f32 %v3385_v58, %v779_v14 }
 0x368   : > { %v5029_v17 = vadd.f32 1e-05, %v1303_v2 }
 0x36a   : > { %vm1626_vm5 = vweird.f32 %v5029_v17 }
 0x36b   : > { %v2648_v26 = vpop.f32.mrf.mxu2 }
 0x36c   : > { %2930 = vmatmul.msk.f32.gmra.mxu1 %vm698_vm1, %v2263_v55  ;;  %v2649_v54 = vadd.f32 %v4737_v42, %v2648_v26  ;;  %v1942_v55 = vmul.f32 %v5031_v20, %v1941_v22 }
 0x36d   : > { %v881_v8 = vpop.xlane.xlu2 %880 }
 0x36e   : > { %2759 = vst.msk [vmem:[%s3797_s19 + $0x148] sm:$0xff] %vm2717_vm15, %v2649_v54  ;;  %v1943_v14 = vmul.f32 0.5, %v1942_v55 }
 0x373   : > { %v2651_v27 = vpop.f32.mrf.mxu2 }
 0x374   : > { %v2652_v4 = vadd.f32 %v4737_v42, %v2651_v27  ;;  %v1934_v27 = vsub.f32 1.5, %v1933_v60 }
 0x375   : > { %v1257_v35 = vpop.xlane.xlu2 %1256 }
 0x376   : > { %2760 = vst.msk [vmem:[%s3797_s19 + $0x150] sm:$0xff] %vm2717_vm15, %v2652_v4 }
 0x37b   : > { %v2654_v33 = vpop.f32.mrf.mxu2 }
 0x37c   : > { %v2655_v3 = vadd.f32 %v4737_v42, %v2654_v33  ;;  %v5051_v33 = vsub.f32 %v4528_v13, %v924_v47 }
 0x37d   : > { %v788_v26 = vpop.xlane.xlu2 %787 }
 0x37e   : > { %2761 = vst.msk [vmem:[%s3797_s19 + $0x158] sm:$0xff] %vm2717_vm15, %v2655_v3  ;;  %v1052_v32 = vmul.f32 %v5051_v33, %v5051_v33 }
 0x383   : > { %v2657_v11 = vpop.f32.mrf.mxu2 }
 0x384   : > { %v2658_v38 = vadd.f32 %v4737_v42, %v2657_v11 }
 0x385   : > { %v1164_v47 = vpop.xlane.xlu2 %1163 }
 0x386   : > { %2762 = vst.msk [vmem:[%s3797_s19 + $0x160] sm:$0xff] %vm2717_vm15, %v2658_v38  ;;  %v1337_v38 = vmul.f32 %v1257_v35, %v3385_v58 }
 0x387   : > { %v1245_v49 = vpop.xlane.xlu1 %1244 }
 0x388   : > { %v1333_v5 = vmul.f32 %v1245_v49, %v3385_v58  ;;  %v5074_v60 = vadd.f32 1e-05, %v1337_v38 }
 0x38a   : > { %v1397_v18 = vadd.f32 1e-05, %v1333_v5  ;;  %v958_v5 = vmul.f32 %v3385_v58, %v881_v8  ;;  %vm1966_vm14 = vweird.f32 %v5074_v60 }
 0x38b   : > { %v2660_v29 = vpop.f32.mrf.mxu2 }
 0x38c   : > { %3077 = vrsqrt.f32 %v1397_v18  ;;  %v2661_v16 = vadd.f32 %v4737_v42, %v2660_v29  ;;  %vm1926_vm12 = vweird.f32 %v1397_v18 }
 0x38d   : > { %3079 = vrsqrt.f32 %v5029_v17 }
 0x38e   : > { %2763 = vst.msk [vmem:[%s3797_s19 + $0x168] sm:$0xff] %vm2717_vm15, %v2661_v16  ;;  %v1944_v16 = vsub.f32 1.5, %v1943_v14  ;;  %v927_v14 = vmul.f32 %v3385_v58, %v788_v26 }
 0x38f   : > { %v776_v21 = vpop.xlane.xlu1 %775 }
 0x390   : > { %v923_v59 = vmul.f32 %v3385_v58, %v776_v21 }
 0x392   : > { %v3078_v56 = vpop.eup %3077  ;;  %v5043_v28 = vsub.f32 %v4643_v1, %v923_v59  ;;  %v1935_v1 = vmul.f32 %v5021_v25, %v1934_v27  ;;  %v1945_v27 = vmul.f32 %v5031_v20, %v1944_v16 }
 0x393   : > { %v1921_v54 = vmul.f32 %v3078_v56, %v1397_v18  ;;  %v5048_v61 = vpop.eup %3079  ;;  %vm1927_vm10 = vweird.f32 %v3078_v56  ;;  %v5081_v18 = vsub.f32 %v4562_v57, %v958_v5 }
 0x394   : > { %v1051_v4 = vmul.f32 %v5043_v28, %v5043_v28  ;;  %v1621_v11 = vmul.f32 %v5048_v61, %v5029_v17  ;;  %v1939_v43 = vsel %vm5064_vm11, %v5021_v25, %v1935_v1  ;;  %vm1928_vm13 = vmor %vm1926_vm12, %vm1927_vm10  ;;  %vm1627_vm4 = vweird.f32 %v5048_v61 }
 0x395   : > { %v1922_v39 = vmul.f32 %v3078_v56, %v1921_v54  ;;  %v1168_v54 = vsel %vm698_vm1, %v1052_v32, 0.0  ;;  %vm5157_vm7 = vmor %vm1626_vm5, %vm1627_vm4 }
 0x396   : > { %v1165_v3 = vsel %vm698_vm1, %v1051_v4, 0.0  ;;  %v1622_v8 = vmul.f32 %v5048_v61, %v1621_v11 }
 0x397   : > { %v1923_v0 = vmul.f32 0.5, %v1922_v39  ;;  %1166 = vadd.xlane.f32.xlu0 %v1165_v3  ;;  %v1158_v2 = vpop.xlane.xlu0 %1157  ;;  %v1152_v9 = vpop.xlane.xlu1 %1151 }
 0x398   : > { %v1304_v13 = vmul.f32 %v1158_v2, %v3385_v58  ;;  %v1302_v29 = vmul.f32 %v1152_v9, %v3385_v58  ;;  %v1623_v4 = vmul.f32 0.5, %v1622_v8 }
 0x399   : > { %v1924_v49 = vsub.f32 1.5, %v1923_v0 }
 0x39a   : > { %v5068_v21 = vadd.f32 1e-05, %v1304_v13  ;;  %v5077_v59 = vadd.f32 1e-05, %v1302_v29  ;;  %v1624_v29 = vsub.f32 1.5, %v1623_v4 }
 0x39b   : > { %v1925_v35 = vmul.f32 %v3078_v56, %v1924_v49  ;;  %v1086_v49 = vmul.f32 %v5081_v18, %v5081_v18 }
 0x39c   : > { %3081 = vrsqrt.f32 %v5068_v21  ;;  %vm1616_vm8 = vweird.f32 %v5077_v59  ;;  %vm1636_vm0 = vweird.f32 %v5068_v21 }
 0x39d   : > { %v1929_v55 = vsel %vm1928_vm13, %v3078_v56, %v1925_v35  ;;  %3083 = vrsqrt.f32 %v5077_v59  ;;  %v2103_v56 = vmul.f32 %v3618_v53, %v1939_v43  ;;  %v5122_v35 = vsub.f32 %v4601_v62, %v927_v14 }
 0x39e   : > { %v2102_v25 = vmul.f32 %v3618_v53, %v1929_v55  ;;  %3085 = vrsqrt.f32 %v5074_v60  ;;  %v1270_v8 = vsel %vm698_vm1, %v1086_v49, 0.0  ;;  %v890_v55 = vpop.xlane.xlu2 %889 }
 0x39f   : > { %1169 = vadd.xlane.f32.xlu0 %v1168_v54  ;;  %v884_v57 = vpop.xlane.xlu0 %883  ;;  %v878_v0 = vpop.xlane.xlu1 %877  ;;  %v2167_v13 = vmul.f32 %v2103_v56, %v4507_v30  ;;  %v961_v11 = vmul.f32 %v3385_v58, %v890_v55 }
 0x3a0   : > { %v2561_v39 = vpop.f32.mrf.mxu1  ;;  %v2166_v3 = vmul.f32 %v2102_v25, %v4628_v24  ;;  %v959_v1 = vmul.f32 %v3385_v58, %v884_v57  ;;  %v957_v38 = vmul.f32 %v3385_v58, %v878_v0  ;;  %v1949_v24 = vsel %vm5095_vm3, %v5031_v20, %v1945_v27 }
 0x3a1   : > { %v2562_v51 = vadd.f32 %v4737_v42, %v2561_v39  ;;  %v2232_v54 = vadd.f32 %v3625_v12, %v2167_v13  ;;  %v2104_v25 = vmul.f32 %v3618_v53, %v1949_v24  ;;  %v1625_v27 = vmul.f32 %v5048_v61, %v1624_v29 }
 0x3a2   : > { %v2231_v2 = vadd.f32 %v3625_v12, %v2166_v3  ;;  %v5103_v9 = vpop.eup %3081  ;;  %v5109_v26 = vsub.f32 %v4750_v46, %v959_v1  ;;  %v5119_v16 = vsub.f32 %v4726_v31, %v957_v38  ;;  %v1306_v46 = vmul.f32 %v1164_v47, %v3385_v58 }
 0x3a3   : > { %2730 = vst.msk [vmem:[%s3797_s19 + $0x60] sm:$0xff] %vm2717_vm15, %v2562_v51  ;;  %v5114_v5 = vpop.eup %3083  ;;  %v1631_v32 = vmul.f32 %v5103_v9, %v5068_v21  ;;  %v1055_v51 = vmul.f32 %v5122_v35, %v5122_v35  ;;  %v1629_v17 = vsel %vm5157_vm7, %v5048_v61, %v1625_v27  ;;  %vm1637_vm10 = vweird.f32 %v5103_v9 }
 0x3a4   : > { %v2295_v22 = vmax.f32 %v2231_v2, 0.0  ;;  %v1611_v20 = vmul.f32 %v5114_v5, %v5077_v59  ;;  %v5127_v43 = vpop.eup %3085  ;;  %v1085_v30 = vmul.f32 %v5119_v16, %v5119_v16  ;;  %v1087_v31 = vmul.f32 %v5109_v26, %v5109_v26  ;;  %vm5212_vm11 = vmor %vm1636_vm0, %vm1637_vm10 }
 0x3a5   : > { %v1632_v47 = vmul.f32 %v5103_v9, %v1631_v32  ;;  %v1961_v3 = vmul.f32 %v5127_v43, %v5074_v60  ;;  %v5145_v14 = vadd.f32 1e-05, %v1306_v46  ;;  %vm1617_vm6 = vweird.f32 %v5114_v5 }
 0x3a6   : > { %2962 = vmatmul.msk.f32.gmra.mxu2 %vm698_vm1, %v2295_v22  ;;  %v1612_v62 = vmul.f32 %v5114_v5, %v1611_v20  ;;  %v1267_v56 = vsel %vm698_vm1, %v1085_v30, 0.0  ;;  %v1273_v4 = vsel %vm698_vm1, %v1087_v31, 0.0  ;;  %v2296_v46 = vmax.f32 %v2232_v54, 0.0  ;;  %vm1618_vm9 = vmor %vm1616_vm8, %vm1617_vm6  ;;  %v1266_v29 = vpop.xlane.xlu2 %1265 }
 0x3a7   : > { %1271 = vadd.xlane.f32.xlu0 %v1270_v8  ;;  %v1260_v57 = vpop.xlane.xlu0 %1259  ;;  %1268 = vadd.xlane.f32.xlu1 %v1267_v56  ;;  %v1633_v13 = vmul.f32 0.5, %v1632_v47  ;;  %v2168_v20 = vmul.f32 %v2104_v25, %v4181_v34  ;;  %3087 = vrsqrt.f32 %v5145_v14  ;;  %v1962_v8 = vmul.f32 %v5127_v43, %v1961_v3 }
 0x3a8   : > { %v2564_v39 = vpop.f32.mrf.mxu1  ;;  %v1613_v0 = vmul.f32 0.5, %v1612_v62  ;;  %v1254_v1 = vpop.xlane.xlu1 %1253  ;;  %1274 = vadd.xlane.f32.xlu2 %v1273_v4  ;;  %v1338_v2 = vmul.f32 %v1260_v57, %v3385_v58  ;;  %v5176_v31 = vsub.f32 %v4639_v15, %v961_v11  ;;  %v1177_v34 = vsel %vm698_vm1, %v1055_v51, 0.0 }
 0x3a9   : > { %v1336_v38 = vmul.f32 %v1254_v1, %v3385_v58  ;;  %v2565_v49 = vadd.f32 %v4737_v42, %v2564_v39  ;;  %v1634_v55 = vsub.f32 1.5, %v1633_v13  ;;  %v2233_v15 = vadd.f32 %v3625_v12, %v2168_v20 }
 0x3aa   : > { %v1614_v24 = vsub.f32 1.5, %v1613_v0  ;;  %v5163_v22 = vadd.f32 1e-05, %v1338_v2  ;;  %v2072_v54 = vmul.f32 %v3618_v53, %v1629_v17  ;;  %v1963_v4 = vmul.f32 0.5, %v1962_v8 }
 0x3ab   : > { %v5161_v32 = vadd.f32 1e-05, %v1336_v38  ;;  %2731 = vst.msk [vmem:[%s3797_s19 + $0x68] sm:$0xff] %vm2717_vm15, %v2565_v49  ;;  %v1089_v39 = vmul.f32 %v5176_v31, %v5176_v31  ;;  %v1635_v0 = vmul.f32 %v5103_v9, %v1634_v55  ;;  %v2297_v38 = vmax.f32 %v2233_v15, 0.0 }
 0x3ac   : > { %v1615_v30 = vmul.f32 %v5114_v5, %v1614_v24  ;;  %v2136_v2 = vmul.f32 %v2072_v54, %v4545_v23  ;;  %v1964_v13 = vsub.f32 1.5, %v1963_v4  ;;  %vm1967_vm12 = vweird.f32 %v5127_v43 }
 0x3ad   : > { %3089 = vrsqrt.f32 %v5161_v32  ;;  %v5192_v3 = vpop.eup %3087  ;;  %v1279_v23 = vsel %vm698_vm1, %v1089_v39, 0.0  ;;  %v1639_v21 = vsel %vm5212_vm11, %v5103_v9, %v1635_v0  ;;  %v1340_v9 = vmul.f32 %v1266_v29, %v3385_v58  ;;  %vm5243_vm2 = vmor %vm1966_vm14, %vm1967_vm12 }
 0x3ae   : > { %2963 = vmatmul.msk.f32.gmra.mxu2 %vm698_vm1, %v2296_v46  ;;  %v1619_v61 = vsel %vm1618_vm9, %v5114_v5, %v1615_v30  ;;  %3091 = vrsqrt.f32 %v5163_v22  ;;  %vm1956_vm3 = vweird.f32 %v5161_v32  ;;  %vm1976_vm6 = vweird.f32 %v5163_v22 }
 0x3af   : > { %1178 = vadd.xlane.f32.xlu0 %v1177_v34  ;;  %v791_v62 = vpop.xlane.xlu0 %790  ;;  %v2071_v47 = vmul.f32 %v3618_v53, %v1619_v61  ;;  %v1651_v34 = vmul.f32 %v5192_v3, %v5145_v14  ;;  %vm1657_vm8 = vweird.f32 %v5192_v3  ;;  %vm1656_vm10 = vweird.f32 %v5145_v14 }
 0x3b0   : > { %v2567_v59 = vpop.f32.mrf.mxu1  ;;  %v785_v25 = vpop.xlane.xlu1 %784  ;;  %v928_v27 = vmul.f32 %v3385_v58, %v791_v62  ;;  %v2201_v62 = vadd.f32 %v3625_v12, %v2136_v2  ;;  %vm1658_vm0 = vmor %vm1656_vm10, %vm1657_vm8 }
 0x3b1   : > { %v2568_v56 = vadd.f32 %v4737_v42, %v2567_v59  ;;  %v926_v5 = vmul.f32 %v3385_v58, %v785_v25  ;;  %v2135_v57 = vmul.f32 %v2071_v47, %v4710_v40  ;;  %v1965_v25 = vmul.f32 %v5127_v43, %v1964_v13 }
 0x3b2   : > { %v5197_v1 = vsub.f32 %v4861_v6, %v928_v27  ;;  %v1652_v0 = vmul.f32 %v5192_v3, %v1651_v34  ;;  %v2265_v60 = vmax.f32 %v2201_v62, 0.0 }
 0x3b3   : > { %2732 = vst.msk [vmem:[%s3797_s19 + $0x70] sm:$0xff] %vm2717_vm15, %v2568_v56  ;;  %v3090_v51 = vpop.eup %3089  ;;  %v5202_v11 = vsub.f32 %v4857_v7, %v926_v5  ;;  %v2200_v40 = vadd.f32 %v3625_v12, %v2135_v57  ;;  %v2073_v56 = vmul.f32 %v3618_v53, %v1639_v21  ;;  %v1969_v2 = vsel %vm5243_vm2, %v5127_v43, %v1965_v25 }
 0x3b4   : > { %v5206_v49 = vpop.eup %3091  ;;  %v1951_v24 = vmul.f32 %v3090_v51, %v5161_v32  ;;  %v1056_v6 = vmul.f32 %v5197_v1, %v5197_v1  ;;  %vm1957_vm13 = vweird.f32 %v3090_v51  ;;  %v1653_v32 = vmul.f32 0.5, %v1652_v0 }
 0x3b5   : > { %v1971_v7 = vmul.f32 %v5206_v49, %v5163_v22  ;;  %v2264_v20 = vmax.f32 %v2200_v40, 0.0  ;;  %v1054_v30 = vmul.f32 %v5202_v11, %v5202_v11  ;;  %v5248_v40 = vadd.f32 1e-05, %v1340_v9  ;;  %vm1958_vm4 = vmor %vm1956_vm3, %vm1957_vm13 }
 0x3b6   : > { %2964 = vmatmul.msk.f32.gmra.mxu2 %vm698_vm1, %v2297_v38  ;;  %v1952_v17 = vmul.f32 %v3090_v51, %v1951_v24  ;;  %v1180_v8 = vsel %vm698_vm1, %v1056_v6, 0.0  ;;  %v2137_v24 = vmul.f32 %v2073_v56, %v4701_v10  ;;  %vm1977_vm5 = vweird.f32 %v5206_v49 }
 0x3b7   : > { %1280 = vadd.xlane.f32.xlu0 %v1279_v23  ;;  %v1972_v61 = vmul.f32 %v5206_v49, %v1971_v7  ;;  %2931 = vmatmul.msk.f32.gmra.mxu1 %vm698_vm1, %v2264_v20  ;;  %v2663_v55 = vpop.f32.mrf.mxu2  ;;  %v1174_v54 = vsel %vm698_vm1, %v1054_v30, 0.0  ;;  %v2106_v23 = vmul.f32 %v3618_v53, %v1969_v2  ;;  %vm5278_vm7 = vmor %vm1976_vm6, %vm1977_vm5  ;;  %vm1996_vm13 = vweird.f32 %v5248_v40 }
 0x3b8   : > { %1181 = vadd.xlane.f32.xlu2 %v1180_v8  ;;  %v1953_v59 = vmul.f32 0.5, %v1952_v17  ;;  %v2664_v47 = vadd.f32 %v4737_v42, %v2663_v55  ;;  %v1161_v15 = vpop.xlane.xlu1 %1160  ;;  %1175 = vadd.xlane.f32.xlu1 %v1174_v54  ;;  %v2202_v21 = vadd.f32 %v3625_v12, %v2137_v24  ;;  %v1654_v55 = vsub.f32 1.5, %v1653_v32 }
 0x3b9   : > { %v1305_v27 = vmul.f32 %v1161_v15, %v3385_v58  ;;  %v1973_v5 = vmul.f32 0.5, %v1972_v61 }
 0x3ba   : > { %v1954_v4 = vsub.f32 1.5, %v1953_v59  ;;  %2764 = vst.msk [vmem:[%s3797_s19 + $0x170] sm:$0xff] %vm2717_vm15, %v2664_v47  ;;  %v2266_v9 = vmax.f32 %v2202_v21, 0.0  ;;  %v1655_v39 = vmul.f32 %v5192_v3, %v1654_v55 }
 0x3bb   : > { %v5241_v57 = vadd.f32 1e-05, %v1305_v27  ;;  %v1974_v13 = vsub.f32 1.5, %v1973_v5  ;;  %v5296_v27 = vld [vmem:[%s5607_s4] ss:$0 sm:$0xff] }
 0x3bc   : > { %v1955_v38 = vmul.f32 %v3090_v51, %v1954_v4 }
 0x3bd   : > { %3093 = vrsqrt.f32 %v5241_v57  ;;  %v1975_v30 = vmul.f32 %v5206_v49, %v1974_v13  ;;  %vm1646_vm11 = vweird.f32 %v5241_v57 }
 0x3be   : > { %v1959_v6 = vsel %vm1958_vm4, %v3090_v51, %v1955_v38  ;;  %3095 = vrsqrt.f32 %v5248_v40 }
 0x3bf   : > { %2932 = vmatmul.msk.f32.gmra.mxu1 %vm698_vm1, %v2265_v60  ;;  %v2666_v29 = vpop.f32.mrf.mxu2  ;;  %v2105_v46 = vmul.f32 %v3618_v53, %v1959_v6  ;;  %v1979_v22 = vsel %vm5278_vm7, %v5206_v49, %v1975_v30 }
 0x3c0   : > { %v2667_v43 = vadd.f32 %v4737_v42, %v2666_v29  ;;  %v887_v7 = vpop.xlane.xlu1 %886  ;;  %v2107_v0 = vmul.f32 %v3618_v53, %v1979_v22  ;;  %v1659_v29 = vsel %vm1658_vm0, %v5192_v3, %v1655_v39 }
 0x3c1   : > { %v2570_v20 = vpop.f32.mrf.mxu1  ;;  %v960_v10 = vmul.f32 %v3385_v58, %v887_v7  ;;  %v2169_v17 = vmul.f32 %v2105_v46, %v4810_v44  ;;  %v2170_v44 = vmul.f32 %v2106_v23, %v4582_v19 }
 0x3c2   : > { %v2571_v51 = vadd.f32 %v4737_v42, %v2570_v20  ;;  %2765 = vst.msk [vmem:[%s3797_s19 + $0x178] sm:$0xff] %vm2717_vm15, %v2667_v43  ;;  %v2171_v32 = vmul.f32 %v2107_v0, %v4801_v41  ;;  %v2075_v20 = vmul.f32 %v3618_v53, %v1659_v29 }
 0x3c3   : > { %v3094_v8 = vpop.eup %3093  ;;  %v5270_v34 = vsub.f32 %v4935_v52, %v960_v10  ;;  %v2234_v61 = vadd.f32 %v3625_v12, %v2169_v17  ;;  %v2235_v5 = vadd.f32 %v3625_v12, %v2170_v44 }
 0x3c4   : > { %2733 = vst.msk [vmem:[%s3797_s19 + $0x78] sm:$0xff] %vm2717_vm15, %v2571_v51  ;;  %v1641_v42 = vmul.f32 %v3094_v8, %v5241_v57  ;;  %v5284_v47 = vpop.eup %3095  ;;  %vm1647_vm9 = vweird.f32 %v3094_v8  ;;  %v2236_v21 = vadd.f32 %v3625_v12, %v2171_v32 }
 0x3c5   : > { %v2298_v59 = vmax.f32 %v2234_v61, 0.0  ;;  %v1088_v52 = vmul.f32 %v5270_v34, %v5270_v34  ;;  %v1991_v60 = vmul.f32 %v5284_v47, %v5248_v40  ;;  %vm1648_vm12 = vmor %vm1646_vm11, %vm1647_vm9  ;;  %v2299_v46 = vmax.f32 %v2235_v5, 0.0 }
 0x3c6   : > { %v1642_v15 = vmul.f32 %v3094_v8, %v1641_v42  ;;  %v2300_v44 = vmax.f32 %v2236_v21, 0.0  ;;  %vm1997_vm14 = vweird.f32 %v5284_v47 }
 0x3c7   : > { %2933 = vmatmul.msk.f32.gmra.mxu1 %vm698_vm1, %v2266_v9  ;;  %v2669_v19 = vpop.f32.mrf.mxu2  ;;  %2965 = vmatmul.msk.f32.gmra.mxu2 %vm698_vm1, %v2298_v59  ;;  %v1276_v54 = vsel %vm698_vm1, %v1088_v52, 0.0  ;;  %v1992_v43 = vmul.f32 %v5284_v47, %v1991_v60  ;;  %vm1998_vm3 = vmor %vm1996_vm13, %vm1997_vm14 }
 0x3c8   : > { %v1643_v25 = vmul.f32 0.5, %v1642_v15  ;;  %v2670_v49 = vadd.f32 %v5296_v27, %v2669_v19  ;;  %1277 = vadd.xlane.f32.xlu1 %v1276_v54  ;;  %v1263_v56 = vpop.xlane.xlu1 %1262 }
 0x3c9   : > { %v2573_v4 = vpop.f32.mrf.mxu1  ;;  %v1339_v38 = vmul.f32 %v1263_v56, %v3385_v58  ;;  %v1993_v41 = vmul.f32 0.5, %v1992_v43 }
 0x3ca   : > { %v2574_v2 = vadd.f32 %v5296_v27, %v2573_v4  ;;  %v1644_v24 = vsub.f32 1.5, %v1643_v25  ;;  %2766 = vst.msk [vmem:[%s3797_s19 + $0x180] sm:$0xff] %vm2717_vm15, %v2670_v49 }
 0x3cb   : > { %v1403_v6 = vadd.f32 1e-05, %v1339_v38  ;;  %v1994_v62 = vsub.f32 1.5, %v1993_v41 }
 0x3cc   : > { %2734 = vst.msk [vmem:[%s3797_s19 + $0x80] sm:$0xff] %vm2717_vm15, %v2574_v2  ;;  %v1645_v13 = vmul.f32 %v3094_v8, %v1644_v24 }
 0x3cd   : > { %3097 = vrsqrt.f32 %v1403_v6  ;;  %v1995_v15 = vmul.f32 %v5284_v47, %v1994_v62  ;;  %vm1986_vm4 = vweird.f32 %v1403_v6 }
 0x3ce   : > { %v1649_v14 = vsel %vm1648_vm12, %v3094_v8, %v1645_v13 }
 0x3cf   : > { %2966 = vmatmul.msk.f32.gmra.mxu2 %vm698_vm1, %v2299_v46  ;;  %v2074_v7 = vmul.f32 %v3618_v53, %v1649_v14  ;;  %v1999_v49 = vsel %vm1998_vm3, %v5284_v47, %v1995_v15 }
 0x3d0   : > { %v794_v23 = vpop.xlane.xlu1 %793  ;;  %v2109_v0 = vmul.f32 %v3618_v53, %v1999_v49 }
 0x3d1   : > { %v2576_v10 = vpop.f32.mrf.mxu1  ;;  %v929_v57 = vmul.f32 %v3385_v58, %v794_v23  ;;  %v2138_v51 = vmul.f32 %v2074_v7, %v4904_v63  ;;  %v2139_v63 = vmul.f32 %v2075_v20, %v4621_v36 }
 0x3d2   : > { %v2577_v3 = vadd.f32 %v5296_v27, %v2576_v10  ;;  %v2173_v24 = vmul.f32 %v2109_v0, %v4690_v37 }
 0x3d3   : > { %v3098_v17 = vpop.eup %3097  ;;  %v5325_v30 = vsub.f32 %v4986_v48, %v929_v57  ;;  %v2203_v8 = vadd.f32 %v3625_v12, %v2138_v51  ;;  %v2204_v36 = vadd.f32 %v3625_v12, %v2139_v63 }
 0x3d4   : > { %2735 = vst.msk [vmem:[%s3797_s19 + $0x88] sm:$0xff] %vm2717_vm15, %v2577_v3  ;;  %v1981_v61 = vmul.f32 %v3098_v17, %v1403_v6  ;;  %vm1987_vm2 = vweird.f32 %v3098_v17  ;;  %v2238_v29 = vadd.f32 %v3625_v12, %v2173_v24 }
 0x3d5   : > { %v2267_v42 = vmax.f32 %v2203_v8, 0.0  ;;  %v1057_v55 = vmul.f32 %v5325_v30, %v5325_v30  ;;  %vm1988_vm5 = vmor %vm1986_vm4, %vm1987_vm2  ;;  %v2268_v25 = vmax.f32 %v2204_v36, 0.0 }
 0x3d6   : > { %v1982_v9 = vmul.f32 %v3098_v17, %v1981_v61  ;;  %v2302_v46 = vmax.f32 %v2238_v29, 0.0 }
 0x3d7   : > { %v2672_v59 = vpop.f32.mrf.mxu2  ;;  %2934 = vmatmul.msk.f32.gmra.mxu1 %vm698_vm1, %v2267_v42  ;;  %2967 = vmatmul.msk.f32.gmra.mxu2 %vm698_vm1, %v2300_v44  ;;  %v1183_v52 = vsel %vm698_vm1, %v1057_v55, 0.0 }
 0x3d8   : > { %v2673_v48 = vadd.f32 %v5296_v27, %v2672_v59  ;;  %v1983_v22 = vmul.f32 0.5, %v1982_v9  ;;  %1184 = vadd.xlane.f32.xlu1 %v1183_v52 }
 0x3da   : > { %2767 = vst.msk [vmem:[%s3797_s19 + $0x188] sm:$0xff] %vm2717_vm15, %v2673_v48  ;;  %v1984_v19 = vsub.f32 1.5, %v1983_v22 }
 0x3dc   : > { %v1985_v54 = vmul.f32 %v3098_v17, %v1984_v19 }
 0x3de   : > { %v1989_v40 = vsel %vm1988_vm5, %v3098_v17, %v1985_v54 }
 0x3df   : > { %v2675_v56 = vpop.f32.mrf.mxu2  ;;  %v2108_v4 = vmul.f32 %v3618_v53, %v1989_v40  ;;  %2935 = vmatmul.msk.f32.gmra.mxu1 %vm698_vm1, %v2268_v25 }
 0x3e0   : > { %v2676_v5 = vadd.f32 %v5296_v27, %v2675_v56 }
 0x3e1   : > { %v2579_v39 = vpop.f32.mrf.mxu1  ;;  %v2172_v2 = vmul.f32 %v2108_v4, %v4963_v45  ;;  %v1173_v45 = vpop.xlane.xlu2 %1172 }
 0x3e2   : > { %2768 = vst.msk [vmem:[%s3797_s19 + $0x190] sm:$0xff] %vm2717_vm15, %v2676_v5  ;;  %v2580_v38 = vadd.f32 %v5296_v27, %v2579_v39  ;;  %v1309_v32 = vmul.f32 %v1173_v45, %v3385_v58 }
 0x3e3   : > { %v2237_v47 = vadd.f32 %v3625_v12, %v2172_v2 }
 0x3e4   : > { %2736 = vst.msk [vmem:[%s3797_s19 + $0x90] sm:$0xff] %vm2717_vm15, %v2580_v38  ;;  %v5363_v43 = vadd.f32 1e-05, %v1309_v32 }
 0x3e5   : > { %v2301_v60 = vmax.f32 %v2237_v47, 0.0 }
 0x3e6   : > { %3099 = vrsqrt.f32 %v5363_v43  ;;  %vm1686_vm12 = vweird.f32 %v5363_v43 }
 0x3e7   : > { %2968 = vmatmul.msk.f32.gmra.mxu2 %vm698_vm1, %v2301_v60 }
 0x3e9   : > { %v2582_v6 = vpop.f32.mrf.mxu1 }
 0x3ea   : > { %v2583_v13 = vadd.f32 %v5296_v27, %v2582_v6 }
 0x3ec   : > { %2737 = vst.msk [vmem:[%s3797_s19 + $0x98] sm:$0xff] %vm2717_vm15, %v2583_v13  ;;  %v5367_v23 = vpop.eup %3099 }
 0x3ed   : > { %v1681_v51 = vmul.f32 %v5367_v23, %v5363_v43  ;;  %vm1687_vm10 = vweird.f32 %v5367_v23 }
 0x3ee   : > { %vm5405_vm13 = vmor %vm1686_vm12, %vm1687_vm10 }
 0x3ef   : > { %2969 = vmatmul.msk.f32.gmra.mxu2 %vm698_vm1, %v2302_v46  ;;  %v1682_v17 = vmul.f32 %v5367_v23, %v1681_v51 }
 0x3f1   : > { %v1683_v52 = vmul.f32 0.5, %v1682_v17 }
 0x3f3   : > { %v1684_v40 = vsub.f32 1.5, %v1683_v52 }
 0x3f5   : > { %v1685_v60 = vmul.f32 %v5367_v23, %v1684_v40 }
 0x40a   : > { %v1167_v14 = vpop.xlane.xlu0 %1166 }
 0x40b   : > { %v1307_v37 = vmul.f32 %v1167_v14, %v3385_v58 }
 0x40d   : > { %v1371_v7 = vadd.f32 1e-05, %v1307_v37 }
 0x40f   : > { %3101 = vrsqrt.f32 %v1371_v7  ;;  %vm1666_vm7 = vweird.f32 %v1371_v7 }
 0x412   : > { %v1170_v20 = vpop.xlane.xlu0 %1169 }
 0x413   : > { %v1308_v10 = vmul.f32 %v1170_v20, %v3385_v58  ;;  %v1689_v20 = vsel %vm5405_vm13, %v5367_v23, %v1685_v60 }
 0x414   : > { %v2078_v23 = vmul.f32 %v3618_v53, %v1689_v20 }
 0x415   : > { %v3102_v57 = vpop.eup %3101  ;;  %v1372_v3 = vadd.f32 1e-05, %v1308_v10 }
 0x416   : > { %v1661_v21 = vmul.f32 %v3102_v57, %v1371_v7  ;;  %vm1667_vm6 = vweird.f32 %v3102_v57 }
 0x417   : > { %3103 = vrsqrt.f32 %v1372_v3  ;;  %vm1668_vm8 = vmor %vm1666_vm7, %vm1667_vm6  ;;  %vm1676_vm0 = vweird.f32 %v1372_v3 }
 0x418   : > { %v1662_v41 = vmul.f32 %v3102_v57, %v1661_v21 }
 0x41a   : > { %v1663_v8 = vmul.f32 0.5, %v1662_v41  ;;  %v1272_v61 = vpop.xlane.xlu0 %1271  ;;  %v1269_v55 = vpop.xlane.xlu1 %1268 }
 0x41b   : > { %v1342_v42 = vmul.f32 %v1272_v61, %v3385_v58  ;;  %v1275_v63 = vpop.xlane.xlu2 %1274  ;;  %v1341_v9 = vmul.f32 %v1269_v55, %v3385_v58 }
 0x41c   : > { %v1664_v44 = vsub.f32 1.5, %v1663_v8  ;;  %v1343_v59 = vmul.f32 %v1275_v63, %v3385_v58 }
 0x41d   : > { %v3104_v62 = vpop.eup %3103  ;;  %v5376_v48 = vadd.f32 1e-05, %v1342_v42  ;;  %v5378_v15 = vadd.f32 1e-05, %v1341_v9 }
 0x41e   : > { %v1665_v22 = vmul.f32 %v3102_v57, %v1664_v44  ;;  %v1671_v36 = vmul.f32 %v3104_v62, %v1372_v3  ;;  %v5380_v19 = vadd.f32 1e-05, %v1343_v59  ;;  %vm1677_vm9 = vweird.f32 %v3104_v62 }
 0x41f   : > { %3105 = vrsqrt.f32 %v5376_v48  ;;  %vm1678_vm11 = vmor %vm1676_vm0, %vm1677_vm9  ;;  %vm2016_vm3 = vweird.f32 %v5376_v48  ;;  %vm2006_vm4 = vweird.f32 %v5378_v15 }
 0x420   : > { %v1669_v54 = vsel %vm1668_vm8, %v3102_v57, %v1665_v22  ;;  %v1672_v25 = vmul.f32 %v3104_v62, %v1671_v36  ;;  %3107 = vrsqrt.f32 %v5378_v15  ;;  %vm2026_vm8 = vweird.f32 %v5380_v19 }
 0x421   : > { %v2076_v49 = vmul.f32 %v3618_v53, %v1669_v54  ;;  %3109 = vrsqrt.f32 %v5380_v19 }
 0x422   : > { %v1673_v56 = vmul.f32 0.5, %v1672_v25  ;;  %v1179_v4 = vpop.xlane.xlu0 %1178 }
 0x423   : > { %v1311_v5 = vmul.f32 %v1179_v4, %v3385_v58  ;;  %v2140_v39 = vmul.f32 %v2076_v49, %v5043_v28 }
 0x424   : > { %v1674_v0 = vsub.f32 1.5, %v1673_v56  ;;  %v2142_v56 = vmul.f32 %v2078_v23, %v4785_v50 }
 0x425   : > { %v5388_v38 = vpop.eup %3105  ;;  %v5391_v2 = vadd.f32 1e-05, %v1311_v5  ;;  %v2205_v47 = vadd.f32 %v3625_v12, %v2140_v39 }
 0x426   : > { %v1675_v24 = vmul.f32 %v3104_v62, %v1674_v0  ;;  %v2011_v6 = vmul.f32 %v5388_v38, %v5376_v48  ;;  %v3108_v13 = vpop.eup %3107  ;;  %vm2017_vm2 = vweird.f32 %v5388_v38 }
 0x427   : > { %3111 = vrsqrt.f32 %v5391_v2  ;;  %v2269_v28 = vmax.f32 %v2205_v47, 0.0  ;;  %v5398_v29 = vpop.eup %3109  ;;  %v2001_v45 = vmul.f32 %v3108_v13, %v5378_v15  ;;  %vm2007_vm14 = vweird.f32 %v3108_v13  ;;  %vm5434_vm5 = vmor %vm2016_vm3, %vm2017_vm2 }
 0x428   : > { %v1679_v46 = vsel %vm1678_vm11, %v3104_v62, %v1675_v24  ;;  %v2012_v32 = vmul.f32 %v5388_v38, %v2011_v6  ;;  %v2021_v7 = vmul.f32 %v5398_v29, %v5380_v19  ;;  %vm2008_vm6 = vmor %vm2006_vm4, %vm2007_vm14  ;;  %vm2027_vm7 = vweird.f32 %v5398_v29 }
 0x429   : > { %v2077_v37 = vmul.f32 %v3618_v53, %v1679_v46  ;;  %2936 = vmatmul.msk.f32.gmra.mxu1 %vm698_vm1, %v2269_v28  ;;  %v2678_v43 = vpop.f32.mrf.mxu2  ;;  %v2002_v10 = vmul.f32 %v3108_v13, %v2001_v45  ;;  %v2207_v28 = vadd.f32 %v3625_v12, %v2142_v56  ;;  %vm2028_vm9 = vmor %vm2026_vm8, %vm2027_vm7  ;;  %vm1706_vm11 = vweird.f32 %v5391_v2 }
 0x42a   : > { %v2013_v57 = vmul.f32 0.5, %v2012_v32  ;;  %v2679_v3 = vadd.f32 %v5296_v27, %v2678_v43  ;;  %v1281_v51 = vpop.xlane.xlu0 %1280  ;;  %v2022_v21 = vmul.f32 %v5398_v29, %v2021_v7 }
 0x42b   : > { %v1182_v41 = vpop.xlane.xlu2 %1181  ;;  %v2141_v17 = vmul.f32 %v2077_v37, %v5051_v33  ;;  %v2003_v8 = vmul.f32 0.5, %v2002_v10  ;;  %v1176_v55 = vpop.xlane.xlu1 %1175  ;;  %v1345_v63 = vmul.f32 %v1281_v51, %v3385_v58 }
 0x42c   : > { %v2014_v61 = vsub.f32 1.5, %v2013_v57  ;;  %2769 = vst.msk [vmem:[%s3797_s19 + $0x198] sm:$0xff] %vm2717_vm15, %v2679_v3  ;;  %v1312_v42 = vmul.f32 %v1182_v41, %v3385_v58  ;;  %v2023_v9 = vmul.f32 0.5, %v2022_v21  ;;  %v1310_v52 = vmul.f32 %v1176_v55, %v3385_v58 }
 0x42d   : > { %v5422_v44 = vpop.eup %3111  ;;  %v2004_v62 = vsub.f32 1.5, %v2003_v8  ;;  %v2206_v59 = vadd.f32 %v3625_v12, %v2141_v17  ;;  %v5444_v48 = vadd.f32 1e-05, %v1345_v63  ;;  %v2271_v57 = vmax.f32 %v2207_v28, 0.0 }
 0x42e   : > { %v2015_v33 = vmul.f32 %v5388_v38, %v2014_v61  ;;  %v5431_v22 = vadd.f32 1e-05, %v1312_v42  ;;  %v1701_v25 = vmul.f32 %v5422_v44, %v5391_v2  ;;  %v5441_v49 = vadd.f32 1e-05, %v1310_v52 }
 0x42f   : > { %v2005_v36 = vmul.f32 %v3108_v13, %v2004_v62  ;;  %v2024_v4 = vsub.f32 1.5, %v2023_v9  ;;  %v2270_v39 = vmax.f32 %v2206_v59, 0.0  ;;  %vm1707_vm10 = vweird.f32 %v5422_v44 }
 0x430   : > { %3113 = vrsqrt.f32 %v5431_v22  ;;  %v2019_v5 = vsel %vm5434_vm5, %v5388_v38, %v2015_v33  ;;  %v1702_v47 = vmul.f32 %v5422_v44, %v1701_v25  ;;  %vm1708_vm12 = vmor %vm1706_vm11, %vm1707_vm10  ;;  %vm1696_vm13 = vweird.f32 %v5441_v49 }
 0x431   : > { %v2681_v40 = vpop.f32.mrf.mxu2  ;;  %v2009_v15 = vsel %vm2008_vm6, %v3108_v13, %v2005_v36  ;;  %3115 = vrsqrt.f32 %v5441_v49  ;;  %2937 = vmatmul.msk.f32.gmra.mxu1 %vm698_vm1, %v2270_v39  ;;  %v2111_v50 = vmul.f32 %v3618_v53, %v2019_v5  ;;  %v2025_v38 = vmul.f32 %v5398_v29, %v2024_v4 }
 0x432   : > { %v2110_v0 = vmul.f32 %v3618_v53, %v2009_v15  ;;  %v2682_v60 = vadd.f32 %v5296_v27, %v2681_v40  ;;  %3117 = vrsqrt.f32 %v5444_v48  ;;  %v1703_v32 = vmul.f32 0.5, %v1702_v47 }
 0x433   : > { %v2175_v43 = vmul.f32 %v2111_v50, %v5081_v18  ;;  %v2029_v20 = vsel %vm2028_vm9, %v5398_v29, %v2025_v38  ;;  %vm1716_vm3 = vweird.f32 %v5431_v22  ;;  %vm2046_vm7 = vweird.f32 %v5444_v48 }
 0x434   : > { %v2585_v24 = vpop.f32.mrf.mxu1  ;;  %v2174_v6 = vmul.f32 %v2110_v0, %v5119_v16  ;;  %2770 = vst.msk [vmem:[%s3797_s19 + $0x1a0] sm:$0xff] %vm2717_vm15, %v2682_v60  ;;  %v1704_v51 = vsub.f32 1.5, %v1703_v32  ;;  %v2112_v18 = vmul.f32 %v3618_v53, %v2029_v20 }
 0x435   : > { %v2586_v13 = vadd.f32 %v5296_v27, %v2585_v24  ;;  %v2240_v61 = vadd.f32 %v3625_v12, %v2175_v43 }
 0x436   : > { %v5464_v46 = vpop.eup %3113  ;;  %v2239_v45 = vadd.f32 %v3625_v12, %v2174_v6  ;;  %v1705_v62 = vmul.f32 %v5422_v44, %v1704_v51  ;;  %v2176_v52 = vmul.f32 %v2112_v18, %v5109_v26 }
 0x437   : > { %v1711_v16 = vmul.f32 %v5464_v46, %v5431_v22  ;;  %2738 = vst.msk [vmem:[%s3797_s19 + $0xa0] sm:$0xff] %vm2717_vm15, %v2586_v13  ;;  %v3116_v14 = vpop.eup %3115  ;;  %v2304_v59 = vmax.f32 %v2240_v61, 0.0  ;;  %vm1717_vm2 = vweird.f32 %v5464_v46 }
 0x438   : > { %v2303_v7 = vmax.f32 %v2239_v45, 0.0  ;;  %v1691_v10 = vmul.f32 %v3116_v14, %v5441_v49  ;;  %v5475_v3 = vpop.eup %3117  ;;  %vm1697_vm0 = vweird.f32 %v3116_v14  ;;  %v1709_v25 = vsel %vm1708_vm12, %v5422_v44, %v1705_v62  ;;  %vm5510_vm4 = vmor %vm1716_vm3, %vm1717_vm2 }
 0x439   : > { %v2684_v37 = vpop.f32.mrf.mxu2  ;;  %v1712_v41 = vmul.f32 %v5464_v46, %v1711_v16  ;;  %2938 = vmatmul.msk.f32.gmra.mxu1 %vm698_vm1, %v2271_v57  ;;  %v2041_v23 = vmul.f32 %v5475_v3, %v5444_v48  ;;  %vm1698_vm14 = vmor %vm1696_vm13, %vm1697_vm0  ;;  %v2241_v4 = vadd.f32 %v3625_v12, %v2176_v52  ;;  %v2080_v49 = vmul.f32 %v3618_v53, %v1709_v25 }
 0x43a   : > { %v2685_v19 = vadd.f32 %v5296_v27, %v2684_v37  ;;  %2970 = vmatmul.msk.f32.gmra.mxu2 %vm698_vm1, %v2303_v7  ;;  %v1692_v21 = vmul.f32 %v3116_v14, %v1691_v10  ;;  %vm2047_vm5 = vweird.f32 %v5475_v3 }
 0x43b   : > { %v1278_v17 = vpop.xlane.xlu1 %1277  ;;  %v1713_v33 = vmul.f32 0.5, %v1712_v41  ;;  %v2042_v54 = vmul.f32 %v5475_v3, %v2041_v23  ;;  %v2305_v50 = vmax.f32 %v2241_v4, 0.0  ;;  %v2144_v28 = vmul.f32 %v2080_v49, %v5122_v35  ;;  %vm2048_vm8 = vmor %vm2046_vm7, %vm2047_vm5 }
 0x43c   : > { %2771 = vst.msk [vmem:[%s3797_s19 + $0x1a8] sm:$0xff] %vm2717_vm15, %v2685_v19  ;;  %v1344_v29 = vmul.f32 %v1278_v17, %v3385_v58  ;;  %v2588_v8 = vpop.f32.mrf.mxu1  ;;  %v1693_v42 = vmul.f32 0.5, %v1692_v21 }
 0x43d   : > { %v2589_v55 = vadd.f32 %v5296_v27, %v2588_v8  ;;  %v1714_v56 = vsub.f32 1.5, %v1713_v33  ;;  %v2043_v26 = vmul.f32 0.5, %v2042_v54  ;;  %v2209_v43 = vadd.f32 %v3625_v12, %v2144_v28 }
 0x43e   : > { %v1408_v63 = vadd.f32 1e-05, %v1344_v29  ;;  %v1694_v9 = vsub.f32 1.5, %v1693_v42 }
 0x43f   : > { %2739 = vst.msk [vmem:[%s3797_s19 + $0xa8] sm:$0xff] %vm2717_vm15, %v2589_v55  ;;  %v1715_v47 = vmul.f32 %v5464_v46, %v1714_v56  ;;  %v2044_v24 = vsub.f32 1.5, %v2043_v26  ;;  %v2273_v19 = vmax.f32 %v2209_v43, 0.0 }
 0x440   : > { %3119 = vrsqrt.f32 %v1408_v63  ;;  %v1695_v36 = vmul.f32 %v3116_v14, %v1694_v9  ;;  %vm2036_vm9 = vweird.f32 %v1408_v63 }
 0x441   : > { %v1719_v45 = vsel %vm5510_vm4, %v5464_v46, %v1715_v47  ;;  %v2045_v37 = vmul.f32 %v5475_v3, %v2044_v24 }
 0x442   : > { %2971 = vmatmul.msk.f32.gmra.mxu2 %vm698_vm1, %v2304_v59  ;;  %v1699_v40 = vsel %vm1698_vm14, %v3116_v14, %v1695_v36  ;;  %v2081_v35 = vmul.f32 %v3618_v53, %v1719_v45 }
 0x443   : > { %v2079_v2 = vmul.f32 %v3618_v53, %v1699_v40 }
 0x444   : > { %v2591_v15 = vpop.f32.mrf.mxu1  ;;  %v2145_v21 = vmul.f32 %v2081_v35, %v5197_v1 }
 0x445   : > { %v2592_v5 = vadd.f32 %v5296_v27, %v2591_v15  ;;  %v2143_v0 = vmul.f32 %v2079_v2, %v5202_v11 }
 0x446   : > { %v3120_v39 = vpop.eup %3119  ;;  %v2210_v8 = vadd.f32 %v3625_v12, %v2145_v21 }
 0x447   : > { %v2031_v44 = vmul.f32 %v3120_v39, %v1408_v63  ;;  %2740 = vst.msk [vmem:[%s3797_s19 + $0xb0] sm:$0xff] %vm2717_vm15, %v2592_v5  ;;  %v2208_v60 = vadd.f32 %v3625_v12, %v2143_v0  ;;  %vm2037_vm6 = vweird.f32 %v3120_v39 }
 0x448   : > { %vm2038_vm10 = vmor %vm2036_vm9, %vm2037_vm6  ;;  %v2274_v63 = vmax.f32 %v2210_v8, 0.0 }
 0x449   : > { %v2032_v6 = vmul.f32 %v3120_v39, %v2031_v44  ;;  %v2272_v11 = vmax.f32 %v2208_v60, 0.0 }
 0x44a   : > { %v2687_v13 = vpop.f32.mrf.mxu2  ;;  %2972 = vmatmul.msk.f32.gmra.mxu2 %vm698_vm1, %v2305_v50 }
 0x44b   : > { %v2033_v32 = vmul.f32 0.5, %v2032_v6  ;;  %v2688_v22 = vadd.f32 %v5296_v27, %v2687_v13  ;;  %v1185_v16 = vpop.xlane.xlu1 %1184  ;;  %2939 = vmatmul.msk.f32.gmra.mxu1 %vm698_vm1, %v2272_v11 }
 0x44c   : > { %v1313_v14 = vmul.f32 %v1185_v16, %v3385_v58  ;;  %v2049_v58 = vsel %vm2048_vm8, %v5475_v3, %v2045_v37 }
 0x44d   : > { %v2034_v7 = vsub.f32 1.5, %v2033_v32  ;;  %2772 = vst.msk [vmem:[%s3797_s19 + $0x1b0] sm:$0xff] %vm2717_vm15, %v2688_v22  ;;  %v2114_v41 = vmul.f32 %v3618_v53, %v2049_v58 }
 0x44e   : > { %v1377_v46 = vadd.f32 1e-05, %v1313_v14 }
 0x44f   : > { %v2035_v20 = vmul.f32 %v3120_v39, %v2034_v7  ;;  %v2178_v23 = vmul.f32 %v2114_v41, %v5176_v31 }
 0x450   : > { %3121 = vrsqrt.f32 %v1377_v46  ;;  %vm1726_vm11 = vweird.f32 %v1377_v46 }
 0x451   : > { %v2039_v10 = vsel %vm2038_vm10, %v3120_v39, %v2035_v20  ;;  %v2243_v59 = vadd.f32 %v3625_v12, %v2178_v23 }
 0x452   : > { %v2113_v57 = vmul.f32 %v3618_v53, %v2039_v10  ;;  %v2690_v51 = vpop.f32.mrf.mxu2 }
 0x453   : > { %v2691_v48 = vadd.f32 %v5296_v27, %v2690_v51  ;;  %2940 = vmatmul.msk.f32.gmra.mxu1 %vm698_vm1, %v2273_v19  ;;  %v2307_v54 = vmax.f32 %v2243_v59, 0.0 }
 0x454   : > { %v2594_v17 = vpop.f32.mrf.mxu1  ;;  %v2177_v18 = vmul.f32 %v2113_v57, %v5270_v34 }
 0x455   : > { %2773 = vst.msk [vmem:[%s3797_s19 + $0x1b8] sm:$0xff] %vm2717_vm15, %v2691_v48  ;;  %v2595_v3 = vadd.f32 %v5296_v27, %v2594_v17 }
 0x456   : > { %v3122_v29 = vpop.eup %3121  ;;  %v2242_v61 = vadd.f32 %v3625_v12, %v2177_v18 }
 0x457   : > { %v1721_v1 = vmul.f32 %v3122_v29, %v1377_v46  ;;  %2741 = vst.msk [vmem:[%s3797_s19 + $0xb8] sm:$0xff] %vm2717_vm15, %v2595_v3  ;;  %vm1727_vm0 = vweird.f32 %v3122_v29 }
 0x458   : > { %v2306_v42 = vmax.f32 %v2242_v61, 0.0  ;;  %vm1728_vm12 = vmor %vm1726_vm11, %vm1727_vm0 }
 0x459   : > { %v1722_v55 = vmul.f32 %v3122_v29, %v1721_v1 }
 0x45a   : > { %v2693_v34 = vpop.f32.mrf.mxu2  ;;  %2973 = vmatmul.msk.f32.gmra.mxu2 %vm698_vm1, %v2306_v42 }
 0x45b   : > { %v1723_v62 = vmul.f32 0.5, %v1722_v55  ;;  %v2694_v9 = vadd.f32 %v5296_v27, %v2693_v34  ;;  %2941 = vmatmul.msk.f32.gmra.mxu1 %vm698_vm1, %v2274_v63 }
 0x45c   : > { %v2597_v33 = vpop.f32.mrf.mxu1 }
 0x45d   : > { %v1724_v52 = vsub.f32 1.5, %v1723_v62  ;;  %2774 = vst.msk [vmem:[%s3797_s19 + $0x1c0] sm:$0xff] %vm2717_vm15, %v2694_v9  ;;  %v2598_v31 = vadd.f32 %v5296_v27, %v2597_v33 }
 0x45f   : > { %v1725_v36 = vmul.f32 %v3122_v29, %v1724_v52  ;;  %2742 = vst.msk [vmem:[%s3797_s19 + $0xc0] sm:$0xff] %vm2717_vm15, %v2598_v31 }
 0x461   : > { %v1729_v25 = vsel %vm1728_vm12, %v3122_v29, %v1725_v36 }
 0x462   : > { %v2082_v40 = vmul.f32 %v3618_v53, %v1729_v25  ;;  %2974 = vmatmul.msk.f32.gmra.mxu2 %vm698_vm1, %v2307_v54 }
 0x464   : > { %v2146_v56 = vmul.f32 %v2082_v40, %v5325_v30 }
 0x466   : > { %v2211_v2 = vadd.f32 %v3625_v12, %v2146_v56 }
 0x468   : > { %v2275_v15 = vmax.f32 %v2211_v2, 0.0 }
 0x46a   : > { %2942 = vmatmul.msk.f32.gmra.mxu1 %vm698_vm1, %v2275_v15  ;;  %v2696_v4 = vpop.f32.mrf.mxu2 }
 0x46b   : > { %v2697_v26 = vadd.f32 %v5296_v27, %v2696_v4 }
 0x46d   : > { %2775 = vst.msk [vmem:[%s3797_s19 + $0x1c8] sm:$0xff] %vm2717_vm15, %v2697_v26 }
 0x472   : > { %v2699_v5 = vpop.f32.mrf.mxu2 }
 0x473   : > { %v2700_v53 = vadd.f32 %v5296_v27, %v2699_v5 }
 0x475   : > { %2776 = vst.msk [vmem:[%s3797_s19 + $0x1d0] sm:$0xff] %vm2717_vm15, %v2700_v53 }
 0x4a6   : > { %v2600_v39 = vpop.f32.mrf.mxu1 }
 0x4a7   : > { %v2601_v30 = vadd.f32 %v5296_v27, %v2600_v39 }
 0x4a9   : > { %2743 = vst.msk [vmem:[%s3797_s19 + $0xc8] sm:$0xff] %vm2717_vm15, %v2601_v30 }
 0x4ae   : > { %v2603_v12 = vpop.f32.mrf.mxu1 }
 0x4af   : > { %v2604_v49 = vadd.f32 %v5296_v27, %v2603_v12 }
 0x4b1   : > { %2744 = vst.msk [vmem:[%s3797_s19 + $0xd0] sm:$0xff] %vm2717_vm15, %v2604_v49 }
 0x4b6   : > { %v2606_v0 = vpop.f32.mrf.mxu1 }
 0x4b7   : > { %v2607_v47 = vadd.f32 %v5296_v27, %v2606_v0 }
 0x4b9   : > { %2745 = vst.msk [vmem:[%s3797_s19 + $0xd8] sm:$0xff] %vm2717_vm15, %v2607_v47 }
 0x4bd   : > { %v2702_v44 = vpop.f32.mrf.mxu2 }
 0x4be   : > { %v2703_v60 = vadd.f32 %v5296_v27, %v2702_v44 }
 0x4c0   : > { %2777 = vst.msk [vmem:[%s3797_s19 + $0x1d8] sm:$0xff] %vm2717_vm15, %v2703_v60 }
 0x4c5   : > { %v2705_v50 = vpop.f32.mrf.mxu2 }
 0x4c6   : > { %v2706_v24 = vadd.f32 %v5296_v27, %v2705_v50 }
 0x4c8   : > { %2778 = vst.msk [vmem:[%s3797_s19 + $0x1e0] sm:$0xff] %vm2717_vm15, %v2706_v24  ;;  %v2609_v6 = vpop.f32.mrf.mxu1 }
 0x4c9   : > { %v2610_v38 = vadd.f32 %v5296_v27, %v2609_v6 }
 0x4cb   : > { %2746 = vst.msk [vmem:[%s3797_s19 + $0xe0] sm:$0xff] %vm2717_vm15, %v2610_v38 }
 0x4cd   : > { %v2708_v11 = vpop.f32.mrf.mxu2 }
 0x4ce   : > { %v2709_v13 = vadd.f32 %v5296_v27, %v2708_v11 }
 0x4d0   : > { %2779 = vst.msk [vmem:[%s3797_s19 + $0x1e8] sm:$0xff] %vm2717_vm15, %v2709_v13  ;;  %v2612_v28 = vpop.f32.mrf.mxu1 }
 0x4d1   : > { %v2613_v45 = vadd.f32 %v5296_v27, %v2612_v28 }
 0x4d3   : > { %2747 = vst.msk [vmem:[%s3797_s19 + $0xe8] sm:$0xff] %vm2717_vm15, %v2613_v45 }
 0x4d8   : > { %v2615_v32 = vpop.f32.mrf.mxu1 }
 0x4d9   : > { %v2616_v22 = vadd.f32 %v5296_v27, %v2615_v32 }
 0x4db   : > { %2748 = vst.msk [vmem:[%s3797_s19 + $0xf0] sm:$0xff] %vm2717_vm15, %v2616_v22 }
 0x4dd   : > { %v2711_v16 = vpop.f32.mrf.mxu2 }
 0x4de   : > { %v2712_v14 = vadd.f32 %v5296_v27, %v2711_v16 }
 0x4e0   : > { %2780 = vst.msk [vmem:[%s3797_s19 + $0x1f0] sm:$0xff] %vm2717_vm15, %v2712_v14 }
 0x4e5   : > { %v2714_v37 = vpop.f32.mrf.mxu2 }
 0x4e6   : > { %v2715_v7 = vadd.f32 %v5296_v27, %v2714_v37 }
 0x4e7   : > { %v2618_v35 = vpop.f32.mrf.mxu1 }
 0x4e8   : > { %2781 = vst.msk [vmem:[%s3797_s19 + $0x1f8] sm:$0xff] %vm2717_vm15, %v2715_v7  ;;  %v2619_v46 = vadd.f32 %v5296_v27, %v2618_v35 }
 0x4ea   : > { %2749 = vst.msk [vmem:[%s3797_s19 + $0xf8] sm:$0xff] %vm2717_vm15, %v2619_v46 }
 0x4eb PF: > { %s15_s18 = sadd.s32 1, %s3131_s18  }
 0x4ec   : > { %p12_p4 = scmp.ge.s32.totalorder %s15_s18, 6  }
 0x4ee   :  { %14 = sbr.rel (!%p12_p4) target bundleno = 1 (0x1), region = 70 }

</bundles_post_ra>
